<compile_context>
chip_gen: v7x
topology: tpu7x:2x2x1
jax: 0.10.0
libtpu: 0.0.40
codegen_flags: <defaults>
</compile_context>

<pallas_src>
import functools
import math

import jax
import jax.numpy as jnp
from jax.experimental import pallas as pl
from jax.experimental.pallas import tpu as pltpu


def _round_up(x, m):
    return ((x + m - 1) // m) * m


# -----------------------------------------------------------------------------
# One-time parameter preprocessing (hoisted out of the forward pass)
# -----------------------------------------------------------------------------
def prep_complex_conv_transpose2d(wr, wi, br, bi, *, use_bf16=True):
    """wr/wi: PyTorch ConvTranspose2d weights (Cin, Cout, K, K); br/bi: (Cout,).

    Builds the fused block weight (2*Cin, Npad) for the scatter/col2im formulation
    (no spatial flip), lane-padded to a multiple of 128 columns, and the fused bias
    (1, 2*Cout) = [br-bi | br+bi].
    """
    Cin, Cout, K, _ = wr.shape
    wr_t = jnp.transpose(wr, (0, 2, 3, 1)).astype(jnp.float32)   # (Cin, K, K, Cout)
    wi_t = jnp.transpose(wi, (0, 2, 3, 1)).astype(jnp.float32)
    top = jnp.concatenate([wr_t, wi_t], axis=-1)                 # rows for Xr
    bot = jnp.concatenate([-wi_t, wr_t], axis=-1)                # rows for Xi
    wblk = jnp.concatenate([top, bot], axis=0)                   # (2Cin, K, K, 2Cout)
    wblk = wblk.reshape(2 * Cin, K * K * 2 * Cout)
    n = wblk.shape[1]
    n_pad = _round_up(n, 128)                                    # lane-dense RHS
    if n_pad != n:
        wblk = jnp.pad(wblk, ((0, 0), (0, n_pad - n)))
    if use_bf16:
        wblk = wblk.astype(jnp.bfloat16)
    bfused = jnp.concatenate([br - bi, br + bi]).astype(jnp.float32)
    return {"wblk": wblk, "bfused": bfused.reshape(1, 2 * Cout)}


# -----------------------------------------------------------------------------
# Pallas kernel: fused complex matmul + in-VMEM col2im (stride-phase) + bias
# -----------------------------------------------------------------------------
def _fused_convt_kernel(x_ref, w_ref, b_ref, o_ref, *, H, W, K, s, C2):
    """Per batch image.

    x_ref: (1, H*W, 2*Cin)            activations [Xr | Xi]
    w_ref: (2*Cin, Npad)              block weight (resident)
    b_ref: (1, C2)                    fused bias
    o_ref: (s*s, Hp, Wp, C2)          stride-phase output canvases (f32)
    """
    x = x_ref[0]                                                  # (H*W, 2*Cin)
    cols = jnp.dot(x, w_ref[...], preferred_element_type=jnp.float32)
    cols = cols[:, :K * K * C2].reshape(H, W, K * K * C2)         # drop lane padding

    # Init every phase-canvas position with the fused bias (added once per pixel).
    o_ref[...] = jnp.broadcast_to(b_ref[...], o_ref.shape)

    # Overlap-add: full[h*s+ky, w*s+kx, :] += cols[h, w, (ky,kx), :]
    # decomposed by output parity -> only dense, statically indexed RMWs in VMEM.
    for ky in range(K):
        py, qy = ky % s, ky // s
        for kx in range(K):
            px, qx = kx % s, kx // s
            off = (ky * K + kx) * C2
            o_ref[py * s + px, qy:qy + H, qx:qx + W, :] += cols[:, :, off:off + C2]


# -----------------------------------------------------------------------------
# Forward pass: ComplexConvTranspose2d (apply_complex semantics)
# -----------------------------------------------------------------------------
def complex_conv_transpose2d(z, params, *, kernel_size, stride=1, padding=0,
                             output_padding=0):
    """z: (B, Cin, H, W) complex. Returns (B, Cout, Ho, Wo) complex64 (NCHW)."""
    B, Cin, H, W = z.shape
    K, s, p, op = kernel_size, stride, padding, output_padding
    wblk, bfused = params["wblk"], params["bfused"]
    C2 = bfused.shape[-1]
    Cout = C2 // 2
    Npad = wblk.shape[1]
    assert wblk.shape[0] == 2 * Cin and Npad >= K * K * C2

    Ho = (H - 1) * s - 2 * p + K + op
    Wo = (W - 1) * s - 2 * p + K + op
    Hf = (H - 1) * s + K
    Wf = (W - 1) * s + K
    Hp = -(-max(Hf, p + Ho) // s)          # phase-canvas extents (cover crop range)
    Wp = -(-max(Wf, p + Wo) // s)

    # NCHW complex -> per-pixel rows [real | imag]: (B, H*W, 2*Cin). Input-sized.
    xr = jnp.real(z).astype(jnp.float32)
    xi = jnp.imag(z).astype(jnp.float32)
    x2 = jnp.concatenate(
        [jnp.transpose(xr, (0, 2, 3, 1)).reshape(B, H * W, Cin),
         jnp.transpose(xi, (0, 2, 3, 1)).reshape(B, H * W, Cin)],
        axis=-1).astype(wblk.dtype)

    kernel = functools.partial(_fused_convt_kernel, H=H, W=W, K=K, s=s, C2=C2)
    out_bytes = B * s * s * Hp * Wp * C2 * 4
    cost = pl.CostEstimate(
        flops=2 * B * H * W * (2 * Cin) * Npad,
        transcendentals=0,
        bytes_accessed=int(B * H * W * 2 * Cin * x2.dtype.itemsize
                           + 2 * Cin * Npad * wblk.dtype.itemsize
                           + C2 * 4 + out_bytes))

    phases = pl.pallas_call(
        kernel,
        grid=(B,),
        in_specs=[
            pl.BlockSpec((1, H * W, 2 * Cin), lambda b: (b, 0, 0)),   # per-image rows
            pl.BlockSpec((2 * Cin, Npad), lambda b: (0, 0)),          # resident weight
            pl.BlockSpec((1, C2), lambda b: (0, 0)),                  # fused bias
        ],
        out_specs=pl.BlockSpec((s * s, Hp, Wp, C2), lambda b: (b, 0, 0, 0)),
        out_shape=jax.ShapeDtypeStruct((B * s * s, Hp, Wp, C2), jnp.float32),
        compiler_params=pltpu.CompilerParams(
            dimension_semantics=("parallel",)),                       # 2 steps -> both v7x TCs
        cost_estimate=cost,
    )(x2, wblk, bfused)

    # Single output-sized pass: interleave stride phases, crop, assemble complex.
    canvas = phases.reshape(B, s, s, Hp, Wp, C2)
    canvas = jnp.transpose(canvas, (0, 3, 1, 4, 2, 5)).reshape(B, Hp * s, Wp * s, C2)
    out = canvas[:, p:p + Ho, p:p + Wo, :]                           # bias already in
    y = (out[..., :Cout] + 1j * out[..., Cout:]).astype(jnp.complex64)
    return jnp.transpose(y, (0, 3, 1, 2))                            # NCHW


# -----------------------------------------------------------------------------
# Pure-JAX (XLA) reference of the PyTorch semantics, for correctness checking
# -----------------------------------------------------------------------------
def _conv_transpose2d_ref(x, w, b, s, p, op):
    """PyTorch ConvTranspose2d: x (B,Cin,H,W), w (Cin,Cout,K,K), b (Cout,)."""
    K = w.shape[-1]
    y = jax.lax.conv_general_dilated(
        x, jnp.transpose(w[:, :, ::-1, ::-1], (1, 0, 2, 3)),          # OIHW, flipped
        window_strides=(1, 1),
        padding=[(K - 1 - p, K - 1 - p + op), (K - 1 - p, K - 1 - p + op)],
        lhs_dilation=(s, s),
        dimension_numbers=("NCHW", "OIHW", "NCHW"),
        precision=jax.lax.Precision.HIGHEST)
    return y + b.reshape(1, -1, 1, 1)


def complex_conv_transpose2d_ref(z, wr, wi, br, bi, s, p, op):
    xr = jnp.real(z).astype(jnp.float32)
    xi = jnp.imag(z).astype(jnp.float32)
    real = (_conv_transpose2d_ref(xr, wr, br, s, p, op)
            - _conv_transpose2d_ref(xi, wi, bi, s, p, op))
    imag = (_conv_transpose2d_ref(xi, wr, br, s, p, op)
            + _conv_transpose2d_ref(xr, wi, bi, s, p, op))
    return (real + 1j * imag).astype(jnp.complex64)


# -----------------------------------------------------------------------------
# Main
# -----------------------------------------------------------------------------
if __name__ == "__main__":
    B, Cin, Cout, H, W = 2, 16, 32, 16, 16
    K, stride, padding, output_padding = 3, 2, 1, 1

    key = jax.random.PRNGKey(0)
    k1, k2, k3, k4, k5, k6 = jax.random.split(key, 6)
    fan = Cin * K * K
    wr = jax.random.normal(k1, (Cin, Cout, K, K), jnp.float32) / math.sqrt(fan)
    wi = jax.random.normal(k2, (Cin, Cout, K, K), jnp.float32) / math.sqrt(fan)
    br = 0.05 * jax.random.normal(k3, (Cout,), jnp.float32)
    bi = 0.05 * jax.random.normal(k4, (Cout,), jnp.float32)
    zr = jax.random.normal(k5, (B, Cin, H, W), jnp.float32)
    zi = jax.random.normal(k6, (B, Cin, H, W), jnp.float32)
    z = (zr + 1j * zi).astype(jnp.complex64)

    params_bf16 = prep_complex_conv_transpose2d(wr, wi, br, bi, use_bf16=True)
    params_f32 = prep_complex_conv_transpose2d(wr, wi, br, bi, use_bf16=False)

    fwd = jax.jit(functools.partial(
        complex_conv_transpose2d, kernel_size=K, stride=stride,
        padding=padding, output_padding=output_padding))

    out_bf16 = jax.block_until_ready(fwd(z, params_bf16))   # default (bf16 operands)
    out_f32 = jax.block_until_ready(fwd(z, params_f32))     # f32 operands path

    Ho = (H - 1) * stride - 2 * padding + K + output_padding
    assert out_bf16.shape == (B, Cout, Ho, Ho), out_bf16.shape
    assert out_bf16.dtype == jnp.complex64, out_bf16.dtype
    assert bool(jnp.all(jnp.isfinite(jnp.real(out_bf16)))
                & jnp.all(jnp.isfinite(jnp.imag(out_bf16))))

    ref = complex_conv_transpose2d_ref(z, wr, wi, br, bi,
                                       stride, padding, output_padding)
    err_f32 = float(jnp.max(jnp.abs(out_f32 - ref)))
    assert err_f32 < 5e-3, f"f32 path: max |pallas - ref| = {err_f32}"
    err_bf16 = float(jnp.max(jnp.abs(out_bf16 - ref)))
    assert err_bf16 < 5e-2, f"bf16 path: max |pallas - ref| = {err_bf16}"

    print("KERNEL_OK")
</pallas_src>

<mosaic_0001>
module attributes {stable_mosaic.version = 11 : i64} {
  func.func @_fused_convt_kernel(%arg0: i32, %arg1: memref<1x256x32xbf16, #tpu.memory_space<vmem>>, %arg2: memref<32x640xbf16, #tpu.memory_space<vmem>>, %arg3: memref<1x64xf32, #tpu.memory_space<vmem>>, %arg4: memref<4x17x17x64xf32, #tpu.memory_space<vmem>>) attributes {dimension_semantics = [#tpu.dimension_semantics<parallel>], iteration_bounds = array<i64: 2>, scalar_prefetch = 0 : i64, scratch_operands = 0 : i64, tpu.core_type = #tpu.core_type<tc>, window_params = [{transform_indices = @transform_0, window_bounds = array<i64: 1, 256, 32>}, {pipeline_mode = #tpu.pipeline_mode<synchronous>, transform_indices = @transform_1, window_bounds = array<i64: 32, 640>}, {pipeline_mode = #tpu.pipeline_mode<synchronous>, transform_indices = @transform_2, window_bounds = array<i64: 1, 64>}, {transform_indices = @transform_3, window_bounds = array<i64: 4, 17, 17, 64>}]} {
    %c0 = arith.constant 0 : index
    %c0_0 = arith.constant 0 : index
    %c0_1 = arith.constant 0 : index
    %0 = vector.load %arg1[%c0, %c0_0, %c0_1] : memref<1x256x32xbf16, #tpu.memory_space<vmem>>, vector<1x256x32xbf16>
    %1 = vector.shape_cast %0 : vector<1x256x32xbf16> to vector<256x32xbf16>
    %c0_2 = arith.constant 0 : index
    %c0_3 = arith.constant 0 : index
    %2 = vector.load %arg2[%c0_2, %c0_3] : memref<32x640xbf16, #tpu.memory_space<vmem>>, vector<32x640xbf16>
    %cst = arith.constant dense<0.000000e+00> : vector<256x640xf32>
    %3 = tpu.matmul %1, %2, %cst {dimension_numbers = #tpu.dot_dimension_numbers<[1], [0], [0], [1], [0, 0, 1, 1], [], []>} : vector<256x32xbf16>, vector<32x640xbf16>, vector<256x640xf32> -> vector<256x640xf32>
    %4 = vector.extract_strided_slice %3 {offsets = [0, 0], sizes = [256, 576], strides = [1, 1]} : vector<256x640xf32> to vector<256x576xf32>
    %5 = vector.shape_cast %4 : vector<256x576xf32> to vector<16x16x576xf32>
    %c0_4 = arith.constant 0 : index
    %c0_5 = arith.constant 0 : index
    %6 = vector.load %arg3[%c0_4, %c0_5] : memref<1x64xf32, #tpu.memory_space<vmem>>, vector<1x64xf32>
    %7 = vector.shape_cast %6 : vector<1x64xf32> to vector<1x1x1x64xf32>
    %8 = vector.broadcast %7 : vector<1x1x1x64xf32> to vector<4x17x17x64xf32>
    %c0_6 = arith.constant 0 : index
    %c0_7 = arith.constant 0 : index
    %c0_8 = arith.constant 0 : index
    %c0_9 = arith.constant 0 : index
    %9 = vector.load %arg4[%c0_6, %c0_7, %c0_8, %c0_9] : memref<4x17x17x64xf32, #tpu.memory_space<vmem>>, vector<4x17x17x64xf32>
    tpu.vector_store %arg4[%c0_6, %c0_7, %c0_8, %c0_9], %8 {strides = array<i32>} : memref<4x17x17x64xf32, #tpu.memory_space<vmem>>, vector<4x17x17x64xf32>,
    %c0_10 = arith.constant 0 : index
    %c0_11 = arith.constant 0 : index
    %c0_12 = arith.constant 0 : index
    %c0_13 = arith.constant 0 : index
    %10 = vector.load %arg4[%c0_10, %c0_11, %c0_12, %c0_13] : memref<4x17x17x64xf32, #tpu.memory_space<vmem>>, vector<1x16x16x64xf32>
    %11 = vector.shape_cast %10 : vector<1x16x16x64xf32> to vector<16x16x64xf32>
    %12 = vector.extract_strided_slice %5 {offsets = [0, 0, 0], sizes = [16, 16, 64], strides = [1, 1, 1]} : vector<16x16x576xf32> to vector<16x16x64xf32>
    %13 = arith.addf %11, %12 : vector<16x16x64xf32>
    %c0_14 = arith.constant 0 : index
    %c0_15 = arith.constant 0 : index
    %c0_16 = arith.constant 0 : index
    %c0_17 = arith.constant 0 : index
    %14 = vector.load %arg4[%c0_14, %c0_15, %c0_16, %c0_17] : memref<4x17x17x64xf32, #tpu.memory_space<vmem>>, vector<1x16x16x64xf32>
    %15 = vector.shape_cast %14 : vector<1x16x16x64xf32> to vector<16x16x64xf32>
    %16 = vector.shape_cast %13 : vector<16x16x64xf32> to vector<1x16x16x64xf32>
    tpu.vector_store %arg4[%c0_14, %c0_15, %c0_16, %c0_17], %16 {strides = array<i32>} : memref<4x17x17x64xf32, #tpu.memory_space<vmem>>, vector<1x16x16x64xf32>,
    %c1 = arith.constant 1 : index
    %c0_18 = arith.constant 0 : index
    %c0_19 = arith.constant 0 : index
    %c0_20 = arith.constant 0 : index
    %17 = vector.load %arg4[%c1, %c0_18, %c0_19, %c0_20] : memref<4x17x17x64xf32, #tpu.memory_space<vmem>>, vector<1x16x16x64xf32>
    %18 = vector.shape_cast %17 : vector<1x16x16x64xf32> to vector<16x16x64xf32>
    %19 = vector.extract_strided_slice %5 {offsets = [0, 0, 64], sizes = [16, 16, 64], strides = [1, 1, 1]} : vector<16x16x576xf32> to vector<16x16x64xf32>
    %20 = arith.addf %18, %19 : vector<16x16x64xf32>
    %c1_21 = arith.constant 1 : index
    %c0_22 = arith.constant 0 : index
    %c0_23 = arith.constant 0 : index
    %c0_24 = arith.constant 0 : index
    %21 = vector.load %arg4[%c1_21, %c0_22, %c0_23, %c0_24] : memref<4x17x17x64xf32, #tpu.memory_space<vmem>>, vector<1x16x16x64xf32>
    %22 = vector.shape_cast %21 : vector<1x16x16x64xf32> to vector<16x16x64xf32>
    %23 = vector.shape_cast %20 : vector<16x16x64xf32> to vector<1x16x16x64xf32>
    tpu.vector_store %arg4[%c1_21, %c0_22, %c0_23, %c0_24], %23 {strides = array<i32>} : memref<4x17x17x64xf32, #tpu.memory_space<vmem>>, vector<1x16x16x64xf32>,
    %c0_25 = arith.constant 0 : index
    %c0_26 = arith.constant 0 : index
    %c1_27 = arith.constant 1 : index
    %c0_28 = arith.constant 0 : index
    %24 = vector.load %arg4[%c0_25, %c0_26, %c1_27, %c0_28] : memref<4x17x17x64xf32, #tpu.memory_space<vmem>>, vector<1x16x16x64xf32>
    %25 = vector.shape_cast %24 : vector<1x16x16x64xf32> to vector<16x16x64xf32>
    %26 = vector.extract_strided_slice %5 {offsets = [0, 0, 128], sizes = [16, 16, 64], strides = [1, 1, 1]} : vector<16x16x576xf32> to vector<16x16x64xf32>
    %27 = arith.addf %25, %26 : vector<16x16x64xf32>
    %c0_29 = arith.constant 0 : index
    %c0_30 = arith.constant 0 : index
    %c1_31 = arith.constant 1 : index
    %c0_32 = arith.constant 0 : index
    %28 = vector.load %arg4[%c0_29, %c0_30, %c1_31, %c0_32] : memref<4x17x17x64xf32, #tpu.memory_space<vmem>>, vector<1x16x16x64xf32>
    %29 = vector.shape_cast %28 : vector<1x16x16x64xf32> to vector<16x16x64xf32>
    %30 = vector.shape_cast %27 : vector<16x16x64xf32> to vector<1x16x16x64xf32>
    tpu.vector_store %arg4[%c0_29, %c0_30, %c1_31, %c0_32], %30 {strides = array<i32>} : memref<4x17x17x64xf32, #tpu.memory_space<vmem>>, vector<1x16x16x64xf32>,
    %c2 = arith.constant 2 : index
    %c0_33 = arith.constant 0 : index
    %c0_34 = arith.constant 0 : index
    %c0_35 = arith.constant 0 : index
    %31 = vector.load %arg4[%c2, %c0_33, %c0_34, %c0_35] : memref<4x17x17x64xf32, #tpu.memory_space<vmem>>, vector<1x16x16x64xf32>
    %32 = vector.shape_cast %31 : vector<1x16x16x64xf32> to vector<16x16x64xf32>
    %33 = vector.extract_strided_slice %5 {offsets = [0, 0, 192], sizes = [16, 16, 64], strides = [1, 1, 1]} : vector<16x16x576xf32> to vector<16x16x64xf32>
    %34 = arith.addf %32, %33 : vector<16x16x64xf32>
    %c2_36 = arith.constant 2 : index
    %c0_37 = arith.constant 0 : index
    %c0_38 = arith.constant 0 : index
    %c0_39 = arith.constant 0 : index
    %35 = vector.load %arg4[%c2_36, %c0_37, %c0_38, %c0_39] : memref<4x17x17x64xf32, #tpu.memory_space<vmem>>, vector<1x16x16x64xf32>
    %36 = vector.shape_cast %35 : vector<1x16x16x64xf32> to vector<16x16x64xf32>
    %37 = vector.shape_cast %34 : vector<16x16x64xf32> to vector<1x16x16x64xf32>
    tpu.vector_store %arg4[%c2_36, %c0_37, %c0_38, %c0_39], %37 {strides = array<i32>} : memref<4x17x17x64xf32, #tpu.memory_space<vmem>>, vector<1x16x16x64xf32>,
    %c3 = arith.constant 3 : index
    %c0_40 = arith.constant 0 : index
    %c0_41 = arith.constant 0 : index
    %c0_42 = arith.constant 0 : index
    %38 = vector.load %arg4[%c3, %c0_40, %c0_41, %c0_42] : memref<4x17x17x64xf32, #tpu.memory_space<vmem>>, vector<1x16x16x64xf32>
    %39 = vector.shape_cast %38 : vector<1x16x16x64xf32> to vector<16x16x64xf32>
    %40 = vector.extract_strided_slice %5 {offsets = [0, 0, 256], sizes = [16, 16, 64], strides = [1, 1, 1]} : vector<16x16x576xf32> to vector<16x16x64xf32>
    %41 = arith.addf %39, %40 : vector<16x16x64xf32>
    %c3_43 = arith.constant 3 : index
    %c0_44 = arith.constant 0 : index
    %c0_45 = arith.constant 0 : index
    %c0_46 = arith.constant 0 : index
    %42 = vector.load %arg4[%c3_43, %c0_44, %c0_45, %c0_46] : memref<4x17x17x64xf32, #tpu.memory_space<vmem>>, vector<1x16x16x64xf32>
    %43 = vector.shape_cast %42 : vector<1x16x16x64xf32> to vector<16x16x64xf32>
    %44 = vector.shape_cast %41 : vector<16x16x64xf32> to vector<1x16x16x64xf32>
    tpu.vector_store %arg4[%c3_43, %c0_44, %c0_45, %c0_46], %44 {strides = array<i32>} : memref<4x17x17x64xf32, #tpu.memory_space<vmem>>, vector<1x16x16x64xf32>,
    %c2_47 = arith.constant 2 : index
    %c0_48 = arith.constant 0 : index
    %c1_49 = arith.constant 1 : index
    %c0_50 = arith.constant 0 : index
    %45 = vector.load %arg4[%c2_47, %c0_48, %c1_49, %c0_50] : memref<4x17x17x64xf32, #tpu.memory_space<vmem>>, vector<1x16x16x64xf32>
    %46 = vector.shape_cast %45 : vector<1x16x16x64xf32> to vector<16x16x64xf32>
    %47 = vector.extract_strided_slice %5 {offsets = [0, 0, 320], sizes = [16, 16, 64], strides = [1, 1, 1]} : vector<16x16x576xf32> to vector<16x16x64xf32>
    %48 = arith.addf %46, %47 : vector<16x16x64xf32>
    %c2_51 = arith.constant 2 : index
    %c0_52 = arith.constant 0 : index
    %c1_53 = arith.constant 1 : index
    %c0_54 = arith.constant 0 : index
    %49 = vector.load %arg4[%c2_51, %c0_52, %c1_53, %c0_54] : memref<4x17x17x64xf32, #tpu.memory_space<vmem>>, vector<1x16x16x64xf32>
    %50 = vector.shape_cast %49 : vector<1x16x16x64xf32> to vector<16x16x64xf32>
    %51 = vector.shape_cast %48 : vector<16x16x64xf32> to vector<1x16x16x64xf32>
    tpu.vector_store %arg4[%c2_51, %c0_52, %c1_53, %c0_54], %51 {strides = array<i32>} : memref<4x17x17x64xf32, #tpu.memory_space<vmem>>, vector<1x16x16x64xf32>,
    %c0_55 = arith.constant 0 : index
    %c1_56 = arith.constant 1 : index
    %c0_57 = arith.constant 0 : index
    %c0_58 = arith.constant 0 : index
    %52 = vector.load %arg4[%c0_55, %c1_56, %c0_57, %c0_58] : memref<4x17x17x64xf32, #tpu.memory_space<vmem>>, vector<1x16x16x64xf32>
    %53 = vector.shape_cast %52 : vector<1x16x16x64xf32> to vector<16x16x64xf32>
    %54 = vector.extract_strided_slice %5 {offsets = [0, 0, 384], sizes = [16, 16, 64], strides = [1, 1, 1]} : vector<16x16x576xf32> to vector<16x16x64xf32>
    %55 = arith.addf %53, %54 : vector<16x16x64xf32>
    %c0_59 = arith.constant 0 : index
    %c1_60 = arith.constant 1 : index
    %c0_61 = arith.constant 0 : index
    %c0_62 = arith.constant 0 : index
    %56 = vector.load %arg4[%c0_59, %c1_60, %c0_61, %c0_62] : memref<4x17x17x64xf32, #tpu.memory_space<vmem>>, vector<1x16x16x64xf32>
    %57 = vector.shape_cast %56 : vector<1x16x16x64xf32> to vector<16x16x64xf32>
    %58 = vector.shape_cast %55 : vector<16x16x64xf32> to vector<1x16x16x64xf32>
    tpu.vector_store %arg4[%c0_59, %c1_60, %c0_61, %c0_62], %58 {strides = array<i32>} : memref<4x17x17x64xf32, #tpu.memory_space<vmem>>, vector<1x16x16x64xf32>,
    %c1_63 = arith.constant 1 : index
    %c1_64 = arith.constant 1 : index
    %c0_65 = arith.constant 0 : index
    %c0_66 = arith.constant 0 : index
    %59 = vector.load %arg4[%c1_63, %c1_64, %c0_65, %c0_66] : memref<4x17x17x64xf32, #tpu.memory_space<vmem>>, vector<1x16x16x64xf32>
    %60 = vector.shape_cast %59 : vector<1x16x16x64xf32> to vector<16x16x64xf32>
    %61 = vector.extract_strided_slice %5 {offsets = [0, 0, 448], sizes = [16, 16, 64], strides = [1, 1, 1]} : vector<16x16x576xf32> to vector<16x16x64xf32>
    %62 = arith.addf %60, %61 : vector<16x16x64xf32>
    %c1_67 = arith.constant 1 : index
    %c1_68 = arith.constant 1 : index
    %c0_69 = arith.constant 0 : index
    %c0_70 = arith.constant 0 : index
    %63 = vector.load %arg4[%c1_67, %c1_68, %c0_69, %c0_70] : memref<4x17x17x64xf32, #tpu.memory_space<vmem>>, vector<1x16x16x64xf32>
    %64 = vector.shape_cast %63 : vector<1x16x16x64xf32> to vector<16x16x64xf32>
    %65 = vector.shape_cast %62 : vector<16x16x64xf32> to vector<1x16x16x64xf32>
    tpu.vector_store %arg4[%c1_67, %c1_68, %c0_69, %c0_70], %65 {strides = array<i32>} : memref<4x17x17x64xf32, #tpu.memory_space<vmem>>, vector<1x16x16x64xf32>,
    %c0_71 = arith.constant 0 : index
    %c1_72 = arith.constant 1 : index
    %c1_73 = arith.constant 1 : index
    %c0_74 = arith.constant 0 : index
    %66 = vector.load %arg4[%c0_71, %c1_72, %c1_73, %c0_74] : memref<4x17x17x64xf32, #tpu.memory_space<vmem>>, vector<1x16x16x64xf32>
    %67 = vector.shape_cast %66 : vector<1x16x16x64xf32> to vector<16x16x64xf32>
    %68 = vector.extract_strided_slice %5 {offsets = [0, 0, 512], sizes = [16, 16, 64], strides = [1, 1, 1]} : vector<16x16x576xf32> to vector<16x16x64xf32>
    %69 = arith.addf %67, %68 : vector<16x16x64xf32>
    %c0_75 = arith.constant 0 : index
    %c1_76 = arith.constant 1 : index
    %c1_77 = arith.constant 1 : index
    %c0_78 = arith.constant 0 : index
    %70 = vector.load %arg4[%c0_75, %c1_76, %c1_77, %c0_78] : memref<4x17x17x64xf32, #tpu.memory_space<vmem>>, vector<1x16x16x64xf32>
    %71 = vector.shape_cast %70 : vector<1x16x16x64xf32> to vector<16x16x64xf32>
    %72 = vector.shape_cast %69 : vector<16x16x64xf32> to vector<1x16x16x64xf32>
    tpu.vector_store %arg4[%c0_75, %c1_76, %c1_77, %c0_78], %72 {strides = array<i32>} : memref<4x17x17x64xf32, #tpu.memory_space<vmem>>, vector<1x16x16x64xf32>,
    return
  }
  func.func @transform_0(%arg0: i32) -> (i32, i32, i32) {
    %c0_i32 = arith.constant 0 : i32
    %c0_i32_0 = arith.constant 0 : i32
    %c0_i32_1 = arith.constant 0 : i32
    return %arg0, %c0_i32, %c0_i32_0 : i32, i32, i32
  }
  func.func @transform_1(%arg0: i32) -> (i32, i32) {
    %c0_i32 = arith.constant 0 : i32
    %c0_i32_0 = arith.constant 0 : i32
    %c0_i32_1 = arith.constant 0 : i32
    return %c0_i32, %c0_i32_0 : i32, i32
  }
  func.func @transform_2(%arg0: i32) -> (i32, i32) {
    %c0_i32 = arith.constant 0 : i32
    %c0_i32_0 = arith.constant 0 : i32
    %c0_i32_1 = arith.constant 0 : i32
    return %c0_i32, %c0_i32_0 : i32, i32
  }
  func.func @transform_3(%arg0: i32) -> (i32, i32, i32, i32) {
    %c0_i32 = arith.constant 0 : i32
    %c0_i32_0 = arith.constant 0 : i32
    %c0_i32_1 = arith.constant 0 : i32
    %c0_i32_2 = arith.constant 0 : i32
    return %arg0, %c0_i32, %c0_i32_0, %c0_i32_1 : i32, i32, i32, i32
  }
}

</mosaic_0001>

<bundles_post_ra>
// kernel: custom-call
= control target key start
LH: loop header
LB: loop body
LE: loop exit
PB: predicated region body
PF: predicated region fallthrough
CT: control target
= control target key end

     0   :  { %2 = vsyncpa [#allocation0], 0  ;;  %s61_s0 = inlined_call_operand.hbm [shape: c64[2,16,16,16], index: 0, kind: input, shape index: {}]   ;;  %s62_s1 = inlined_call_operand.vmem [shape: f32[2,16,16,16], index: 1, kind: output, shape index: {}]  }
   0x1   :  { %s3_s8 = sshll.u32 %s62_s1, 4  ;;  %s9_s11 = scalar_lea.hbm %s61_s0, 8192  ;;  %s4_s8 = int_to_ptr.vmem [resolvable:$true] %s3_s8 }
   0x2   :  { %p10_p0 = scmp.ne.s32.totalorder %s61_s0, %s9_s11  ;;  %s11_s16 = scalar_lea.hbm %s61_s0, 16384 }
   0x3   :  { %p12_p1 = scmp.lt.u32.totalorder %s11_s16, %s9_s11  ;;  %p13_p2 = scmp.lt.u32.totalorder %s9_s11, %s61_s0 }
   0x5   :  { %p14_p3 = por %p13_p2, %p12_p1 }
   0x7   :  { %p15_p4 = pnand %p14_p3, %p10_p0 }
   0x9   :  { %18 = shalt.err (!%p15_p4)  }
   0xa   :  { %s19_s1 = scalar_lea.vmem %s4_s8, 8192  ;;  %p24_p6 = scmp.lt.s32.totalorder %s4_s8, %s4_s8 }
   0xb   :  { %p20_p5 = scmp.ne.s32.totalorder %s4_s8, %s19_s1  ;;  %p25_p7 = scmp.lt.s32.totalorder %s19_s1, %s19_s1 }
   0xd   :  { %p26_p8 = por %p25_p7, %p24_p6 }
   0xf   :  { %p27_p9 = pnand %p26_p8, %p20_p5 }
  0x11   :  { %30 = shalt.err (!%p27_p9)  }
  0x12   :  { %6 = dma.hbm_to_vmem [thread:$0]  %s61_s0, 8192, %s4_s8, [#allocation0] }
  0x13   :  { %31 = dma.done.wait [#allocation0], 8192  }
  0x14   :  { %32 = vsyncadd [#allocation0], 4294959104 }
  0x15   :  { %8 = vsyncpa [#allocation0], 1 }

// kernel: custom-call.1
= control target key start
LH: loop header
LB: loop body
LE: loop exit
PB: predicated region body
PF: predicated region fallthrough
CT: control target
= control target key end

     0   :  { %s59_s0 = inlined_call_operand.hbm [shape: c64[2,16,16,16], index: 0, kind: input, shape index: {}]   ;;  %s60_s1 = inlined_call_operand.vmem [shape: f32[2,16,16,16], index: 1, kind: output, shape index: {}]  }
   0x1   :  { %s2_s8 = scalar_lea.hbm %s59_s0, 8192 }
   0x2   :  { %3 = vsyncpa [#allocation0], 0  ;;  %s4_s11 = sshll.u32 %s60_s1, 4  ;;  %s34_s14 = scalar_lea.hbm %s59_s0, 16384  ;;  %s5_s11 = int_to_ptr.vmem [resolvable:$true] %s4_s11 }
   0x3   :  { %p11_p0 = scmp.ne.s32.totalorder %s2_s8, %s34_s14  ;;  %p13_p1 = scmp.lt.u32.totalorder %s2_s8, %s59_s0 }
   0x4   :  { %p14_p2 = scmp.lt.u32.totalorder %s34_s14, %s34_s14  ;;  %p16_p4 = scmp.lt.u32.totalorder %s34_s14, %s2_s8 }
   0x6   :  { %p15_p3 = por %p14_p2, %p13_p1 }
   0x8   :  { %p17_p5 = por %p16_p4, %p15_p3 }
   0xa   :  { %p18_p6 = pnand %p17_p5, %p11_p0 }
   0xc   :  { %21 = shalt.err (!%p18_p6)  }
   0xd   :  { %s22_s17 = scalar_lea.vmem %s5_s11, 8192  ;;  %p27_p8 = scmp.lt.s32.totalorder %s5_s11, %s5_s11 }
   0xe   :  { %p23_p7 = scmp.ne.s32.totalorder %s5_s11, %s22_s17  ;;  %p28_p9 = scmp.lt.s32.totalorder %s22_s17, %s22_s17 }
  0x10   :  { %p29_p10 = por %p28_p9, %p27_p8 }
  0x12   :  { %p30_p11 = pnand %p29_p10, %p23_p7 }
  0x14   :  { %33 = shalt.err (!%p30_p11)  }
  0x15   :  { %7 = dma.hbm_to_vmem [thread:$0]  %s2_s8, 8192, %s5_s11, [#allocation0] }
  0x16   :  { %35 = dma.done.wait [#allocation0], 8192  }
  0x17   :  { %36 = vsyncadd [#allocation0], 4294959104 }
  0x18   :  { %9 = vsyncpa [#allocation0], 1 }

// kernel: custom-call.2
= control target key start
LH: loop header
LB: loop body
LE: loop exit
PB: predicated region body
PF: predicated region fallthrough
CT: control target
= control target key end

     0   :  { %s6412_s0 = inlined_call_operand.vmem [shape: f32[2,32,32,32], index: 0, kind: input, shape index: {}]   ;;  %s6413_s2 = inlined_call_operand.vmem [shape: c64[2,32,32,32], index: 2, kind: output, shape index: {}]   ;;  %s6414_s1 = inlined_call_operand.vmem [shape: f32[2,32,32,32], index: 1, kind: input, shape index: {}]  }
   0x1   :  { %v5_v0 = vld [vmem:[%s6412_s0] sm:$0xff]  ;;  %v2304_v1 = vld [vmem:[%s6412_s0 + $0x8] sm:$0xff]  ;;  %v2306_v2 = vld [vmem:[%s6412_s0 + $0x10] sm:$0xff] }
   0x2   :  { %6 = vst [vmem:[%s6413_s2] sm:$0xff] %v5_v0  ;;  %2305 = vst [vmem:[%s6413_s2 + $0x8] sm:$0xff] %v2304_v1  ;;  %v2308_v3 = vld [vmem:[%s6412_s0 + $0x18] sm:$0xff]  ;;  %v2310_v4 = vld [vmem:[%s6412_s0 + $0x20] sm:$0xff] }
   0x3   :  { %2307 = vst [vmem:[%s6413_s2 + $0x10] sm:$0xff] %v2306_v2  ;;  %v2312_v5 = vld [vmem:[%s6412_s0 + $0x28] sm:$0xff]  ;;  %2309 = vst [vmem:[%s6413_s2 + $0x18] sm:$0xff] %v2308_v3  ;;  %v2314_v6 = vld [vmem:[%s6412_s0 + $0x30] sm:$0xff] }
   0x4   :  { %2311 = vst [vmem:[%s6413_s2 + $0x20] sm:$0xff] %v2310_v4  ;;  %2313 = vst [vmem:[%s6413_s2 + $0x28] sm:$0xff] %v2312_v5  ;;  %v2316_v7 = vld [vmem:[%s6412_s0 + $0x38] sm:$0xff]  ;;  %v2318_v8 = vld [vmem:[%s6412_s0 + $0x40] sm:$0xff] }
   0x5   :  { %2315 = vst [vmem:[%s6413_s2 + $0x30] sm:$0xff] %v2314_v6  ;;  %2317 = vst [vmem:[%s6413_s2 + $0x38] sm:$0xff] %v2316_v7  ;;  %v2320_v9 = vld [vmem:[%s6412_s0 + $0x48] sm:$0xff]  ;;  %v2322_v10 = vld [vmem:[%s6412_s0 + $0x50] sm:$0xff] }
   0x6   :  { %2319 = vst [vmem:[%s6413_s2 + $0x40] sm:$0xff] %v2318_v8  ;;  %v2324_v11 = vld [vmem:[%s6412_s0 + $0x58] sm:$0xff]  ;;  %2321 = vst [vmem:[%s6413_s2 + $0x48] sm:$0xff] %v2320_v9  ;;  %v2326_v12 = vld [vmem:[%s6412_s0 + $0x60] sm:$0xff] }
   0x7   :  { %2323 = vst [vmem:[%s6413_s2 + $0x50] sm:$0xff] %v2322_v10  ;;  %2325 = vst [vmem:[%s6413_s2 + $0x58] sm:$0xff] %v2324_v11  ;;  %v2328_v13 = vld [vmem:[%s6412_s0 + $0x68] sm:$0xff]  ;;  %v2330_v14 = vld [vmem:[%s6412_s0 + $0x70] sm:$0xff] }
   0x8   :  { %2327 = vst [vmem:[%s6413_s2 + $0x60] sm:$0xff] %v2326_v12  ;;  %2329 = vst [vmem:[%s6413_s2 + $0x68] sm:$0xff] %v2328_v13  ;;  %v2332_v15 = vld [vmem:[%s6412_s0 + $0x78] sm:$0xff]  ;;  %v2334_v16 = vld [vmem:[%s6412_s0 + $0x80] sm:$0xff] }
   0x9   :  { %2331 = vst [vmem:[%s6413_s2 + $0x70] sm:$0xff] %v2330_v14  ;;  %v2336_v17 = vld [vmem:[%s6412_s0 + $0x88] sm:$0xff]  ;;  %2333 = vst [vmem:[%s6413_s2 + $0x78] sm:$0xff] %v2332_v15  ;;  %v2338_v18 = vld [vmem:[%s6412_s0 + $0x90] sm:$0xff] }
   0xa   :  { %2335 = vst [vmem:[%s6413_s2 + $0x80] sm:$0xff] %v2334_v16  ;;  %2337 = vst [vmem:[%s6413_s2 + $0x88] sm:$0xff] %v2336_v17  ;;  %v2340_v19 = vld [vmem:[%s6412_s0 + $0x98] sm:$0xff]  ;;  %v2342_v20 = vld [vmem:[%s6412_s0 + $0xa0] sm:$0xff] }
   0xb   :  { %2339 = vst [vmem:[%s6413_s2 + $0x90] sm:$0xff] %v2338_v18  ;;  %2341 = vst [vmem:[%s6413_s2 + $0x98] sm:$0xff] %v2340_v19  ;;  %v2344_v21 = vld [vmem:[%s6412_s0 + $0xa8] sm:$0xff]  ;;  %v2346_v22 = vld [vmem:[%s6412_s0 + $0xb0] sm:$0xff] }
   0xc   :  { %2343 = vst [vmem:[%s6413_s2 + $0xa0] sm:$0xff] %v2342_v20  ;;  %v2348_v23 = vld [vmem:[%s6412_s0 + $0xb8] sm:$0xff]  ;;  %2345 = vst [vmem:[%s6413_s2 + $0xa8] sm:$0xff] %v2344_v21  ;;  %v2350_v24 = vld [vmem:[%s6412_s0 + $0xc0] sm:$0xff] }
   0xd   :  { %2347 = vst [vmem:[%s6413_s2 + $0xb0] sm:$0xff] %v2346_v22  ;;  %2349 = vst [vmem:[%s6413_s2 + $0xb8] sm:$0xff] %v2348_v23  ;;  %v2352_v25 = vld [vmem:[%s6412_s0 + $0xc8] sm:$0xff]  ;;  %v2354_v26 = vld [vmem:[%s6412_s0 + $0xd0] sm:$0xff] }
   0xe   :  { %2351 = vst [vmem:[%s6413_s2 + $0xc0] sm:$0xff] %v2350_v24  ;;  %2353 = vst [vmem:[%s6413_s2 + $0xc8] sm:$0xff] %v2352_v25  ;;  %v2356_v27 = vld [vmem:[%s6412_s0 + $0xd8] sm:$0xff]  ;;  %v2358_v28 = vld [vmem:[%s6412_s0 + $0xe0] sm:$0xff] }
   0xf   :  { %2355 = vst [vmem:[%s6413_s2 + $0xd0] sm:$0xff] %v2354_v26  ;;  %v2360_v29 = vld [vmem:[%s6412_s0 + $0xe8] sm:$0xff]  ;;  %2357 = vst [vmem:[%s6413_s2 + $0xd8] sm:$0xff] %v2356_v27  ;;  %v2362_v30 = vld [vmem:[%s6412_s0 + $0xf0] sm:$0xff] }
  0x10   :  { %2359 = vst [vmem:[%s6413_s2 + $0xe0] sm:$0xff] %v2358_v28  ;;  %2361 = vst [vmem:[%s6413_s2 + $0xe8] sm:$0xff] %v2360_v29  ;;  %v2364_v31 = vld [vmem:[%s6412_s0 + $0xf8] sm:$0xff]  ;;  %v2366_v32 = vld [vmem:[%s6412_s0 + $0x100] sm:$0xff] }
  0x11   :  { %2363 = vst [vmem:[%s6413_s2 + $0xf0] sm:$0xff] %v2362_v30  ;;  %2365 = vst [vmem:[%s6413_s2 + $0xf8] sm:$0xff] %v2364_v31  ;;  %v2368_v33 = vld [vmem:[%s6412_s0 + $0x108] sm:$0xff]  ;;  %v2370_v34 = vld [vmem:[%s6412_s0 + $0x110] sm:$0xff] }
  0x12   :  { %2367 = vst [vmem:[%s6413_s2 + $0x100] sm:$0xff] %v2366_v32  ;;  %v2372_v35 = vld [vmem:[%s6412_s0 + $0x118] sm:$0xff]  ;;  %2369 = vst [vmem:[%s6413_s2 + $0x108] sm:$0xff] %v2368_v33  ;;  %v2374_v36 = vld [vmem:[%s6412_s0 + $0x120] sm:$0xff] }
  0x13   :  { %2371 = vst [vmem:[%s6413_s2 + $0x110] sm:$0xff] %v2370_v34  ;;  %2373 = vst [vmem:[%s6413_s2 + $0x118] sm:$0xff] %v2372_v35  ;;  %v2376_v37 = vld [vmem:[%s6412_s0 + $0x128] sm:$0xff]  ;;  %v2378_v38 = vld [vmem:[%s6412_s0 + $0x130] sm:$0xff] }
  0x14   :  { %2375 = vst [vmem:[%s6413_s2 + $0x120] sm:$0xff] %v2374_v36  ;;  %2377 = vst [vmem:[%s6413_s2 + $0x128] sm:$0xff] %v2376_v37  ;;  %v2380_v39 = vld [vmem:[%s6412_s0 + $0x138] sm:$0xff]  ;;  %v2382_v40 = vld [vmem:[%s6412_s0 + $0x140] sm:$0xff] }
  0x15   :  { %2379 = vst [vmem:[%s6413_s2 + $0x130] sm:$0xff] %v2378_v38  ;;  %v2384_v41 = vld [vmem:[%s6412_s0 + $0x148] sm:$0xff]  ;;  %2381 = vst [vmem:[%s6413_s2 + $0x138] sm:$0xff] %v2380_v39  ;;  %v2386_v42 = vld [vmem:[%s6412_s0 + $0x150] sm:$0xff] }
  0x16   :  { %2383 = vst [vmem:[%s6413_s2 + $0x140] sm:$0xff] %v2382_v40  ;;  %2385 = vst [vmem:[%s6413_s2 + $0x148] sm:$0xff] %v2384_v41  ;;  %v2388_v43 = vld [vmem:[%s6412_s0 + $0x158] sm:$0xff]  ;;  %v2390_v44 = vld [vmem:[%s6412_s0 + $0x160] sm:$0xff] }
  0x17   :  { %2387 = vst [vmem:[%s6413_s2 + $0x150] sm:$0xff] %v2386_v42  ;;  %2389 = vst [vmem:[%s6413_s2 + $0x158] sm:$0xff] %v2388_v43  ;;  %v2392_v45 = vld [vmem:[%s6412_s0 + $0x168] sm:$0xff]  ;;  %v2394_v46 = vld [vmem:[%s6412_s0 + $0x170] sm:$0xff] }
  0x18   :  { %2391 = vst [vmem:[%s6413_s2 + $0x160] sm:$0xff] %v2390_v44  ;;  %v2396_v47 = vld [vmem:[%s6412_s0 + $0x178] sm:$0xff]  ;;  %2393 = vst [vmem:[%s6413_s2 + $0x168] sm:$0xff] %v2392_v45  ;;  %v2398_v48 = vld [vmem:[%s6412_s0 + $0x180] sm:$0xff] }
  0x19   :  { %2395 = vst [vmem:[%s6413_s2 + $0x170] sm:$0xff] %v2394_v46  ;;  %2397 = vst [vmem:[%s6413_s2 + $0x178] sm:$0xff] %v2396_v47  ;;  %v2400_v49 = vld [vmem:[%s6412_s0 + $0x188] sm:$0xff]  ;;  %v2402_v50 = vld [vmem:[%s6412_s0 + $0x190] sm:$0xff] }
  0x1a   :  { %2399 = vst [vmem:[%s6413_s2 + $0x180] sm:$0xff] %v2398_v48  ;;  %2401 = vst [vmem:[%s6413_s2 + $0x188] sm:$0xff] %v2400_v49  ;;  %v2404_v51 = vld [vmem:[%s6412_s0 + $0x198] sm:$0xff]  ;;  %v2406_v52 = vld [vmem:[%s6412_s0 + $0x1a0] sm:$0xff] }
  0x1b   :  { %2403 = vst [vmem:[%s6413_s2 + $0x190] sm:$0xff] %v2402_v50  ;;  %v2408_v53 = vld [vmem:[%s6412_s0 + $0x1a8] sm:$0xff]  ;;  %2405 = vst [vmem:[%s6413_s2 + $0x198] sm:$0xff] %v2404_v51  ;;  %v2410_v54 = vld [vmem:[%s6412_s0 + $0x1b0] sm:$0xff] }
  0x1c   :  { %2407 = vst [vmem:[%s6413_s2 + $0x1a0] sm:$0xff] %v2406_v52  ;;  %2409 = vst [vmem:[%s6413_s2 + $0x1a8] sm:$0xff] %v2408_v53  ;;  %v2412_v55 = vld [vmem:[%s6412_s0 + $0x1b8] sm:$0xff]  ;;  %v2414_v56 = vld [vmem:[%s6412_s0 + $0x1c0] sm:$0xff] }
  0x1d   :  { %2411 = vst [vmem:[%s6413_s2 + $0x1b0] sm:$0xff] %v2410_v54  ;;  %2413 = vst [vmem:[%s6413_s2 + $0x1b8] sm:$0xff] %v2412_v55  ;;  %v2416_v57 = vld [vmem:[%s6412_s0 + $0x1c8] sm:$0xff]  ;;  %v2418_v58 = vld [vmem:[%s6412_s0 + $0x1d0] sm:$0xff] }
  0x1e   :  { %2415 = vst [vmem:[%s6413_s2 + $0x1c0] sm:$0xff] %v2414_v56  ;;  %v2420_v59 = vld [vmem:[%s6412_s0 + $0x1d8] sm:$0xff]  ;;  %2417 = vst [vmem:[%s6413_s2 + $0x1c8] sm:$0xff] %v2416_v57  ;;  %v2422_v60 = vld [vmem:[%s6412_s0 + $0x1e0] sm:$0xff] }
  0x1f   :  { %2419 = vst [vmem:[%s6413_s2 + $0x1d0] sm:$0xff] %v2418_v58  ;;  %2421 = vst [vmem:[%s6413_s2 + $0x1d8] sm:$0xff] %v2420_v59  ;;  %v2424_v61 = vld [vmem:[%s6412_s0 + $0x1e8] sm:$0xff]  ;;  %v2426_v62 = vld [vmem:[%s6412_s0 + $0x1f0] sm:$0xff] }
  0x20   :  { %2423 = vst [vmem:[%s6413_s2 + $0x1e0] sm:$0xff] %v2422_v60  ;;  %2425 = vst [vmem:[%s6413_s2 + $0x1e8] sm:$0xff] %v2424_v61  ;;  %v2428_v63 = vld [vmem:[%s6412_s0 + $0x1f8] sm:$0xff]  ;;  %v2430_v0 = vld [vmem:[%s6412_s0 + $0x200] sm:$0xff] }
  0x21   :  { %2427 = vst [vmem:[%s6413_s2 + $0x1f0] sm:$0xff] %v2426_v62  ;;  %v2432_v1 = vld [vmem:[%s6412_s0 + $0x208] sm:$0xff]  ;;  %2429 = vst [vmem:[%s6413_s2 + $0x1f8] sm:$0xff] %v2428_v63  ;;  %v2434_v2 = vld [vmem:[%s6412_s0 + $0x210] sm:$0xff] }
  0x22   :  { %2431 = vst [vmem:[%s6413_s2 + $0x200] sm:$0xff] %v2430_v0  ;;  %2433 = vst [vmem:[%s6413_s2 + $0x208] sm:$0xff] %v2432_v1  ;;  %v2436_v3 = vld [vmem:[%s6412_s0 + $0x218] sm:$0xff]  ;;  %v2438_v4 = vld [vmem:[%s6412_s0 + $0x220] sm:$0xff] }
  0x23   :  { %2435 = vst [vmem:[%s6413_s2 + $0x210] sm:$0xff] %v2434_v2  ;;  %2437 = vst [vmem:[%s6413_s2 + $0x218] sm:$0xff] %v2436_v3  ;;  %v2440_v5 = vld [vmem:[%s6412_s0 + $0x228] sm:$0xff]  ;;  %v2442_v6 = vld [vmem:[%s6412_s0 + $0x230] sm:$0xff] }
  0x24   :  { %2439 = vst [vmem:[%s6413_s2 + $0x220] sm:$0xff] %v2438_v4  ;;  %v2444_v7 = vld [vmem:[%s6412_s0 + $0x238] sm:$0xff]  ;;  %2441 = vst [vmem:[%s6413_s2 + $0x228] sm:$0xff] %v2440_v5  ;;  %v2446_v8 = vld [vmem:[%s6412_s0 + $0x240] sm:$0xff] }
  0x25   :  { %2443 = vst [vmem:[%s6413_s2 + $0x230] sm:$0xff] %v2442_v6  ;;  %2445 = vst [vmem:[%s6413_s2 + $0x238] sm:$0xff] %v2444_v7  ;;  %v2448_v9 = vld [vmem:[%s6412_s0 + $0x248] sm:$0xff]  ;;  %v2450_v10 = vld [vmem:[%s6412_s0 + $0x250] sm:$0xff] }
  0x26   :  { %2447 = vst [vmem:[%s6413_s2 + $0x240] sm:$0xff] %v2446_v8  ;;  %2449 = vst [vmem:[%s6413_s2 + $0x248] sm:$0xff] %v2448_v9  ;;  %v2452_v11 = vld [vmem:[%s6412_s0 + $0x258] sm:$0xff]  ;;  %v2454_v12 = vld [vmem:[%s6412_s0 + $0x260] sm:$0xff] }
  0x27   :  { %2451 = vst [vmem:[%s6413_s2 + $0x250] sm:$0xff] %v2450_v10  ;;  %v2456_v13 = vld [vmem:[%s6412_s0 + $0x268] sm:$0xff]  ;;  %2453 = vst [vmem:[%s6413_s2 + $0x258] sm:$0xff] %v2452_v11  ;;  %v2458_v14 = vld [vmem:[%s6412_s0 + $0x270] sm:$0xff] }
  0x28   :  { %2455 = vst [vmem:[%s6413_s2 + $0x260] sm:$0xff] %v2454_v12  ;;  %2457 = vst [vmem:[%s6413_s2 + $0x268] sm:$0xff] %v2456_v13  ;;  %v2460_v15 = vld [vmem:[%s6412_s0 + $0x278] sm:$0xff]  ;;  %v2462_v16 = vld [vmem:[%s6412_s0 + $0x280] sm:$0xff] }
  0x29   :  { %2459 = vst [vmem:[%s6413_s2 + $0x270] sm:$0xff] %v2458_v14  ;;  %2461 = vst [vmem:[%s6413_s2 + $0x278] sm:$0xff] %v2460_v15  ;;  %v2464_v17 = vld [vmem:[%s6412_s0 + $0x288] sm:$0xff]  ;;  %v2466_v18 = vld [vmem:[%s6412_s0 + $0x290] sm:$0xff] }
  0x2a   :  { %2463 = vst [vmem:[%s6413_s2 + $0x280] sm:$0xff] %v2462_v16  ;;  %v2468_v19 = vld [vmem:[%s6412_s0 + $0x298] sm:$0xff]  ;;  %2465 = vst [vmem:[%s6413_s2 + $0x288] sm:$0xff] %v2464_v17  ;;  %v2470_v20 = vld [vmem:[%s6412_s0 + $0x2a0] sm:$0xff] }
  0x2b   :  { %2467 = vst [vmem:[%s6413_s2 + $0x290] sm:$0xff] %v2466_v18  ;;  %2469 = vst [vmem:[%s6413_s2 + $0x298] sm:$0xff] %v2468_v19  ;;  %v2472_v21 = vld [vmem:[%s6412_s0 + $0x2a8] sm:$0xff]  ;;  %v2474_v22 = vld [vmem:[%s6412_s0 + $0x2b0] sm:$0xff] }
  0x2c   :  { %2471 = vst [vmem:[%s6413_s2 + $0x2a0] sm:$0xff] %v2470_v20  ;;  %2473 = vst [vmem:[%s6413_s2 + $0x2a8] sm:$0xff] %v2472_v21  ;;  %v2476_v23 = vld [vmem:[%s6412_s0 + $0x2b8] sm:$0xff]  ;;  %v2478_v24 = vld [vmem:[%s6412_s0 + $0x2c0] sm:$0xff] }
  0x2d   :  { %2475 = vst [vmem:[%s6413_s2 + $0x2b0] sm:$0xff] %v2474_v22  ;;  %v2480_v25 = vld [vmem:[%s6412_s0 + $0x2c8] sm:$0xff]  ;;  %2477 = vst [vmem:[%s6413_s2 + $0x2b8] sm:$0xff] %v2476_v23  ;;  %v2482_v26 = vld [vmem:[%s6412_s0 + $0x2d0] sm:$0xff] }
  0x2e   :  { %2479 = vst [vmem:[%s6413_s2 + $0x2c0] sm:$0xff] %v2478_v24  ;;  %2481 = vst [vmem:[%s6413_s2 + $0x2c8] sm:$0xff] %v2480_v25  ;;  %v2484_v27 = vld [vmem:[%s6412_s0 + $0x2d8] sm:$0xff]  ;;  %v2486_v28 = vld [vmem:[%s6412_s0 + $0x2e0] sm:$0xff] }
  0x2f   :  { %2483 = vst [vmem:[%s6413_s2 + $0x2d0] sm:$0xff] %v2482_v26  ;;  %2485 = vst [vmem:[%s6413_s2 + $0x2d8] sm:$0xff] %v2484_v27  ;;  %v2488_v29 = vld [vmem:[%s6412_s0 + $0x2e8] sm:$0xff]  ;;  %v2490_v30 = vld [vmem:[%s6412_s0 + $0x2f0] sm:$0xff] }
  0x30   :  { %2487 = vst [vmem:[%s6413_s2 + $0x2e0] sm:$0xff] %v2486_v28  ;;  %v2492_v31 = vld [vmem:[%s6412_s0 + $0x2f8] sm:$0xff]  ;;  %2489 = vst [vmem:[%s6413_s2 + $0x2e8] sm:$0xff] %v2488_v29  ;;  %v2494_v32 = vld [vmem:[%s6412_s0 + $0x300] sm:$0xff] }
  0x31   :  { %2491 = vst [vmem:[%s6413_s2 + $0x2f0] sm:$0xff] %v2490_v30  ;;  %2493 = vst [vmem:[%s6413_s2 + $0x2f8] sm:$0xff] %v2492_v31  ;;  %v2496_v33 = vld [vmem:[%s6412_s0 + $0x308] sm:$0xff]  ;;  %v2498_v34 = vld [vmem:[%s6412_s0 + $0x310] sm:$0xff] }
  0x32   :  { %2495 = vst [vmem:[%s6413_s2 + $0x300] sm:$0xff] %v2494_v32  ;;  %2497 = vst [vmem:[%s6413_s2 + $0x308] sm:$0xff] %v2496_v33  ;;  %v2500_v35 = vld [vmem:[%s6412_s0 + $0x318] sm:$0xff]  ;;  %v2502_v36 = vld [vmem:[%s6412_s0 + $0x320] sm:$0xff] }
  0x33   :  { %2499 = vst [vmem:[%s6413_s2 + $0x310] sm:$0xff] %v2498_v34  ;;  %v2504_v37 = vld [vmem:[%s6412_s0 + $0x328] sm:$0xff]  ;;  %2501 = vst [vmem:[%s6413_s2 + $0x318] sm:$0xff] %v2500_v35  ;;  %v2506_v38 = vld [vmem:[%s6412_s0 + $0x330] sm:$0xff] }
  0x34   :  { %2503 = vst [vmem:[%s6413_s2 + $0x320] sm:$0xff] %v2502_v36  ;;  %2505 = vst [vmem:[%s6413_s2 + $0x328] sm:$0xff] %v2504_v37  ;;  %v2508_v39 = vld [vmem:[%s6412_s0 + $0x338] sm:$0xff]  ;;  %v2510_v40 = vld [vmem:[%s6412_s0 + $0x340] sm:$0xff] }
  0x35   :  { %2507 = vst [vmem:[%s6413_s2 + $0x330] sm:$0xff] %v2506_v38  ;;  %2509 = vst [vmem:[%s6413_s2 + $0x338] sm:$0xff] %v2508_v39  ;;  %v2512_v41 = vld [vmem:[%s6412_s0 + $0x348] sm:$0xff]  ;;  %v2514_v42 = vld [vmem:[%s6412_s0 + $0x350] sm:$0xff] }
  0x36   :  { %2511 = vst [vmem:[%s6413_s2 + $0x340] sm:$0xff] %v2510_v40  ;;  %v2516_v43 = vld [vmem:[%s6412_s0 + $0x358] sm:$0xff]  ;;  %2513 = vst [vmem:[%s6413_s2 + $0x348] sm:$0xff] %v2512_v41  ;;  %v2518_v44 = vld [vmem:[%s6412_s0 + $0x360] sm:$0xff] }
  0x37   :  { %2515 = vst [vmem:[%s6413_s2 + $0x350] sm:$0xff] %v2514_v42  ;;  %2517 = vst [vmem:[%s6413_s2 + $0x358] sm:$0xff] %v2516_v43  ;;  %v2520_v45 = vld [vmem:[%s6412_s0 + $0x368] sm:$0xff]  ;;  %v2522_v46 = vld [vmem:[%s6412_s0 + $0x370] sm:$0xff] }
  0x38   :  { %2519 = vst [vmem:[%s6413_s2 + $0x360] sm:$0xff] %v2518_v44  ;;  %2521 = vst [vmem:[%s6413_s2 + $0x368] sm:$0xff] %v2520_v45  ;;  %v2524_v47 = vld [vmem:[%s6412_s0 + $0x378] sm:$0xff]  ;;  %v2526_v48 = vld [vmem:[%s6412_s0 + $0x380] sm:$0xff] }
  0x39   :  { %2523 = vst [vmem:[%s6413_s2 + $0x370] sm:$0xff] %v2522_v46  ;;  %v2528_v49 = vld [vmem:[%s6412_s0 + $0x388] sm:$0xff]  ;;  %2525 = vst [vmem:[%s6413_s2 + $0x378] sm:$0xff] %v2524_v47  ;;  %v2530_v50 = vld [vmem:[%s6412_s0 + $0x390] sm:$0xff] }
  0x3a   :  { %2527 = vst [vmem:[%s6413_s2 + $0x380] sm:$0xff] %v2526_v48  ;;  %2529 = vst [vmem:[%s6413_s2 + $0x388] sm:$0xff] %v2528_v49  ;;  %v2532_v51 = vld [vmem:[%s6412_s0 + $0x398] sm:$0xff]  ;;  %v2534_v52 = vld [vmem:[%s6412_s0 + $0x3a0] sm:$0xff] }
  0x3b   :  { %2531 = vst [vmem:[%s6413_s2 + $0x390] sm:$0xff] %v2530_v50  ;;  %2533 = vst [vmem:[%s6413_s2 + $0x398] sm:$0xff] %v2532_v51  ;;  %v2536_v53 = vld [vmem:[%s6412_s0 + $0x3a8] sm:$0xff]  ;;  %v2538_v54 = vld [vmem:[%s6412_s0 + $0x3b0] sm:$0xff] }
  0x3c   :  { %2535 = vst [vmem:[%s6413_s2 + $0x3a0] sm:$0xff] %v2534_v52  ;;  %v2540_v55 = vld [vmem:[%s6412_s0 + $0x3b8] sm:$0xff]  ;;  %2537 = vst [vmem:[%s6413_s2 + $0x3a8] sm:$0xff] %v2536_v53  ;;  %v2542_v56 = vld [vmem:[%s6412_s0 + $0x3c0] sm:$0xff] }
  0x3d   :  { %2539 = vst [vmem:[%s6413_s2 + $0x3b0] sm:$0xff] %v2538_v54  ;;  %2541 = vst [vmem:[%s6413_s2 + $0x3b8] sm:$0xff] %v2540_v55  ;;  %v2544_v57 = vld [vmem:[%s6412_s0 + $0x3c8] sm:$0xff]  ;;  %v2546_v58 = vld [vmem:[%s6412_s0 + $0x3d0] sm:$0xff] }
  0x3e   :  { %2543 = vst [vmem:[%s6413_s2 + $0x3c0] sm:$0xff] %v2542_v56  ;;  %2545 = vst [vmem:[%s6413_s2 + $0x3c8] sm:$0xff] %v2544_v57  ;;  %v2548_v59 = vld [vmem:[%s6412_s0 + $0x3d8] sm:$0xff]  ;;  %v2550_v60 = vld [vmem:[%s6412_s0 + $0x3e0] sm:$0xff] }
  0x3f   :  { %2547 = vst [vmem:[%s6413_s2 + $0x3d0] sm:$0xff] %v2546_v58  ;;  %v2552_v61 = vld [vmem:[%s6412_s0 + $0x3e8] sm:$0xff]  ;;  %2549 = vst [vmem:[%s6413_s2 + $0x3d8] sm:$0xff] %v2548_v59  ;;  %v2554_v62 = vld [vmem:[%s6412_s0 + $0x3f0] sm:$0xff] }
  0x40   :  { %2551 = vst [vmem:[%s6413_s2 + $0x3e0] sm:$0xff] %v2550_v60  ;;  %2553 = vst [vmem:[%s6413_s2 + $0x3e8] sm:$0xff] %v2552_v61  ;;  %v2556_v63 = vld [vmem:[%s6412_s0 + $0x3f8] sm:$0xff]  ;;  %v2558_v0 = vld [vmem:[%s6412_s0 + $0x400] sm:$0xff] }
  0x41   :  { %2555 = vst [vmem:[%s6413_s2 + $0x3f0] sm:$0xff] %v2554_v62  ;;  %2557 = vst [vmem:[%s6413_s2 + $0x3f8] sm:$0xff] %v2556_v63  ;;  %v2560_v1 = vld [vmem:[%s6412_s0 + $0x408] sm:$0xff]  ;;  %v2562_v2 = vld [vmem:[%s6412_s0 + $0x410] sm:$0xff] }
  0x42   :  { %2559 = vst [vmem:[%s6413_s2 + $0x400] sm:$0xff] %v2558_v0  ;;  %v2564_v3 = vld [vmem:[%s6412_s0 + $0x418] sm:$0xff]  ;;  %2561 = vst [vmem:[%s6413_s2 + $0x408] sm:$0xff] %v2560_v1  ;;  %v2566_v4 = vld [vmem:[%s6412_s0 + $0x420] sm:$0xff] }
  0x43   :  { %2563 = vst [vmem:[%s6413_s2 + $0x410] sm:$0xff] %v2562_v2  ;;  %2565 = vst [vmem:[%s6413_s2 + $0x418] sm:$0xff] %v2564_v3  ;;  %v2568_v5 = vld [vmem:[%s6412_s0 + $0x428] sm:$0xff]  ;;  %v2570_v6 = vld [vmem:[%s6412_s0 + $0x430] sm:$0xff] }
  0x44   :  { %2567 = vst [vmem:[%s6413_s2 + $0x420] sm:$0xff] %v2566_v4  ;;  %2569 = vst [vmem:[%s6413_s2 + $0x428] sm:$0xff] %v2568_v5  ;;  %v2572_v7 = vld [vmem:[%s6412_s0 + $0x438] sm:$0xff]  ;;  %v2574_v8 = vld [vmem:[%s6412_s0 + $0x440] sm:$0xff] }
  0x45   :  { %2571 = vst [vmem:[%s6413_s2 + $0x430] sm:$0xff] %v2570_v6  ;;  %v2576_v9 = vld [vmem:[%s6412_s0 + $0x448] sm:$0xff]  ;;  %2573 = vst [vmem:[%s6413_s2 + $0x438] sm:$0xff] %v2572_v7  ;;  %v2578_v10 = vld [vmem:[%s6412_s0 + $0x450] sm:$0xff] }
  0x46   :  { %2575 = vst [vmem:[%s6413_s2 + $0x440] sm:$0xff] %v2574_v8  ;;  %2577 = vst [vmem:[%s6413_s2 + $0x448] sm:$0xff] %v2576_v9  ;;  %v2580_v11 = vld [vmem:[%s6412_s0 + $0x458] sm:$0xff]  ;;  %v2582_v12 = vld [vmem:[%s6412_s0 + $0x460] sm:$0xff] }
  0x47   :  { %2579 = vst [vmem:[%s6413_s2 + $0x450] sm:$0xff] %v2578_v10  ;;  %2581 = vst [vmem:[%s6413_s2 + $0x458] sm:$0xff] %v2580_v11  ;;  %v2584_v13 = vld [vmem:[%s6412_s0 + $0x468] sm:$0xff]  ;;  %v2586_v14 = vld [vmem:[%s6412_s0 + $0x470] sm:$0xff] }
  0x48   :  { %2583 = vst [vmem:[%s6413_s2 + $0x460] sm:$0xff] %v2582_v12  ;;  %v2588_v15 = vld [vmem:[%s6412_s0 + $0x478] sm:$0xff]  ;;  %2585 = vst [vmem:[%s6413_s2 + $0x468] sm:$0xff] %v2584_v13  ;;  %v2590_v16 = vld [vmem:[%s6412_s0 + $0x480] sm:$0xff] }
  0x49   :  { %2587 = vst [vmem:[%s6413_s2 + $0x470] sm:$0xff] %v2586_v14  ;;  %2589 = vst [vmem:[%s6413_s2 + $0x478] sm:$0xff] %v2588_v15  ;;  %v2592_v17 = vld [vmem:[%s6412_s0 + $0x488] sm:$0xff]  ;;  %v2594_v18 = vld [vmem:[%s6412_s0 + $0x490] sm:$0xff] }
  0x4a   :  { %2591 = vst [vmem:[%s6413_s2 + $0x480] sm:$0xff] %v2590_v16  ;;  %2593 = vst [vmem:[%s6413_s2 + $0x488] sm:$0xff] %v2592_v17  ;;  %v2596_v19 = vld [vmem:[%s6412_s0 + $0x498] sm:$0xff]  ;;  %v2598_v20 = vld [vmem:[%s6412_s0 + $0x4a0] sm:$0xff] }
  0x4b   :  { %2595 = vst [vmem:[%s6413_s2 + $0x490] sm:$0xff] %v2594_v18  ;;  %v2600_v21 = vld [vmem:[%s6412_s0 + $0x4a8] sm:$0xff]  ;;  %2597 = vst [vmem:[%s6413_s2 + $0x498] sm:$0xff] %v2596_v19  ;;  %v2602_v22 = vld [vmem:[%s6412_s0 + $0x4b0] sm:$0xff] }
  0x4c   :  { %2599 = vst [vmem:[%s6413_s2 + $0x4a0] sm:$0xff] %v2598_v20  ;;  %2601 = vst [vmem:[%s6413_s2 + $0x4a8] sm:$0xff] %v2600_v21  ;;  %v2604_v23 = vld [vmem:[%s6412_s0 + $0x4b8] sm:$0xff]  ;;  %v2606_v24 = vld [vmem:[%s6412_s0 + $0x4c0] sm:$0xff] }
  0x4d   :  { %2603 = vst [vmem:[%s6413_s2 + $0x4b0] sm:$0xff] %v2602_v22  ;;  %2605 = vst [vmem:[%s6413_s2 + $0x4b8] sm:$0xff] %v2604_v23  ;;  %v2608_v25 = vld [vmem:[%s6412_s0 + $0x4c8] sm:$0xff]  ;;  %v2610_v26 = vld [vmem:[%s6412_s0 + $0x4d0] sm:$0xff] }
  0x4e   :  { %2607 = vst [vmem:[%s6413_s2 + $0x4c0] sm:$0xff] %v2606_v24  ;;  %v2612_v27 = vld [vmem:[%s6412_s0 + $0x4d8] sm:$0xff]  ;;  %2609 = vst [vmem:[%s6413_s2 + $0x4c8] sm:$0xff] %v2608_v25  ;;  %v2614_v28 = vld [vmem:[%s6412_s0 + $0x4e0] sm:$0xff] }
  0x4f   :  { %2611 = vst [vmem:[%s6413_s2 + $0x4d0] sm:$0xff] %v2610_v26  ;;  %2613 = vst [vmem:[%s6413_s2 + $0x4d8] sm:$0xff] %v2612_v27  ;;  %v2616_v29 = vld [vmem:[%s6412_s0 + $0x4e8] sm:$0xff]  ;;  %v2618_v30 = vld [vmem:[%s6412_s0 + $0x4f0] sm:$0xff] }
  0x50   :  { %2615 = vst [vmem:[%s6413_s2 + $0x4e0] sm:$0xff] %v2614_v28  ;;  %2617 = vst [vmem:[%s6413_s2 + $0x4e8] sm:$0xff] %v2616_v29  ;;  %v2620_v31 = vld [vmem:[%s6412_s0 + $0x4f8] sm:$0xff]  ;;  %v2622_v32 = vld [vmem:[%s6412_s0 + $0x500] sm:$0xff] }
  0x51   :  { %2619 = vst [vmem:[%s6413_s2 + $0x4f0] sm:$0xff] %v2618_v30  ;;  %v2624_v33 = vld [vmem:[%s6412_s0 + $0x508] sm:$0xff]  ;;  %2621 = vst [vmem:[%s6413_s2 + $0x4f8] sm:$0xff] %v2620_v31  ;;  %v2626_v34 = vld [vmem:[%s6412_s0 + $0x510] sm:$0xff] }
  0x52   :  { %2623 = vst [vmem:[%s6413_s2 + $0x500] sm:$0xff] %v2622_v32  ;;  %2625 = vst [vmem:[%s6413_s2 + $0x508] sm:$0xff] %v2624_v33  ;;  %v2628_v35 = vld [vmem:[%s6412_s0 + $0x518] sm:$0xff]  ;;  %v2630_v36 = vld [vmem:[%s6412_s0 + $0x520] sm:$0xff] }
  0x53   :  { %2627 = vst [vmem:[%s6413_s2 + $0x510] sm:$0xff] %v2626_v34  ;;  %2629 = vst [vmem:[%s6413_s2 + $0x518] sm:$0xff] %v2628_v35  ;;  %v2632_v37 = vld [vmem:[%s6412_s0 + $0x528] sm:$0xff]  ;;  %v2634_v38 = vld [vmem:[%s6412_s0 + $0x530] sm:$0xff] }
  0x54   :  { %2631 = vst [vmem:[%s6413_s2 + $0x520] sm:$0xff] %v2630_v36  ;;  %v2636_v39 = vld [vmem:[%s6412_s0 + $0x538] sm:$0xff]  ;;  %2633 = vst [vmem:[%s6413_s2 + $0x528] sm:$0xff] %v2632_v37  ;;  %v2638_v40 = vld [vmem:[%s6412_s0 + $0x540] sm:$0xff] }
  0x55   :  { %2635 = vst [vmem:[%s6413_s2 + $0x530] sm:$0xff] %v2634_v38  ;;  %2637 = vst [vmem:[%s6413_s2 + $0x538] sm:$0xff] %v2636_v39  ;;  %v2640_v41 = vld [vmem:[%s6412_s0 + $0x548] sm:$0xff]  ;;  %v2642_v42 = vld [vmem:[%s6412_s0 + $0x550] sm:$0xff] }
  0x56   :  { %2639 = vst [vmem:[%s6413_s2 + $0x540] sm:$0xff] %v2638_v40  ;;  %2641 = vst [vmem:[%s6413_s2 + $0x548] sm:$0xff] %v2640_v41  ;;  %v2644_v43 = vld [vmem:[%s6412_s0 + $0x558] sm:$0xff]  ;;  %v2646_v44 = vld [vmem:[%s6412_s0 + $0x560] sm:$0xff] }
  0x57   :  { %2643 = vst [vmem:[%s6413_s2 + $0x550] sm:$0xff] %v2642_v42  ;;  %v2648_v45 = vld [vmem:[%s6412_s0 + $0x568] sm:$0xff]  ;;  %2645 = vst [vmem:[%s6413_s2 + $0x558] sm:$0xff] %v2644_v43  ;;  %v2650_v46 = vld [vmem:[%s6412_s0 + $0x570] sm:$0xff] }
  0x58   :  { %2647 = vst [vmem:[%s6413_s2 + $0x560] sm:$0xff] %v2646_v44  ;;  %2649 = vst [vmem:[%s6413_s2 + $0x568] sm:$0xff] %v2648_v45  ;;  %v2652_v47 = vld [vmem:[%s6412_s0 + $0x578] sm:$0xff]  ;;  %v2654_v48 = vld [vmem:[%s6412_s0 + $0x580] sm:$0xff] }
  0x59   :  { %2651 = vst [vmem:[%s6413_s2 + $0x570] sm:$0xff] %v2650_v46  ;;  %2653 = vst [vmem:[%s6413_s2 + $0x578] sm:$0xff] %v2652_v47  ;;  %v2656_v49 = vld [vmem:[%s6412_s0 + $0x588] sm:$0xff]  ;;  %v2658_v50 = vld [vmem:[%s6412_s0 + $0x590] sm:$0xff] }
  0x5a   :  { %2655 = vst [vmem:[%s6413_s2 + $0x580] sm:$0xff] %v2654_v48  ;;  %v2660_v51 = vld [vmem:[%s6412_s0 + $0x598] sm:$0xff]  ;;  %2657 = vst [vmem:[%s6413_s2 + $0x588] sm:$0xff] %v2656_v49  ;;  %v2662_v52 = vld [vmem:[%s6412_s0 + $0x5a0] sm:$0xff] }
  0x5b   :  { %2659 = vst [vmem:[%s6413_s2 + $0x590] sm:$0xff] %v2658_v50  ;;  %2661 = vst [vmem:[%s6413_s2 + $0x598] sm:$0xff] %v2660_v51  ;;  %v2664_v53 = vld [vmem:[%s6412_s0 + $0x5a8] sm:$0xff]  ;;  %v2666_v54 = vld [vmem:[%s6412_s0 + $0x5b0] sm:$0xff] }
  0x5c   :  { %2663 = vst [vmem:[%s6413_s2 + $0x5a0] sm:$0xff] %v2662_v52  ;;  %2665 = vst [vmem:[%s6413_s2 + $0x5a8] sm:$0xff] %v2664_v53  ;;  %v2668_v55 = vld [vmem:[%s6412_s0 + $0x5b8] sm:$0xff]  ;;  %v2670_v56 = vld [vmem:[%s6412_s0 + $0x5c0] sm:$0xff] }
  0x5d   :  { %2667 = vst [vmem:[%s6413_s2 + $0x5b0] sm:$0xff] %v2666_v54  ;;  %v2672_v57 = vld [vmem:[%s6412_s0 + $0x5c8] sm:$0xff]  ;;  %2669 = vst [vmem:[%s6413_s2 + $0x5b8] sm:$0xff] %v2668_v55  ;;  %v2674_v58 = vld [vmem:[%s6412_s0 + $0x5d0] sm:$0xff] }
  0x5e   :  { %2671 = vst [vmem:[%s6413_s2 + $0x5c0] sm:$0xff] %v2670_v56  ;;  %2673 = vst [vmem:[%s6413_s2 + $0x5c8] sm:$0xff] %v2672_v57  ;;  %v2676_v59 = vld [vmem:[%s6412_s0 + $0x5d8] sm:$0xff]  ;;  %v2678_v60 = vld [vmem:[%s6412_s0 + $0x5e0] sm:$0xff] }
  0x5f   :  { %2675 = vst [vmem:[%s6413_s2 + $0x5d0] sm:$0xff] %v2674_v58  ;;  %2677 = vst [vmem:[%s6413_s2 + $0x5d8] sm:$0xff] %v2676_v59  ;;  %v2680_v61 = vld [vmem:[%s6412_s0 + $0x5e8] sm:$0xff]  ;;  %v2682_v62 = vld [vmem:[%s6412_s0 + $0x5f0] sm:$0xff] }
  0x60   :  { %2679 = vst [vmem:[%s6413_s2 + $0x5e0] sm:$0xff] %v2678_v60  ;;  %v2684_v63 = vld [vmem:[%s6412_s0 + $0x5f8] sm:$0xff]  ;;  %2681 = vst [vmem:[%s6413_s2 + $0x5e8] sm:$0xff] %v2680_v61  ;;  %v2686_v0 = vld [vmem:[%s6412_s0 + $0x600] sm:$0xff] }
  0x61   :  { %2683 = vst [vmem:[%s6413_s2 + $0x5f0] sm:$0xff] %v2682_v62  ;;  %2685 = vst [vmem:[%s6413_s2 + $0x5f8] sm:$0xff] %v2684_v63  ;;  %v2688_v1 = vld [vmem:[%s6412_s0 + $0x608] sm:$0xff]  ;;  %v2690_v2 = vld [vmem:[%s6412_s0 + $0x610] sm:$0xff] }
  0x62   :  { %2687 = vst [vmem:[%s6413_s2 + $0x600] sm:$0xff] %v2686_v0  ;;  %2689 = vst [vmem:[%s6413_s2 + $0x608] sm:$0xff] %v2688_v1  ;;  %v2692_v3 = vld [vmem:[%s6412_s0 + $0x618] sm:$0xff]  ;;  %v2694_v4 = vld [vmem:[%s6412_s0 + $0x620] sm:$0xff] }
  0x63   :  { %2691 = vst [vmem:[%s6413_s2 + $0x610] sm:$0xff] %v2690_v2  ;;  %v2696_v5 = vld [vmem:[%s6412_s0 + $0x628] sm:$0xff]  ;;  %2693 = vst [vmem:[%s6413_s2 + $0x618] sm:$0xff] %v2692_v3  ;;  %v2698_v6 = vld [vmem:[%s6412_s0 + $0x630] sm:$0xff] }
  0x64   :  { %2695 = vst [vmem:[%s6413_s2 + $0x620] sm:$0xff] %v2694_v4  ;;  %2697 = vst [vmem:[%s6413_s2 + $0x628] sm:$0xff] %v2696_v5  ;;  %v2700_v7 = vld [vmem:[%s6412_s0 + $0x638] sm:$0xff]  ;;  %v2702_v8 = vld [vmem:[%s6412_s0 + $0x640] sm:$0xff] }
  0x65   :  { %2699 = vst [vmem:[%s6413_s2 + $0x630] sm:$0xff] %v2698_v6  ;;  %2701 = vst [vmem:[%s6413_s2 + $0x638] sm:$0xff] %v2700_v7  ;;  %v2704_v9 = vld [vmem:[%s6412_s0 + $0x648] sm:$0xff]  ;;  %v2706_v10 = vld [vmem:[%s6412_s0 + $0x650] sm:$0xff] }
  0x66   :  { %2703 = vst [vmem:[%s6413_s2 + $0x640] sm:$0xff] %v2702_v8  ;;  %v2708_v11 = vld [vmem:[%s6412_s0 + $0x658] sm:$0xff]  ;;  %2705 = vst [vmem:[%s6413_s2 + $0x648] sm:$0xff] %v2704_v9  ;;  %v2710_v12 = vld [vmem:[%s6412_s0 + $0x660] sm:$0xff] }
  0x67   :  { %2707 = vst [vmem:[%s6413_s2 + $0x650] sm:$0xff] %v2706_v10  ;;  %2709 = vst [vmem:[%s6413_s2 + $0x658] sm:$0xff] %v2708_v11  ;;  %v2712_v13 = vld [vmem:[%s6412_s0 + $0x668] sm:$0xff]  ;;  %v2714_v14 = vld [vmem:[%s6412_s0 + $0x670] sm:$0xff] }
  0x68   :  { %2711 = vst [vmem:[%s6413_s2 + $0x660] sm:$0xff] %v2710_v12  ;;  %2713 = vst [vmem:[%s6413_s2 + $0x668] sm:$0xff] %v2712_v13  ;;  %v2716_v15 = vld [vmem:[%s6412_s0 + $0x678] sm:$0xff]  ;;  %v2718_v16 = vld [vmem:[%s6412_s0 + $0x680] sm:$0xff] }
  0x69   :  { %2715 = vst [vmem:[%s6413_s2 + $0x670] sm:$0xff] %v2714_v14  ;;  %v2720_v17 = vld [vmem:[%s6412_s0 + $0x688] sm:$0xff]  ;;  %2717 = vst [vmem:[%s6413_s2 + $0x678] sm:$0xff] %v2716_v15  ;;  %v2722_v18 = vld [vmem:[%s6412_s0 + $0x690] sm:$0xff] }
  0x6a   :  { %2719 = vst [vmem:[%s6413_s2 + $0x680] sm:$0xff] %v2718_v16  ;;  %2721 = vst [vmem:[%s6413_s2 + $0x688] sm:$0xff] %v2720_v17  ;;  %v2724_v19 = vld [vmem:[%s6412_s0 + $0x698] sm:$0xff]  ;;  %v2726_v20 = vld [vmem:[%s6412_s0 + $0x6a0] sm:$0xff] }
  0x6b   :  { %2723 = vst [vmem:[%s6413_s2 + $0x690] sm:$0xff] %v2722_v18  ;;  %2725 = vst [vmem:[%s6413_s2 + $0x698] sm:$0xff] %v2724_v19  ;;  %v2728_v21 = vld [vmem:[%s6412_s0 + $0x6a8] sm:$0xff]  ;;  %v2730_v22 = vld [vmem:[%s6412_s0 + $0x6b0] sm:$0xff] }
  0x6c   :  { %2727 = vst [vmem:[%s6413_s2 + $0x6a0] sm:$0xff] %v2726_v20  ;;  %v2732_v23 = vld [vmem:[%s6412_s0 + $0x6b8] sm:$0xff]  ;;  %2729 = vst [vmem:[%s6413_s2 + $0x6a8] sm:$0xff] %v2728_v21  ;;  %v2734_v24 = vld [vmem:[%s6412_s0 + $0x6c0] sm:$0xff] }
  0x6d   :  { %2731 = vst [vmem:[%s6413_s2 + $0x6b0] sm:$0xff] %v2730_v22  ;;  %2733 = vst [vmem:[%s6413_s2 + $0x6b8] sm:$0xff] %v2732_v23  ;;  %v2736_v25 = vld [vmem:[%s6412_s0 + $0x6c8] sm:$0xff]  ;;  %v2738_v26 = vld [vmem:[%s6412_s0 + $0x6d0] sm:$0xff] }
  0x6e   :  { %2735 = vst [vmem:[%s6413_s2 + $0x6c0] sm:$0xff] %v2734_v24  ;;  %2737 = vst [vmem:[%s6413_s2 + $0x6c8] sm:$0xff] %v2736_v25  ;;  %v2740_v27 = vld [vmem:[%s6412_s0 + $0x6d8] sm:$0xff]  ;;  %v2742_v28 = vld [vmem:[%s6412_s0 + $0x6e0] sm:$0xff] }
  0x6f   :  { %2739 = vst [vmem:[%s6413_s2 + $0x6d0] sm:$0xff] %v2738_v26  ;;  %v2744_v29 = vld [vmem:[%s6412_s0 + $0x6e8] sm:$0xff]  ;;  %2741 = vst [vmem:[%s6413_s2 + $0x6d8] sm:$0xff] %v2740_v27  ;;  %v2746_v30 = vld [vmem:[%s6412_s0 + $0x6f0] sm:$0xff] }
  0x70   :  { %2743 = vst [vmem:[%s6413_s2 + $0x6e0] sm:$0xff] %v2742_v28  ;;  %2745 = vst [vmem:[%s6413_s2 + $0x6e8] sm:$0xff] %v2744_v29  ;;  %v2748_v31 = vld [vmem:[%s6412_s0 + $0x6f8] sm:$0xff]  ;;  %v2750_v32 = vld [vmem:[%s6412_s0 + $0x700] sm:$0xff] }
  0x71   :  { %2747 = vst [vmem:[%s6413_s2 + $0x6f0] sm:$0xff] %v2746_v30  ;;  %2749 = vst [vmem:[%s6413_s2 + $0x6f8] sm:$0xff] %v2748_v31  ;;  %v2752_v33 = vld [vmem:[%s6412_s0 + $0x708] sm:$0xff]  ;;  %v2754_v34 = vld [vmem:[%s6412_s0 + $0x710] sm:$0xff] }
  0x72   :  { %2751 = vst [vmem:[%s6413_s2 + $0x700] sm:$0xff] %v2750_v32  ;;  %v2756_v35 = vld [vmem:[%s6412_s0 + $0x718] sm:$0xff]  ;;  %2753 = vst [vmem:[%s6413_s2 + $0x708] sm:$0xff] %v2752_v33  ;;  %v2758_v36 = vld [vmem:[%s6412_s0 + $0x720] sm:$0xff] }
  0x73   :  { %2755 = vst [vmem:[%s6413_s2 + $0x710] sm:$0xff] %v2754_v34  ;;  %2757 = vst [vmem:[%s6413_s2 + $0x718] sm:$0xff] %v2756_v35  ;;  %v2760_v37 = vld [vmem:[%s6412_s0 + $0x728] sm:$0xff]  ;;  %v2762_v38 = vld [vmem:[%s6412_s0 + $0x730] sm:$0xff] }
  0x74   :  { %2759 = vst [vmem:[%s6413_s2 + $0x720] sm:$0xff] %v2758_v36  ;;  %2761 = vst [vmem:[%s6413_s2 + $0x728] sm:$0xff] %v2760_v37  ;;  %v2764_v39 = vld [vmem:[%s6412_s0 + $0x738] sm:$0xff]  ;;  %v2766_v40 = vld [vmem:[%s6412_s0 + $0x740] sm:$0xff] }
  0x75   :  { %2763 = vst [vmem:[%s6413_s2 + $0x730] sm:$0xff] %v2762_v38  ;;  %v2768_v41 = vld [vmem:[%s6412_s0 + $0x748] sm:$0xff]  ;;  %2765 = vst [vmem:[%s6413_s2 + $0x738] sm:$0xff] %v2764_v39  ;;  %v2770_v42 = vld [vmem:[%s6412_s0 + $0x750] sm:$0xff] }
  0x76   :  { %2767 = vst [vmem:[%s6413_s2 + $0x740] sm:$0xff] %v2766_v40  ;;  %2769 = vst [vmem:[%s6413_s2 + $0x748] sm:$0xff] %v2768_v41  ;;  %v2772_v43 = vld [vmem:[%s6412_s0 + $0x758] sm:$0xff]  ;;  %v2774_v44 = vld [vmem:[%s6412_s0 + $0x760] sm:$0xff] }
  0x77   :  { %2771 = vst [vmem:[%s6413_s2 + $0x750] sm:$0xff] %v2770_v42  ;;  %2773 = vst [vmem:[%s6413_s2 + $0x758] sm:$0xff] %v2772_v43  ;;  %v2776_v45 = vld [vmem:[%s6412_s0 + $0x768] sm:$0xff]  ;;  %v2778_v46 = vld [vmem:[%s6412_s0 + $0x770] sm:$0xff] }
  0x78   :  { %2775 = vst [vmem:[%s6413_s2 + $0x760] sm:$0xff] %v2774_v44  ;;  %v2780_v47 = vld [vmem:[%s6412_s0 + $0x778] sm:$0xff]  ;;  %2777 = vst [vmem:[%s6413_s2 + $0x768] sm:$0xff] %v2776_v45  ;;  %v2782_v48 = vld [vmem:[%s6412_s0 + $0x780] sm:$0xff] }
  0x79   :  { %2779 = vst [vmem:[%s6413_s2 + $0x770] sm:$0xff] %v2778_v46  ;;  %2781 = vst [vmem:[%s6413_s2 + $0x778] sm:$0xff] %v2780_v47  ;;  %v2784_v49 = vld [vmem:[%s6412_s0 + $0x788] sm:$0xff]  ;;  %v2786_v50 = vld [vmem:[%s6412_s0 + $0x790] sm:$0xff] }
  0x7a   :  { %2783 = vst [vmem:[%s6413_s2 + $0x780] sm:$0xff] %v2782_v48  ;;  %2785 = vst [vmem:[%s6413_s2 + $0x788] sm:$0xff] %v2784_v49  ;;  %v2788_v51 = vld [vmem:[%s6412_s0 + $0x798] sm:$0xff]  ;;  %v2790_v52 = vld [vmem:[%s6412_s0 + $0x7a0] sm:$0xff] }
  0x7b   :  { %2787 = vst [vmem:[%s6413_s2 + $0x790] sm:$0xff] %v2786_v50  ;;  %v2792_v53 = vld [vmem:[%s6412_s0 + $0x7a8] sm:$0xff]  ;;  %2789 = vst [vmem:[%s6413_s2 + $0x798] sm:$0xff] %v2788_v51  ;;  %v2794_v54 = vld [vmem:[%s6412_s0 + $0x7b0] sm:$0xff] }
  0x7c   :  { %2791 = vst [vmem:[%s6413_s2 + $0x7a0] sm:$0xff] %v2790_v52  ;;  %2793 = vst [vmem:[%s6413_s2 + $0x7a8] sm:$0xff] %v2792_v53  ;;  %v2796_v55 = vld [vmem:[%s6412_s0 + $0x7b8] sm:$0xff]  ;;  %v2798_v56 = vld [vmem:[%s6412_s0 + $0x7c0] sm:$0xff] }
  0x7d   :  { %2795 = vst [vmem:[%s6413_s2 + $0x7b0] sm:$0xff] %v2794_v54  ;;  %2797 = vst [vmem:[%s6413_s2 + $0x7b8] sm:$0xff] %v2796_v55  ;;  %v2800_v57 = vld [vmem:[%s6412_s0 + $0x7c8] sm:$0xff]  ;;  %v2802_v58 = vld [vmem:[%s6412_s0 + $0x7d0] sm:$0xff] }
  0x7e   :  { %2799 = vst [vmem:[%s6413_s2 + $0x7c0] sm:$0xff] %v2798_v56  ;;  %v2804_v59 = vld [vmem:[%s6412_s0 + $0x7d8] sm:$0xff]  ;;  %2801 = vst [vmem:[%s6413_s2 + $0x7c8] sm:$0xff] %v2800_v57  ;;  %v2806_v60 = vld [vmem:[%s6412_s0 + $0x7e0] sm:$0xff] }
  0x7f   :  { %2803 = vst [vmem:[%s6413_s2 + $0x7d0] sm:$0xff] %v2802_v58  ;;  %2805 = vst [vmem:[%s6413_s2 + $0x7d8] sm:$0xff] %v2804_v59  ;;  %v2808_v61 = vld [vmem:[%s6412_s0 + $0x7e8] sm:$0xff]  ;;  %v2810_v62 = vld [vmem:[%s6412_s0 + $0x7f0] sm:$0xff] }
  0x80   :  { %2807 = vst [vmem:[%s6413_s2 + $0x7e0] sm:$0xff] %v2806_v60  ;;  %2809 = vst [vmem:[%s6413_s2 + $0x7e8] sm:$0xff] %v2808_v61  ;;  %v2812_v63 = vld [vmem:[%s6412_s0 + $0x7f8] sm:$0xff]  ;;  %v1027_v0 = vld [vmem:[%s6414_s1] sm:$0xff] }
  0x81   :  { %2811 = vst [vmem:[%s6413_s2 + $0x7f0] sm:$0xff] %v2810_v62  ;;  %v2815_v1 = vld [vmem:[%s6414_s1 + $0x8] sm:$0xff]  ;;  %2813 = vst [vmem:[%s6413_s2 + $0x7f8] sm:$0xff] %v2812_v63  ;;  %v2817_v2 = vld [vmem:[%s6414_s1 + $0x10] sm:$0xff] }
  0x82   :  { %2814 = vst [vmem:[%s6413_s2 + $0x800] sm:$0xff] %v1027_v0  ;;  %2816 = vst [vmem:[%s6413_s2 + $0x808] sm:$0xff] %v2815_v1  ;;  %v2819_v3 = vld [vmem:[%s6414_s1 + $0x18] sm:$0xff]  ;;  %v2821_v4 = vld [vmem:[%s6414_s1 + $0x20] sm:$0xff] }
  0x83   :  { %2818 = vst [vmem:[%s6413_s2 + $0x810] sm:$0xff] %v2817_v2  ;;  %2820 = vst [vmem:[%s6413_s2 + $0x818] sm:$0xff] %v2819_v3  ;;  %v2823_v5 = vld [vmem:[%s6414_s1 + $0x28] sm:$0xff]  ;;  %v2825_v6 = vld [vmem:[%s6414_s1 + $0x30] sm:$0xff] }
  0x84   :  { %2822 = vst [vmem:[%s6413_s2 + $0x820] sm:$0xff] %v2821_v4  ;;  %v2827_v7 = vld [vmem:[%s6414_s1 + $0x38] sm:$0xff]  ;;  %2824 = vst [vmem:[%s6413_s2 + $0x828] sm:$0xff] %v2823_v5  ;;  %v2829_v8 = vld [vmem:[%s6414_s1 + $0x40] sm:$0xff] }
  0x85   :  { %2826 = vst [vmem:[%s6413_s2 + $0x830] sm:$0xff] %v2825_v6  ;;  %2828 = vst [vmem:[%s6413_s2 + $0x838] sm:$0xff] %v2827_v7  ;;  %v2831_v9 = vld [vmem:[%s6414_s1 + $0x48] sm:$0xff]  ;;  %v2833_v10 = vld [vmem:[%s6414_s1 + $0x50] sm:$0xff] }
  0x86   :  { %2830 = vst [vmem:[%s6413_s2 + $0x840] sm:$0xff] %v2829_v8  ;;  %2832 = vst [vmem:[%s6413_s2 + $0x848] sm:$0xff] %v2831_v9  ;;  %v2835_v11 = vld [vmem:[%s6414_s1 + $0x58] sm:$0xff]  ;;  %v2837_v12 = vld [vmem:[%s6414_s1 + $0x60] sm:$0xff] }
  0x87   :  { %2834 = vst [vmem:[%s6413_s2 + $0x850] sm:$0xff] %v2833_v10  ;;  %v2839_v13 = vld [vmem:[%s6414_s1 + $0x68] sm:$0xff]  ;;  %2836 = vst [vmem:[%s6413_s2 + $0x858] sm:$0xff] %v2835_v11  ;;  %v2841_v14 = vld [vmem:[%s6414_s1 + $0x70] sm:$0xff] }
  0x88   :  { %2838 = vst [vmem:[%s6413_s2 + $0x860] sm:$0xff] %v2837_v12  ;;  %2840 = vst [vmem:[%s6413_s2 + $0x868] sm:$0xff] %v2839_v13  ;;  %v2843_v15 = vld [vmem:[%s6414_s1 + $0x78] sm:$0xff]  ;;  %v2845_v16 = vld [vmem:[%s6414_s1 + $0x80] sm:$0xff] }
  0x89   :  { %2842 = vst [vmem:[%s6413_s2 + $0x870] sm:$0xff] %v2841_v14  ;;  %2844 = vst [vmem:[%s6413_s2 + $0x878] sm:$0xff] %v2843_v15  ;;  %v2847_v17 = vld [vmem:[%s6414_s1 + $0x88] sm:$0xff]  ;;  %v2849_v18 = vld [vmem:[%s6414_s1 + $0x90] sm:$0xff] }
  0x8a   :  { %2846 = vst [vmem:[%s6413_s2 + $0x880] sm:$0xff] %v2845_v16  ;;  %v2851_v19 = vld [vmem:[%s6414_s1 + $0x98] sm:$0xff]  ;;  %2848 = vst [vmem:[%s6413_s2 + $0x888] sm:$0xff] %v2847_v17  ;;  %v2853_v20 = vld [vmem:[%s6414_s1 + $0xa0] sm:$0xff] }
  0x8b   :  { %2850 = vst [vmem:[%s6413_s2 + $0x890] sm:$0xff] %v2849_v18  ;;  %2852 = vst [vmem:[%s6413_s2 + $0x898] sm:$0xff] %v2851_v19  ;;  %v2855_v21 = vld [vmem:[%s6414_s1 + $0xa8] sm:$0xff]  ;;  %v2857_v22 = vld [vmem:[%s6414_s1 + $0xb0] sm:$0xff] }
  0x8c   :  { %2854 = vst [vmem:[%s6413_s2 + $0x8a0] sm:$0xff] %v2853_v20  ;;  %2856 = vst [vmem:[%s6413_s2 + $0x8a8] sm:$0xff] %v2855_v21  ;;  %v2859_v23 = vld [vmem:[%s6414_s1 + $0xb8] sm:$0xff]  ;;  %v2861_v24 = vld [vmem:[%s6414_s1 + $0xc0] sm:$0xff] }
  0x8d   :  { %2858 = vst [vmem:[%s6413_s2 + $0x8b0] sm:$0xff] %v2857_v22  ;;  %v2863_v25 = vld [vmem:[%s6414_s1 + $0xc8] sm:$0xff]  ;;  %2860 = vst [vmem:[%s6413_s2 + $0x8b8] sm:$0xff] %v2859_v23  ;;  %v2865_v26 = vld [vmem:[%s6414_s1 + $0xd0] sm:$0xff] }
  0x8e   :  { %2862 = vst [vmem:[%s6413_s2 + $0x8c0] sm:$0xff] %v2861_v24  ;;  %2864 = vst [vmem:[%s6413_s2 + $0x8c8] sm:$0xff] %v2863_v25  ;;  %v2867_v27 = vld [vmem:[%s6414_s1 + $0xd8] sm:$0xff]  ;;  %v2869_v28 = vld [vmem:[%s6414_s1 + $0xe0] sm:$0xff] }
  0x8f   :  { %2866 = vst [vmem:[%s6413_s2 + $0x8d0] sm:$0xff] %v2865_v26  ;;  %2868 = vst [vmem:[%s6413_s2 + $0x8d8] sm:$0xff] %v2867_v27  ;;  %v2871_v29 = vld [vmem:[%s6414_s1 + $0xe8] sm:$0xff]  ;;  %v2873_v30 = vld [vmem:[%s6414_s1 + $0xf0] sm:$0xff] }
  0x90   :  { %2870 = vst [vmem:[%s6413_s2 + $0x8e0] sm:$0xff] %v2869_v28  ;;  %v2875_v31 = vld [vmem:[%s6414_s1 + $0xf8] sm:$0xff]  ;;  %2872 = vst [vmem:[%s6413_s2 + $0x8e8] sm:$0xff] %v2871_v29  ;;  %v2877_v32 = vld [vmem:[%s6414_s1 + $0x100] sm:$0xff] }
  0x91   :  { %2874 = vst [vmem:[%s6413_s2 + $0x8f0] sm:$0xff] %v2873_v30  ;;  %2876 = vst [vmem:[%s6413_s2 + $0x8f8] sm:$0xff] %v2875_v31  ;;  %v2879_v33 = vld [vmem:[%s6414_s1 + $0x108] sm:$0xff]  ;;  %v2881_v34 = vld [vmem:[%s6414_s1 + $0x110] sm:$0xff] }
  0x92   :  { %2878 = vst [vmem:[%s6413_s2 + $0x900] sm:$0xff] %v2877_v32  ;;  %2880 = vst [vmem:[%s6413_s2 + $0x908] sm:$0xff] %v2879_v33  ;;  %v2883_v35 = vld [vmem:[%s6414_s1 + $0x118] sm:$0xff]  ;;  %v2885_v36 = vld [vmem:[%s6414_s1 + $0x120] sm:$0xff] }
  0x93   :  { %2882 = vst [vmem:[%s6413_s2 + $0x910] sm:$0xff] %v2881_v34  ;;  %v2887_v37 = vld [vmem:[%s6414_s1 + $0x128] sm:$0xff]  ;;  %2884 = vst [vmem:[%s6413_s2 + $0x918] sm:$0xff] %v2883_v35  ;;  %v2889_v38 = vld [vmem:[%s6414_s1 + $0x130] sm:$0xff] }
  0x94   :  { %2886 = vst [vmem:[%s6413_s2 + $0x920] sm:$0xff] %v2885_v36  ;;  %2888 = vst [vmem:[%s6413_s2 + $0x928] sm:$0xff] %v2887_v37  ;;  %v2891_v39 = vld [vmem:[%s6414_s1 + $0x138] sm:$0xff]  ;;  %v2893_v40 = vld [vmem:[%s6414_s1 + $0x140] sm:$0xff] }
  0x95   :  { %2890 = vst [vmem:[%s6413_s2 + $0x930] sm:$0xff] %v2889_v38  ;;  %2892 = vst [vmem:[%s6413_s2 + $0x938] sm:$0xff] %v2891_v39  ;;  %v2895_v41 = vld [vmem:[%s6414_s1 + $0x148] sm:$0xff]  ;;  %v2897_v42 = vld [vmem:[%s6414_s1 + $0x150] sm:$0xff] }
  0x96   :  { %2894 = vst [vmem:[%s6413_s2 + $0x940] sm:$0xff] %v2893_v40  ;;  %v2899_v43 = vld [vmem:[%s6414_s1 + $0x158] sm:$0xff]  ;;  %2896 = vst [vmem:[%s6413_s2 + $0x948] sm:$0xff] %v2895_v41  ;;  %v2901_v44 = vld [vmem:[%s6414_s1 + $0x160] sm:$0xff] }
  0x97   :  { %2898 = vst [vmem:[%s6413_s2 + $0x950] sm:$0xff] %v2897_v42  ;;  %2900 = vst [vmem:[%s6413_s2 + $0x958] sm:$0xff] %v2899_v43  ;;  %v2903_v45 = vld [vmem:[%s6414_s1 + $0x168] sm:$0xff]  ;;  %v2905_v46 = vld [vmem:[%s6414_s1 + $0x170] sm:$0xff] }
  0x98   :  { %2902 = vst [vmem:[%s6413_s2 + $0x960] sm:$0xff] %v2901_v44  ;;  %2904 = vst [vmem:[%s6413_s2 + $0x968] sm:$0xff] %v2903_v45  ;;  %v2907_v47 = vld [vmem:[%s6414_s1 + $0x178] sm:$0xff]  ;;  %v2909_v48 = vld [vmem:[%s6414_s1 + $0x180] sm:$0xff] }
  0x99   :  { %2906 = vst [vmem:[%s6413_s2 + $0x970] sm:$0xff] %v2905_v46  ;;  %v2911_v49 = vld [vmem:[%s6414_s1 + $0x188] sm:$0xff]  ;;  %2908 = vst [vmem:[%s6413_s2 + $0x978] sm:$0xff] %v2907_v47  ;;  %v2913_v50 = vld [vmem:[%s6414_s1 + $0x190] sm:$0xff] }
  0x9a   :  { %2910 = vst [vmem:[%s6413_s2 + $0x980] sm:$0xff] %v2909_v48  ;;  %2912 = vst [vmem:[%s6413_s2 + $0x988] sm:$0xff] %v2911_v49  ;;  %v2915_v51 = vld [vmem:[%s6414_s1 + $0x198] sm:$0xff]  ;;  %v2917_v52 = vld [vmem:[%s6414_s1 + $0x1a0] sm:$0xff] }
  0x9b   :  { %2914 = vst [vmem:[%s6413_s2 + $0x990] sm:$0xff] %v2913_v50  ;;  %2916 = vst [vmem:[%s6413_s2 + $0x998] sm:$0xff] %v2915_v51  ;;  %v2919_v53 = vld [vmem:[%s6414_s1 + $0x1a8] sm:$0xff]  ;;  %v2921_v54 = vld [vmem:[%s6414_s1 + $0x1b0] sm:$0xff] }
  0x9c   :  { %2918 = vst [vmem:[%s6413_s2 + $0x9a0] sm:$0xff] %v2917_v52  ;;  %v2923_v55 = vld [vmem:[%s6414_s1 + $0x1b8] sm:$0xff]  ;;  %2920 = vst [vmem:[%s6413_s2 + $0x9a8] sm:$0xff] %v2919_v53  ;;  %v2925_v56 = vld [vmem:[%s6414_s1 + $0x1c0] sm:$0xff] }
  0x9d   :  { %2922 = vst [vmem:[%s6413_s2 + $0x9b0] sm:$0xff] %v2921_v54  ;;  %2924 = vst [vmem:[%s6413_s2 + $0x9b8] sm:$0xff] %v2923_v55  ;;  %v2927_v57 = vld [vmem:[%s6414_s1 + $0x1c8] sm:$0xff]  ;;  %v2929_v58 = vld [vmem:[%s6414_s1 + $0x1d0] sm:$0xff] }
  0x9e   :  { %2926 = vst [vmem:[%s6413_s2 + $0x9c0] sm:$0xff] %v2925_v56  ;;  %2928 = vst [vmem:[%s6413_s2 + $0x9c8] sm:$0xff] %v2927_v57  ;;  %v2931_v59 = vld [vmem:[%s6414_s1 + $0x1d8] sm:$0xff]  ;;  %v2933_v60 = vld [vmem:[%s6414_s1 + $0x1e0] sm:$0xff] }
  0x9f   :  { %2930 = vst [vmem:[%s6413_s2 + $0x9d0] sm:$0xff] %v2929_v58  ;;  %v2935_v61 = vld [vmem:[%s6414_s1 + $0x1e8] sm:$0xff]  ;;  %2932 = vst [vmem:[%s6413_s2 + $0x9d8] sm:$0xff] %v2931_v59  ;;  %v2937_v62 = vld [vmem:[%s6414_s1 + $0x1f0] sm:$0xff] }
  0xa0   :  { %2934 = vst [vmem:[%s6413_s2 + $0x9e0] sm:$0xff] %v2933_v60  ;;  %2936 = vst [vmem:[%s6413_s2 + $0x9e8] sm:$0xff] %v2935_v61  ;;  %v2939_v63 = vld [vmem:[%s6414_s1 + $0x1f8] sm:$0xff]  ;;  %v2941_v0 = vld [vmem:[%s6414_s1 + $0x200] sm:$0xff] }
  0xa1   :  { %2938 = vst [vmem:[%s6413_s2 + $0x9f0] sm:$0xff] %v2937_v62  ;;  %2940 = vst [vmem:[%s6413_s2 + $0x9f8] sm:$0xff] %v2939_v63  ;;  %v2943_v1 = vld [vmem:[%s6414_s1 + $0x208] sm:$0xff]  ;;  %v2945_v2 = vld [vmem:[%s6414_s1 + $0x210] sm:$0xff] }
  0xa2   :  { %2942 = vst [vmem:[%s6413_s2 + $0xa00] sm:$0xff] %v2941_v0  ;;  %v2947_v3 = vld [vmem:[%s6414_s1 + $0x218] sm:$0xff]  ;;  %2944 = vst [vmem:[%s6413_s2 + $0xa08] sm:$0xff] %v2943_v1  ;;  %v2949_v4 = vld [vmem:[%s6414_s1 + $0x220] sm:$0xff] }
  0xa3   :  { %2946 = vst [vmem:[%s6413_s2 + $0xa10] sm:$0xff] %v2945_v2  ;;  %2948 = vst [vmem:[%s6413_s2 + $0xa18] sm:$0xff] %v2947_v3  ;;  %v2951_v5 = vld [vmem:[%s6414_s1 + $0x228] sm:$0xff]  ;;  %v2953_v6 = vld [vmem:[%s6414_s1 + $0x230] sm:$0xff] }
  0xa4   :  { %2950 = vst [vmem:[%s6413_s2 + $0xa20] sm:$0xff] %v2949_v4  ;;  %2952 = vst [vmem:[%s6413_s2 + $0xa28] sm:$0xff] %v2951_v5  ;;  %v2955_v7 = vld [vmem:[%s6414_s1 + $0x238] sm:$0xff]  ;;  %v2957_v8 = vld [vmem:[%s6414_s1 + $0x240] sm:$0xff] }
  0xa5   :  { %2954 = vst [vmem:[%s6413_s2 + $0xa30] sm:$0xff] %v2953_v6  ;;  %v2959_v9 = vld [vmem:[%s6414_s1 + $0x248] sm:$0xff]  ;;  %2956 = vst [vmem:[%s6413_s2 + $0xa38] sm:$0xff] %v2955_v7  ;;  %v2961_v10 = vld [vmem:[%s6414_s1 + $0x250] sm:$0xff] }
  0xa6   :  { %2958 = vst [vmem:[%s6413_s2 + $0xa40] sm:$0xff] %v2957_v8  ;;  %2960 = vst [vmem:[%s6413_s2 + $0xa48] sm:$0xff] %v2959_v9  ;;  %v2963_v11 = vld [vmem:[%s6414_s1 + $0x258] sm:$0xff]  ;;  %v2965_v12 = vld [vmem:[%s6414_s1 + $0x260] sm:$0xff] }
  0xa7   :  { %2962 = vst [vmem:[%s6413_s2 + $0xa50] sm:$0xff] %v2961_v10  ;;  %2964 = vst [vmem:[%s6413_s2 + $0xa58] sm:$0xff] %v2963_v11  ;;  %v2967_v13 = vld [vmem:[%s6414_s1 + $0x268] sm:$0xff]  ;;  %v2969_v14 = vld [vmem:[%s6414_s1 + $0x270] sm:$0xff] }
  0xa8   :  { %2966 = vst [vmem:[%s6413_s2 + $0xa60] sm:$0xff] %v2965_v12  ;;  %v2971_v15 = vld [vmem:[%s6414_s1 + $0x278] sm:$0xff]  ;;  %2968 = vst [vmem:[%s6413_s2 + $0xa68] sm:$0xff] %v2967_v13  ;;  %v2973_v16 = vld [vmem:[%s6414_s1 + $0x280] sm:$0xff] }
  0xa9   :  { %2970 = vst [vmem:[%s6413_s2 + $0xa70] sm:$0xff] %v2969_v14  ;;  %2972 = vst [vmem:[%s6413_s2 + $0xa78] sm:$0xff] %v2971_v15  ;;  %v2975_v17 = vld [vmem:[%s6414_s1 + $0x288] sm:$0xff]  ;;  %v2977_v18 = vld [vmem:[%s6414_s1 + $0x290] sm:$0xff] }
  0xaa   :  { %2974 = vst [vmem:[%s6413_s2 + $0xa80] sm:$0xff] %v2973_v16  ;;  %2976 = vst [vmem:[%s6413_s2 + $0xa88] sm:$0xff] %v2975_v17  ;;  %v2979_v19 = vld [vmem:[%s6414_s1 + $0x298] sm:$0xff]  ;;  %v2981_v20 = vld [vmem:[%s6414_s1 + $0x2a0] sm:$0xff] }
  0xab   :  { %2978 = vst [vmem:[%s6413_s2 + $0xa90] sm:$0xff] %v2977_v18  ;;  %v2983_v21 = vld [vmem:[%s6414_s1 + $0x2a8] sm:$0xff]  ;;  %2980 = vst [vmem:[%s6413_s2 + $0xa98] sm:$0xff] %v2979_v19  ;;  %v2985_v22 = vld [vmem:[%s6414_s1 + $0x2b0] sm:$0xff] }
  0xac   :  { %2982 = vst [vmem:[%s6413_s2 + $0xaa0] sm:$0xff] %v2981_v20  ;;  %2984 = vst [vmem:[%s6413_s2 + $0xaa8] sm:$0xff] %v2983_v21  ;;  %v2987_v23 = vld [vmem:[%s6414_s1 + $0x2b8] sm:$0xff]  ;;  %v2989_v24 = vld [vmem:[%s6414_s1 + $0x2c0] sm:$0xff] }
  0xad   :  { %2986 = vst [vmem:[%s6413_s2 + $0xab0] sm:$0xff] %v2985_v22  ;;  %2988 = vst [vmem:[%s6413_s2 + $0xab8] sm:$0xff] %v2987_v23  ;;  %v2991_v25 = vld [vmem:[%s6414_s1 + $0x2c8] sm:$0xff]  ;;  %v2993_v26 = vld [vmem:[%s6414_s1 + $0x2d0] sm:$0xff] }
  0xae   :  { %2990 = vst [vmem:[%s6413_s2 + $0xac0] sm:$0xff] %v2989_v24  ;;  %v2995_v27 = vld [vmem:[%s6414_s1 + $0x2d8] sm:$0xff]  ;;  %2992 = vst [vmem:[%s6413_s2 + $0xac8] sm:$0xff] %v2991_v25  ;;  %v2997_v28 = vld [vmem:[%s6414_s1 + $0x2e0] sm:$0xff] }
  0xaf   :  { %2994 = vst [vmem:[%s6413_s2 + $0xad0] sm:$0xff] %v2993_v26  ;;  %2996 = vst [vmem:[%s6413_s2 + $0xad8] sm:$0xff] %v2995_v27  ;;  %v2999_v29 = vld [vmem:[%s6414_s1 + $0x2e8] sm:$0xff]  ;;  %v3001_v30 = vld [vmem:[%s6414_s1 + $0x2f0] sm:$0xff] }
  0xb0   :  { %2998 = vst [vmem:[%s6413_s2 + $0xae0] sm:$0xff] %v2997_v28  ;;  %3000 = vst [vmem:[%s6413_s2 + $0xae8] sm:$0xff] %v2999_v29  ;;  %v3003_v31 = vld [vmem:[%s6414_s1 + $0x2f8] sm:$0xff]  ;;  %v3005_v32 = vld [vmem:[%s6414_s1 + $0x300] sm:$0xff] }
  0xb1   :  { %3002 = vst [vmem:[%s6413_s2 + $0xaf0] sm:$0xff] %v3001_v30  ;;  %v3007_v33 = vld [vmem:[%s6414_s1 + $0x308] sm:$0xff]  ;;  %3004 = vst [vmem:[%s6413_s2 + $0xaf8] sm:$0xff] %v3003_v31  ;;  %v3009_v34 = vld [vmem:[%s6414_s1 + $0x310] sm:$0xff] }
  0xb2   :  { %3006 = vst [vmem:[%s6413_s2 + $0xb00] sm:$0xff] %v3005_v32  ;;  %3008 = vst [vmem:[%s6413_s2 + $0xb08] sm:$0xff] %v3007_v33  ;;  %v3011_v35 = vld [vmem:[%s6414_s1 + $0x318] sm:$0xff]  ;;  %v3013_v36 = vld [vmem:[%s6414_s1 + $0x320] sm:$0xff] }
  0xb3   :  { %3010 = vst [vmem:[%s6413_s2 + $0xb10] sm:$0xff] %v3009_v34  ;;  %3012 = vst [vmem:[%s6413_s2 + $0xb18] sm:$0xff] %v3011_v35  ;;  %v3015_v37 = vld [vmem:[%s6414_s1 + $0x328] sm:$0xff]  ;;  %v3017_v38 = vld [vmem:[%s6414_s1 + $0x330] sm:$0xff] }
  0xb4   :  { %3014 = vst [vmem:[%s6413_s2 + $0xb20] sm:$0xff] %v3013_v36  ;;  %v3019_v39 = vld [vmem:[%s6414_s1 + $0x338] sm:$0xff]  ;;  %3016 = vst [vmem:[%s6413_s2 + $0xb28] sm:$0xff] %v3015_v37  ;;  %v3021_v40 = vld [vmem:[%s6414_s1 + $0x340] sm:$0xff] }
  0xb5   :  { %3018 = vst [vmem:[%s6413_s2 + $0xb30] sm:$0xff] %v3017_v38  ;;  %3020 = vst [vmem:[%s6413_s2 + $0xb38] sm:$0xff] %v3019_v39  ;;  %v3023_v41 = vld [vmem:[%s6414_s1 + $0x348] sm:$0xff]  ;;  %v3025_v42 = vld [vmem:[%s6414_s1 + $0x350] sm:$0xff] }
  0xb6   :  { %3022 = vst [vmem:[%s6413_s2 + $0xb40] sm:$0xff] %v3021_v40  ;;  %3024 = vst [vmem:[%s6413_s2 + $0xb48] sm:$0xff] %v3023_v41  ;;  %v3027_v43 = vld [vmem:[%s6414_s1 + $0x358] sm:$0xff]  ;;  %v3029_v44 = vld [vmem:[%s6414_s1 + $0x360] sm:$0xff] }
  0xb7   :  { %3026 = vst [vmem:[%s6413_s2 + $0xb50] sm:$0xff] %v3025_v42  ;;  %v3031_v45 = vld [vmem:[%s6414_s1 + $0x368] sm:$0xff]  ;;  %3028 = vst [vmem:[%s6413_s2 + $0xb58] sm:$0xff] %v3027_v43  ;;  %v3033_v46 = vld [vmem:[%s6414_s1 + $0x370] sm:$0xff] }
  0xb8   :  { %3030 = vst [vmem:[%s6413_s2 + $0xb60] sm:$0xff] %v3029_v44  ;;  %3032 = vst [vmem:[%s6413_s2 + $0xb68] sm:$0xff] %v3031_v45  ;;  %v3035_v47 = vld [vmem:[%s6414_s1 + $0x378] sm:$0xff]  ;;  %v3037_v48 = vld [vmem:[%s6414_s1 + $0x380] sm:$0xff] }
  0xb9   :  { %3034 = vst [vmem:[%s6413_s2 + $0xb70] sm:$0xff] %v3033_v46  ;;  %3036 = vst [vmem:[%s6413_s2 + $0xb78] sm:$0xff] %v3035_v47  ;;  %v3039_v49 = vld [vmem:[%s6414_s1 + $0x388] sm:$0xff]  ;;  %v3041_v50 = vld [vmem:[%s6414_s1 + $0x390] sm:$0xff] }
  0xba   :  { %3038 = vst [vmem:[%s6413_s2 + $0xb80] sm:$0xff] %v3037_v48  ;;  %v3043_v51 = vld [vmem:[%s6414_s1 + $0x398] sm:$0xff]  ;;  %3040 = vst [vmem:[%s6413_s2 + $0xb88] sm:$0xff] %v3039_v49  ;;  %v3045_v52 = vld [vmem:[%s6414_s1 + $0x3a0] sm:$0xff] }
  0xbb   :  { %3042 = vst [vmem:[%s6413_s2 + $0xb90] sm:$0xff] %v3041_v50  ;;  %3044 = vst [vmem:[%s6413_s2 + $0xb98] sm:$0xff] %v3043_v51  ;;  %v3047_v53 = vld [vmem:[%s6414_s1 + $0x3a8] sm:$0xff]  ;;  %v3049_v54 = vld [vmem:[%s6414_s1 + $0x3b0] sm:$0xff] }
  0xbc   :  { %3046 = vst [vmem:[%s6413_s2 + $0xba0] sm:$0xff] %v3045_v52  ;;  %3048 = vst [vmem:[%s6413_s2 + $0xba8] sm:$0xff] %v3047_v53  ;;  %v3051_v55 = vld [vmem:[%s6414_s1 + $0x3b8] sm:$0xff]  ;;  %v3053_v56 = vld [vmem:[%s6414_s1 + $0x3c0] sm:$0xff] }
  0xbd   :  { %3050 = vst [vmem:[%s6413_s2 + $0xbb0] sm:$0xff] %v3049_v54  ;;  %v3055_v57 = vld [vmem:[%s6414_s1 + $0x3c8] sm:$0xff]  ;;  %3052 = vst [vmem:[%s6413_s2 + $0xbb8] sm:$0xff] %v3051_v55  ;;  %v3057_v58 = vld [vmem:[%s6414_s1 + $0x3d0] sm:$0xff] }
  0xbe   :  { %3054 = vst [vmem:[%s6413_s2 + $0xbc0] sm:$0xff] %v3053_v56  ;;  %3056 = vst [vmem:[%s6413_s2 + $0xbc8] sm:$0xff] %v3055_v57  ;;  %v3059_v59 = vld [vmem:[%s6414_s1 + $0x3d8] sm:$0xff]  ;;  %v3061_v60 = vld [vmem:[%s6414_s1 + $0x3e0] sm:$0xff] }
  0xbf   :  { %3058 = vst [vmem:[%s6413_s2 + $0xbd0] sm:$0xff] %v3057_v58  ;;  %3060 = vst [vmem:[%s6413_s2 + $0xbd8] sm:$0xff] %v3059_v59  ;;  %v3063_v61 = vld [vmem:[%s6414_s1 + $0x3e8] sm:$0xff]  ;;  %v3065_v62 = vld [vmem:[%s6414_s1 + $0x3f0] sm:$0xff] }
  0xc0   :  { %3062 = vst [vmem:[%s6413_s2 + $0xbe0] sm:$0xff] %v3061_v60  ;;  %v3067_v63 = vld [vmem:[%s6414_s1 + $0x3f8] sm:$0xff]  ;;  %3064 = vst [vmem:[%s6413_s2 + $0xbe8] sm:$0xff] %v3063_v61  ;;  %v3069_v0 = vld [vmem:[%s6414_s1 + $0x400] sm:$0xff] }
  0xc1   :  { %3066 = vst [vmem:[%s6413_s2 + $0xbf0] sm:$0xff] %v3065_v62  ;;  %3068 = vst [vmem:[%s6413_s2 + $0xbf8] sm:$0xff] %v3067_v63  ;;  %v3071_v1 = vld [vmem:[%s6414_s1 + $0x408] sm:$0xff]  ;;  %v3073_v2 = vld [vmem:[%s6414_s1 + $0x410] sm:$0xff] }
  0xc2   :  { %3070 = vst [vmem:[%s6413_s2 + $0xc00] sm:$0xff] %v3069_v0  ;;  %3072 = vst [vmem:[%s6413_s2 + $0xc08] sm:$0xff] %v3071_v1  ;;  %v3075_v3 = vld [vmem:[%s6414_s1 + $0x418] sm:$0xff]  ;;  %v3077_v4 = vld [vmem:[%s6414_s1 + $0x420] sm:$0xff] }
  0xc3   :  { %3074 = vst [vmem:[%s6413_s2 + $0xc10] sm:$0xff] %v3073_v2  ;;  %v3079_v5 = vld [vmem:[%s6414_s1 + $0x428] sm:$0xff]  ;;  %3076 = vst [vmem:[%s6413_s2 + $0xc18] sm:$0xff] %v3075_v3  ;;  %v3081_v6 = vld [vmem:[%s6414_s1 + $0x430] sm:$0xff] }
  0xc4   :  { %3078 = vst [vmem:[%s6413_s2 + $0xc20] sm:$0xff] %v3077_v4  ;;  %3080 = vst [vmem:[%s6413_s2 + $0xc28] sm:$0xff] %v3079_v5  ;;  %v3083_v7 = vld [vmem:[%s6414_s1 + $0x438] sm:$0xff]  ;;  %v3085_v8 = vld [vmem:[%s6414_s1 + $0x440] sm:$0xff] }
  0xc5   :  { %3082 = vst [vmem:[%s6413_s2 + $0xc30] sm:$0xff] %v3081_v6  ;;  %3084 = vst [vmem:[%s6413_s2 + $0xc38] sm:$0xff] %v3083_v7  ;;  %v3087_v9 = vld [vmem:[%s6414_s1 + $0x448] sm:$0xff]  ;;  %v3089_v10 = vld [vmem:[%s6414_s1 + $0x450] sm:$0xff] }
  0xc6   :  { %3086 = vst [vmem:[%s6413_s2 + $0xc40] sm:$0xff] %v3085_v8  ;;  %v3091_v11 = vld [vmem:[%s6414_s1 + $0x458] sm:$0xff]  ;;  %3088 = vst [vmem:[%s6413_s2 + $0xc48] sm:$0xff] %v3087_v9  ;;  %v3093_v12 = vld [vmem:[%s6414_s1 + $0x460] sm:$0xff] }
  0xc7   :  { %3090 = vst [vmem:[%s6413_s2 + $0xc50] sm:$0xff] %v3089_v10  ;;  %3092 = vst [vmem:[%s6413_s2 + $0xc58] sm:$0xff] %v3091_v11  ;;  %v3095_v13 = vld [vmem:[%s6414_s1 + $0x468] sm:$0xff]  ;;  %v3097_v14 = vld [vmem:[%s6414_s1 + $0x470] sm:$0xff] }
  0xc8   :  { %3094 = vst [vmem:[%s6413_s2 + $0xc60] sm:$0xff] %v3093_v12  ;;  %3096 = vst [vmem:[%s6413_s2 + $0xc68] sm:$0xff] %v3095_v13  ;;  %v3099_v15 = vld [vmem:[%s6414_s1 + $0x478] sm:$0xff]  ;;  %v3101_v16 = vld [vmem:[%s6414_s1 + $0x480] sm:$0xff] }
  0xc9   :  { %3098 = vst [vmem:[%s6413_s2 + $0xc70] sm:$0xff] %v3097_v14  ;;  %v3103_v17 = vld [vmem:[%s6414_s1 + $0x488] sm:$0xff]  ;;  %3100 = vst [vmem:[%s6413_s2 + $0xc78] sm:$0xff] %v3099_v15  ;;  %v3105_v18 = vld [vmem:[%s6414_s1 + $0x490] sm:$0xff] }
  0xca   :  { %3102 = vst [vmem:[%s6413_s2 + $0xc80] sm:$0xff] %v3101_v16  ;;  %3104 = vst [vmem:[%s6413_s2 + $0xc88] sm:$0xff] %v3103_v17  ;;  %v3107_v19 = vld [vmem:[%s6414_s1 + $0x498] sm:$0xff]  ;;  %v3109_v20 = vld [vmem:[%s6414_s1 + $0x4a0] sm:$0xff] }
  0xcb   :  { %3106 = vst [vmem:[%s6413_s2 + $0xc90] sm:$0xff] %v3105_v18  ;;  %3108 = vst [vmem:[%s6413_s2 + $0xc98] sm:$0xff] %v3107_v19  ;;  %v3111_v21 = vld [vmem:[%s6414_s1 + $0x4a8] sm:$0xff]  ;;  %v3113_v22 = vld [vmem:[%s6414_s1 + $0x4b0] sm:$0xff] }
  0xcc   :  { %3110 = vst [vmem:[%s6413_s2 + $0xca0] sm:$0xff] %v3109_v20  ;;  %v3115_v23 = vld [vmem:[%s6414_s1 + $0x4b8] sm:$0xff]  ;;  %3112 = vst [vmem:[%s6413_s2 + $0xca8] sm:$0xff] %v3111_v21  ;;  %v3117_v24 = vld [vmem:[%s6414_s1 + $0x4c0] sm:$0xff] }
  0xcd   :  { %3114 = vst [vmem:[%s6413_s2 + $0xcb0] sm:$0xff] %v3113_v22  ;;  %3116 = vst [vmem:[%s6413_s2 + $0xcb8] sm:$0xff] %v3115_v23  ;;  %v3119_v25 = vld [vmem:[%s6414_s1 + $0x4c8] sm:$0xff]  ;;  %v3121_v26 = vld [vmem:[%s6414_s1 + $0x4d0] sm:$0xff] }
  0xce   :  { %3118 = vst [vmem:[%s6413_s2 + $0xcc0] sm:$0xff] %v3117_v24  ;;  %3120 = vst [vmem:[%s6413_s2 + $0xcc8] sm:$0xff] %v3119_v25  ;;  %v3123_v27 = vld [vmem:[%s6414_s1 + $0x4d8] sm:$0xff]  ;;  %v3125_v28 = vld [vmem:[%s6414_s1 + $0x4e0] sm:$0xff] }
  0xcf   :  { %3122 = vst [vmem:[%s6413_s2 + $0xcd0] sm:$0xff] %v3121_v26  ;;  %v3127_v29 = vld [vmem:[%s6414_s1 + $0x4e8] sm:$0xff]  ;;  %3124 = vst [vmem:[%s6413_s2 + $0xcd8] sm:$0xff] %v3123_v27  ;;  %v3129_v30 = vld [vmem:[%s6414_s1 + $0x4f0] sm:$0xff] }
  0xd0   :  { %3126 = vst [vmem:[%s6413_s2 + $0xce0] sm:$0xff] %v3125_v28  ;;  %3128 = vst [vmem:[%s6413_s2 + $0xce8] sm:$0xff] %v3127_v29  ;;  %v3131_v31 = vld [vmem:[%s6414_s1 + $0x4f8] sm:$0xff]  ;;  %v3133_v32 = vld [vmem:[%s6414_s1 + $0x500] sm:$0xff] }
  0xd1   :  { %3130 = vst [vmem:[%s6413_s2 + $0xcf0] sm:$0xff] %v3129_v30  ;;  %3132 = vst [vmem:[%s6413_s2 + $0xcf8] sm:$0xff] %v3131_v31  ;;  %v3135_v33 = vld [vmem:[%s6414_s1 + $0x508] sm:$0xff]  ;;  %v3137_v34 = vld [vmem:[%s6414_s1 + $0x510] sm:$0xff] }
  0xd2   :  { %3134 = vst [vmem:[%s6413_s2 + $0xd00] sm:$0xff] %v3133_v32  ;;  %v3139_v35 = vld [vmem:[%s6414_s1 + $0x518] sm:$0xff]  ;;  %3136 = vst [vmem:[%s6413_s2 + $0xd08] sm:$0xff] %v3135_v33  ;;  %v3141_v36 = vld [vmem:[%s6414_s1 + $0x520] sm:$0xff] }
  0xd3   :  { %3138 = vst [vmem:[%s6413_s2 + $0xd10] sm:$0xff] %v3137_v34  ;;  %3140 = vst [vmem:[%s6413_s2 + $0xd18] sm:$0xff] %v3139_v35  ;;  %v3143_v37 = vld [vmem:[%s6414_s1 + $0x528] sm:$0xff]  ;;  %v3145_v38 = vld [vmem:[%s6414_s1 + $0x530] sm:$0xff] }
  0xd4   :  { %3142 = vst [vmem:[%s6413_s2 + $0xd20] sm:$0xff] %v3141_v36  ;;  %3144 = vst [vmem:[%s6413_s2 + $0xd28] sm:$0xff] %v3143_v37  ;;  %v3147_v39 = vld [vmem:[%s6414_s1 + $0x538] sm:$0xff]  ;;  %v3149_v40 = vld [vmem:[%s6414_s1 + $0x540] sm:$0xff] }
  0xd5   :  { %3146 = vst [vmem:[%s6413_s2 + $0xd30] sm:$0xff] %v3145_v38  ;;  %v3151_v41 = vld [vmem:[%s6414_s1 + $0x548] sm:$0xff]  ;;  %3148 = vst [vmem:[%s6413_s2 + $0xd38] sm:$0xff] %v3147_v39  ;;  %v3153_v42 = vld [vmem:[%s6414_s1 + $0x550] sm:$0xff] }
  0xd6   :  { %3150 = vst [vmem:[%s6413_s2 + $0xd40] sm:$0xff] %v3149_v40  ;;  %3152 = vst [vmem:[%s6413_s2 + $0xd48] sm:$0xff] %v3151_v41  ;;  %v3155_v43 = vld [vmem:[%s6414_s1 + $0x558] sm:$0xff]  ;;  %v3157_v44 = vld [vmem:[%s6414_s1 + $0x560] sm:$0xff] }
  0xd7   :  { %3154 = vst [vmem:[%s6413_s2 + $0xd50] sm:$0xff] %v3153_v42  ;;  %3156 = vst [vmem:[%s6413_s2 + $0xd58] sm:$0xff] %v3155_v43  ;;  %v3159_v45 = vld [vmem:[%s6414_s1 + $0x568] sm:$0xff]  ;;  %v3161_v46 = vld [vmem:[%s6414_s1 + $0x570] sm:$0xff] }
  0xd8   :  { %3158 = vst [vmem:[%s6413_s2 + $0xd60] sm:$0xff] %v3157_v44  ;;  %v3163_v47 = vld [vmem:[%s6414_s1 + $0x578] sm:$0xff]  ;;  %3160 = vst [vmem:[%s6413_s2 + $0xd68] sm:$0xff] %v3159_v45  ;;  %v3165_v48 = vld [vmem:[%s6414_s1 + $0x580] sm:$0xff] }
  0xd9   :  { %3162 = vst [vmem:[%s6413_s2 + $0xd70] sm:$0xff] %v3161_v46  ;;  %3164 = vst [vmem:[%s6413_s2 + $0xd78] sm:$0xff] %v3163_v47  ;;  %v3167_v49 = vld [vmem:[%s6414_s1 + $0x588] sm:$0xff]  ;;  %v3169_v50 = vld [vmem:[%s6414_s1 + $0x590] sm:$0xff] }
  0xda   :  { %3166 = vst [vmem:[%s6413_s2 + $0xd80] sm:$0xff] %v3165_v48  ;;  %3168 = vst [vmem:[%s6413_s2 + $0xd88] sm:$0xff] %v3167_v49  ;;  %v3171_v51 = vld [vmem:[%s6414_s1 + $0x598] sm:$0xff]  ;;  %v3173_v52 = vld [vmem:[%s6414_s1 + $0x5a0] sm:$0xff] }
  0xdb   :  { %3170 = vst [vmem:[%s6413_s2 + $0xd90] sm:$0xff] %v3169_v50  ;;  %v3175_v53 = vld [vmem:[%s6414_s1 + $0x5a8] sm:$0xff]  ;;  %3172 = vst [vmem:[%s6413_s2 + $0xd98] sm:$0xff] %v3171_v51  ;;  %v3177_v54 = vld [vmem:[%s6414_s1 + $0x5b0] sm:$0xff] }
  0xdc   :  { %3174 = vst [vmem:[%s6413_s2 + $0xda0] sm:$0xff] %v3173_v52  ;;  %3176 = vst [vmem:[%s6413_s2 + $0xda8] sm:$0xff] %v3175_v53  ;;  %v3179_v55 = vld [vmem:[%s6414_s1 + $0x5b8] sm:$0xff]  ;;  %v3181_v56 = vld [vmem:[%s6414_s1 + $0x5c0] sm:$0xff] }
  0xdd   :  { %3178 = vst [vmem:[%s6413_s2 + $0xdb0] sm:$0xff] %v3177_v54  ;;  %3180 = vst [vmem:[%s6413_s2 + $0xdb8] sm:$0xff] %v3179_v55  ;;  %v3183_v57 = vld [vmem:[%s6414_s1 + $0x5c8] sm:$0xff]  ;;  %v3185_v58 = vld [vmem:[%s6414_s1 + $0x5d0] sm:$0xff] }
  0xde   :  { %3182 = vst [vmem:[%s6413_s2 + $0xdc0] sm:$0xff] %v3181_v56  ;;  %v3187_v59 = vld [vmem:[%s6414_s1 + $0x5d8] sm:$0xff]  ;;  %3184 = vst [vmem:[%s6413_s2 + $0xdc8] sm:$0xff] %v3183_v57  ;;  %v3189_v60 = vld [vmem:[%s6414_s1 + $0x5e0] sm:$0xff] }
  0xdf   :  { %3186 = vst [vmem:[%s6413_s2 + $0xdd0] sm:$0xff] %v3185_v58  ;;  %3188 = vst [vmem:[%s6413_s2 + $0xdd8] sm:$0xff] %v3187_v59  ;;  %v3191_v61 = vld [vmem:[%s6414_s1 + $0x5e8] sm:$0xff]  ;;  %v3193_v62 = vld [vmem:[%s6414_s1 + $0x5f0] sm:$0xff] }
  0xe0   :  { %3190 = vst [vmem:[%s6413_s2 + $0xde0] sm:$0xff] %v3189_v60  ;;  %3192 = vst [vmem:[%s6413_s2 + $0xde8] sm:$0xff] %v3191_v61  ;;  %v3195_v63 = vld [vmem:[%s6414_s1 + $0x5f8] sm:$0xff]  ;;  %v3197_v0 = vld [vmem:[%s6414_s1 + $0x600] sm:$0xff] }
  0xe1   :  { %3194 = vst [vmem:[%s6413_s2 + $0xdf0] sm:$0xff] %v3193_v62  ;;  %v3199_v1 = vld [vmem:[%s6414_s1 + $0x608] sm:$0xff]  ;;  %3196 = vst [vmem:[%s6413_s2 + $0xdf8] sm:$0xff] %v3195_v63  ;;  %v3201_v2 = vld [vmem:[%s6414_s1 + $0x610] sm:$0xff] }
  0xe2   :  { %3198 = vst [vmem:[%s6413_s2 + $0xe00] sm:$0xff] %v3197_v0  ;;  %3200 = vst [vmem:[%s6413_s2 + $0xe08] sm:$0xff] %v3199_v1  ;;  %v3203_v3 = vld [vmem:[%s6414_s1 + $0x618] sm:$0xff]  ;;  %v3205_v4 = vld [vmem:[%s6414_s1 + $0x620] sm:$0xff] }
  0xe3   :  { %3202 = vst [vmem:[%s6413_s2 + $0xe10] sm:$0xff] %v3201_v2  ;;  %3204 = vst [vmem:[%s6413_s2 + $0xe18] sm:$0xff] %v3203_v3  ;;  %v3207_v5 = vld [vmem:[%s6414_s1 + $0x628] sm:$0xff]  ;;  %v3209_v6 = vld [vmem:[%s6414_s1 + $0x630] sm:$0xff] }
  0xe4   :  { %3206 = vst [vmem:[%s6413_s2 + $0xe20] sm:$0xff] %v3205_v4  ;;  %v3211_v7 = vld [vmem:[%s6414_s1 + $0x638] sm:$0xff]  ;;  %3208 = vst [vmem:[%s6413_s2 + $0xe28] sm:$0xff] %v3207_v5  ;;  %v3213_v8 = vld [vmem:[%s6414_s1 + $0x640] sm:$0xff] }
  0xe5   :  { %3210 = vst [vmem:[%s6413_s2 + $0xe30] sm:$0xff] %v3209_v6  ;;  %3212 = vst [vmem:[%s6413_s2 + $0xe38] sm:$0xff] %v3211_v7  ;;  %v3215_v9 = vld [vmem:[%s6414_s1 + $0x648] sm:$0xff]  ;;  %v3217_v10 = vld [vmem:[%s6414_s1 + $0x650] sm:$0xff] }
  0xe6   :  { %3214 = vst [vmem:[%s6413_s2 + $0xe40] sm:$0xff] %v3213_v8  ;;  %3216 = vst [vmem:[%s6413_s2 + $0xe48] sm:$0xff] %v3215_v9  ;;  %v3219_v11 = vld [vmem:[%s6414_s1 + $0x658] sm:$0xff]  ;;  %v3221_v12 = vld [vmem:[%s6414_s1 + $0x660] sm:$0xff] }
  0xe7   :  { %3218 = vst [vmem:[%s6413_s2 + $0xe50] sm:$0xff] %v3217_v10  ;;  %v3223_v13 = vld [vmem:[%s6414_s1 + $0x668] sm:$0xff]  ;;  %3220 = vst [vmem:[%s6413_s2 + $0xe58] sm:$0xff] %v3219_v11  ;;  %v3225_v14 = vld [vmem:[%s6414_s1 + $0x670] sm:$0xff] }
  0xe8   :  { %3222 = vst [vmem:[%s6413_s2 + $0xe60] sm:$0xff] %v3221_v12  ;;  %3224 = vst [vmem:[%s6413_s2 + $0xe68] sm:$0xff] %v3223_v13  ;;  %v3227_v15 = vld [vmem:[%s6414_s1 + $0x678] sm:$0xff]  ;;  %v3229_v16 = vld [vmem:[%s6414_s1 + $0x680] sm:$0xff] }
  0xe9   :  { %3226 = vst [vmem:[%s6413_s2 + $0xe70] sm:$0xff] %v3225_v14  ;;  %3228 = vst [vmem:[%s6413_s2 + $0xe78] sm:$0xff] %v3227_v15  ;;  %v3231_v17 = vld [vmem:[%s6414_s1 + $0x688] sm:$0xff]  ;;  %v3233_v18 = vld [vmem:[%s6414_s1 + $0x690] sm:$0xff] }
  0xea   :  { %3230 = vst [vmem:[%s6413_s2 + $0xe80] sm:$0xff] %v3229_v16  ;;  %v3235_v19 = vld [vmem:[%s6414_s1 + $0x698] sm:$0xff]  ;;  %3232 = vst [vmem:[%s6413_s2 + $0xe88] sm:$0xff] %v3231_v17  ;;  %v3237_v20 = vld [vmem:[%s6414_s1 + $0x6a0] sm:$0xff] }
  0xeb   :  { %3234 = vst [vmem:[%s6413_s2 + $0xe90] sm:$0xff] %v3233_v18  ;;  %3236 = vst [vmem:[%s6413_s2 + $0xe98] sm:$0xff] %v3235_v19  ;;  %v3239_v21 = vld [vmem:[%s6414_s1 + $0x6a8] sm:$0xff]  ;;  %v3241_v22 = vld [vmem:[%s6414_s1 + $0x6b0] sm:$0xff] }
  0xec   :  { %3238 = vst [vmem:[%s6413_s2 + $0xea0] sm:$0xff] %v3237_v20  ;;  %3240 = vst [vmem:[%s6413_s2 + $0xea8] sm:$0xff] %v3239_v21  ;;  %v3243_v23 = vld [vmem:[%s6414_s1 + $0x6b8] sm:$0xff]  ;;  %v3245_v24 = vld [vmem:[%s6414_s1 + $0x6c0] sm:$0xff] }
  0xed   :  { %3242 = vst [vmem:[%s6413_s2 + $0xeb0] sm:$0xff] %v3241_v22  ;;  %v3247_v25 = vld [vmem:[%s6414_s1 + $0x6c8] sm:$0xff]  ;;  %3244 = vst [vmem:[%s6413_s2 + $0xeb8] sm:$0xff] %v3243_v23  ;;  %v3249_v26 = vld [vmem:[%s6414_s1 + $0x6d0] sm:$0xff] }
  0xee   :  { %3246 = vst [vmem:[%s6413_s2 + $0xec0] sm:$0xff] %v3245_v24  ;;  %3248 = vst [vmem:[%s6413_s2 + $0xec8] sm:$0xff] %v3247_v25  ;;  %v3251_v27 = vld [vmem:[%s6414_s1 + $0x6d8] sm:$0xff]  ;;  %v3253_v28 = vld [vmem:[%s6414_s1 + $0x6e0] sm:$0xff] }
  0xef   :  { %3250 = vst [vmem:[%s6413_s2 + $0xed0] sm:$0xff] %v3249_v26  ;;  %3252 = vst [vmem:[%s6413_s2 + $0xed8] sm:$0xff] %v3251_v27  ;;  %v3255_v29 = vld [vmem:[%s6414_s1 + $0x6e8] sm:$0xff]  ;;  %v3257_v30 = vld [vmem:[%s6414_s1 + $0x6f0] sm:$0xff] }
  0xf0   :  { %3254 = vst [vmem:[%s6413_s2 + $0xee0] sm:$0xff] %v3253_v28  ;;  %v3259_v31 = vld [vmem:[%s6414_s1 + $0x6f8] sm:$0xff]  ;;  %3256 = vst [vmem:[%s6413_s2 + $0xee8] sm:$0xff] %v3255_v29  ;;  %v3261_v32 = vld [vmem:[%s6414_s1 + $0x700] sm:$0xff] }
  0xf1   :  { %3258 = vst [vmem:[%s6413_s2 + $0xef0] sm:$0xff] %v3257_v30  ;;  %3260 = vst [vmem:[%s6413_s2 + $0xef8] sm:$0xff] %v3259_v31  ;;  %v3263_v33 = vld [vmem:[%s6414_s1 + $0x708] sm:$0xff]  ;;  %v3265_v34 = vld [vmem:[%s6414_s1 + $0x710] sm:$0xff] }
  0xf2   :  { %3262 = vst [vmem:[%s6413_s2 + $0xf00] sm:$0xff] %v3261_v32  ;;  %3264 = vst [vmem:[%s6413_s2 + $0xf08] sm:$0xff] %v3263_v33  ;;  %v3267_v35 = vld [vmem:[%s6414_s1 + $0x718] sm:$0xff]  ;;  %v3269_v36 = vld [vmem:[%s6414_s1 + $0x720] sm:$0xff] }
  0xf3   :  { %3266 = vst [vmem:[%s6413_s2 + $0xf10] sm:$0xff] %v3265_v34  ;;  %v3271_v37 = vld [vmem:[%s6414_s1 + $0x728] sm:$0xff]  ;;  %3268 = vst [vmem:[%s6413_s2 + $0xf18] sm:$0xff] %v3267_v35  ;;  %v3273_v38 = vld [vmem:[%s6414_s1 + $0x730] sm:$0xff] }
  0xf4   :  { %3270 = vst [vmem:[%s6413_s2 + $0xf20] sm:$0xff] %v3269_v36  ;;  %3272 = vst [vmem:[%s6413_s2 + $0xf28] sm:$0xff] %v3271_v37  ;;  %v3275_v39 = vld [vmem:[%s6414_s1 + $0x738] sm:$0xff]  ;;  %v3277_v40 = vld [vmem:[%s6414_s1 + $0x740] sm:$0xff] }
  0xf5   :  { %3274 = vst [vmem:[%s6413_s2 + $0xf30] sm:$0xff] %v3273_v38  ;;  %3276 = vst [vmem:[%s6413_s2 + $0xf38] sm:$0xff] %v3275_v39  ;;  %v3279_v41 = vld [vmem:[%s6414_s1 + $0x748] sm:$0xff]  ;;  %v3281_v42 = vld [vmem:[%s6414_s1 + $0x750] sm:$0xff] }
  0xf6   :  { %3278 = vst [vmem:[%s6413_s2 + $0xf40] sm:$0xff] %v3277_v40  ;;  %v3283_v43 = vld [vmem:[%s6414_s1 + $0x758] sm:$0xff]  ;;  %3280 = vst [vmem:[%s6413_s2 + $0xf48] sm:$0xff] %v3279_v41  ;;  %v3285_v44 = vld [vmem:[%s6414_s1 + $0x760] sm:$0xff] }
  0xf7   :  { %3282 = vst [vmem:[%s6413_s2 + $0xf50] sm:$0xff] %v3281_v42  ;;  %3284 = vst [vmem:[%s6413_s2 + $0xf58] sm:$0xff] %v3283_v43  ;;  %v3287_v45 = vld [vmem:[%s6414_s1 + $0x768] sm:$0xff]  ;;  %v3289_v46 = vld [vmem:[%s6414_s1 + $0x770] sm:$0xff] }
  0xf8   :  { %3286 = vst [vmem:[%s6413_s2 + $0xf60] sm:$0xff] %v3285_v44  ;;  %3288 = vst [vmem:[%s6413_s2 + $0xf68] sm:$0xff] %v3287_v45  ;;  %v3291_v47 = vld [vmem:[%s6414_s1 + $0x778] sm:$0xff]  ;;  %v3293_v48 = vld [vmem:[%s6414_s1 + $0x780] sm:$0xff] }
  0xf9   :  { %3290 = vst [vmem:[%s6413_s2 + $0xf70] sm:$0xff] %v3289_v46  ;;  %v3295_v49 = vld [vmem:[%s6414_s1 + $0x788] sm:$0xff]  ;;  %3292 = vst [vmem:[%s6413_s2 + $0xf78] sm:$0xff] %v3291_v47  ;;  %v3297_v50 = vld [vmem:[%s6414_s1 + $0x790] sm:$0xff] }
  0xfa   :  { %3294 = vst [vmem:[%s6413_s2 + $0xf80] sm:$0xff] %v3293_v48  ;;  %3296 = vst [vmem:[%s6413_s2 + $0xf88] sm:$0xff] %v3295_v49  ;;  %v3299_v51 = vld [vmem:[%s6414_s1 + $0x798] sm:$0xff]  ;;  %v3301_v52 = vld [vmem:[%s6414_s1 + $0x7a0] sm:$0xff] }
  0xfb   :  { %3298 = vst [vmem:[%s6413_s2 + $0xf90] sm:$0xff] %v3297_v50  ;;  %3300 = vst [vmem:[%s6413_s2 + $0xf98] sm:$0xff] %v3299_v51  ;;  %v3303_v53 = vld [vmem:[%s6414_s1 + $0x7a8] sm:$0xff]  ;;  %v3305_v54 = vld [vmem:[%s6414_s1 + $0x7b0] sm:$0xff] }
  0xfc   :  { %3302 = vst [vmem:[%s6413_s2 + $0xfa0] sm:$0xff] %v3301_v52  ;;  %v3307_v55 = vld [vmem:[%s6414_s1 + $0x7b8] sm:$0xff]  ;;  %3304 = vst [vmem:[%s6413_s2 + $0xfa8] sm:$0xff] %v3303_v53  ;;  %v3309_v56 = vld [vmem:[%s6414_s1 + $0x7c0] sm:$0xff] }
  0xfd   :  { %3306 = vst [vmem:[%s6413_s2 + $0xfb0] sm:$0xff] %v3305_v54  ;;  %3308 = vst [vmem:[%s6413_s2 + $0xfb8] sm:$0xff] %v3307_v55  ;;  %v3311_v57 = vld [vmem:[%s6414_s1 + $0x7c8] sm:$0xff]  ;;  %v3313_v58 = vld [vmem:[%s6414_s1 + $0x7d0] sm:$0xff] }
  0xfe   :  { %3310 = vst [vmem:[%s6413_s2 + $0xfc0] sm:$0xff] %v3309_v56  ;;  %3312 = vst [vmem:[%s6413_s2 + $0xfc8] sm:$0xff] %v3311_v57  ;;  %v3315_v59 = vld [vmem:[%s6414_s1 + $0x7d8] sm:$0xff]  ;;  %v3317_v60 = vld [vmem:[%s6414_s1 + $0x7e0] sm:$0xff] }
  0xff   :  { %3314 = vst [vmem:[%s6413_s2 + $0xfd0] sm:$0xff] %v3313_v58  ;;  %v3319_v61 = vld [vmem:[%s6414_s1 + $0x7e8] sm:$0xff]  ;;  %3316 = vst [vmem:[%s6413_s2 + $0xfd8] sm:$0xff] %v3315_v59  ;;  %v3321_v62 = vld [vmem:[%s6414_s1 + $0x7f0] sm:$0xff] }
 0x100   :  { %3318 = vst [vmem:[%s6413_s2 + $0xfe0] sm:$0xff] %v3317_v60  ;;  %3320 = vst [vmem:[%s6413_s2 + $0xfe8] sm:$0xff] %v3319_v61  ;;  %v3323_v63 = vld [vmem:[%s6414_s1 + $0x7f8] sm:$0xff] }
 0x101   :  { %3322 = vst [vmem:[%s6413_s2 + $0xff0] sm:$0xff] %v3321_v62  ;;  %3324 = vst [vmem:[%s6413_s2 + $0xff8] sm:$0xff] %v3323_v63 }

// kernel: complex_conv_transpose2d.1
= control target key start
LH: loop header
LB: loop body
LE: loop exit
PB: predicated region body
PF: predicated region fallthrough
CT: control target
= control target key end

     0   :  { %8 = vsyncpa [#allocation3], 0  ;;  %s5933_s0 = inlined_call_operand.vmem [shape: bf16[2,256,32], index: 0, kind: input, shape index: {}]   ;;  %s5934_s1 = inlined_call_operand.hbm [shape: bf16[32,640], index: 1, kind: input, shape index: {}]   ;;  %s5935_s2 = inlined_call_operand.hbm [shape: f32[1,64], index: 2, kind: input, shape index: {}]   ;;  %s5936_s3 = inlined_call_operand.vmem [shape: f32[8,17,17,64], index: 3, kind: output, shape index: {}]  }
   0x1   :  { %9 = vsyncpa [#allocation5], 0  ;;  %s3408_s12 = smov 0  }
   0x2 LB: > { %s3414_s13 = sadd.s32 4294967295, %s3380_s12   ;;  %p2651_p0 = scmp.ge.s32.totalorder %s3380_s12, 1  ;;  %s3380_s12 = sphi %s3408_s12, %s15_s12  }
   0x3   : > { %p114_p1 = scmp.lt.s32.totalorder %s3380_s12, 3  ;;  %s3382_s14 = smov [#allocation2]  }
   0x4   : > { %s126_s15 = sshll.u32 %s3382_s14, 4  ;;  %p5937_p3 = scmp.eq.s32.totalorder %s3414_s13, 0  ;;  %s127_s15 = int_to_ptr.vmem [resolvable:$true] %s126_s15 }
   0x5   : > { %p3418_p2 = pnand %p2651_p0, %p114_p1  ;;  %s3383_s17 = smov [#allocation4]  }
   0x6   : > { %s140_s18 = sshll.u32 %s3383_s17, 4  ;;  %s3310_s22 = scalar_lea.hbm %s5934_s1, 1280  ;;  %s3431_s18 = int_to_ptr.vmem [resolvable:$true] %s140_s18 }
   0x7   : > { %s5985_s16 = scalar_select %p3418_p2, 1, 0 }
   0x8   : > { %p3255_p4 = pneg %p3418_p2  ;;  %p3311_p6 = scmp.ne.s32.totalorder %s5934_s1, %s3310_s22 }
   0x9   : > { %p3317_p10 = scmp.lt.u32.totalorder %s3310_s22, %s5934_s1 }
   0xa   : > { %p3427_p5 = pnand %p5937_p3, %p3255_p4 }
   0xc   : > { %p3312_p7 = pneg %p3427_p5 }
   0xe   : > { %p3313_p8 = pnand %p3312_p7, %p3311_p6 }
  0x10   : > { %p3314_p9 = pneg %p3313_p8 }
  0x12   : > { %p3319_p11 = pnand %p3317_p10, %p3314_p9 }
  0x14   : > { %3322 = shalt.err (!%p3319_p11)
}
  0x15   : > { %s3323_s27 = scalar_lea.vmem %s127_s15, 1280  ;;  %p3331_p1 = scmp.lt.s32.totalorder %s127_s15, %s127_s15 }
  0x16   : > { %p3324_p12 = scmp.ne.s32.totalorder %s127_s15, %s3323_s27  ;;  %p3332_p4 = scmp.lt.s32.totalorder %s3323_s27, %s3323_s27 }
  0x18   : > { %p3326_p13 = pnand %p3324_p12, %p3312_p7  ;;  %p3333_p3 = por %p3332_p4, %p3331_p1 }
  0x1a   : > { %p3327_p0 = pneg %p3326_p13 }
  0x1c   : > { %p3334_p2 = pnand %p3333_p3, %p3327_p0 }
  0x1e   : > { %3337 = shalt.err (!%p3334_p2)
}
  0x1f   : > { %s3384_s28 = smov 320   ;;  %s3385_s29 = smov 20  }
  0x20   : > { %3258 = dma.hbm_to_vmem [thread:$0]  (!%p3427_p5), %s5934_s1, 1280, %s127_s15, [#allocation3], %s3384_s28, %s3384_s28, %s3385_s29  }
  0x21   : > { %s3338_s7 = scalar_lea.hbm %s5935_s2, 16 }
  0x22   : > { %p3339_p6 = scmp.ne.s32.totalorder %s5935_s2, %s3338_s7  ;;  %p3345_p8 = scmp.lt.u32.totalorder %s3338_s7, %s5935_s2 }
  0x24   : > { %p3341_p2 = pnand %p3339_p6, %p3312_p7 }
  0x26   : > { %p3342_p3 = pneg %p3341_p2 }
  0x28   : > { %p3347_p9 = pnand %p3345_p8, %p3342_p3 }
  0x2a   : > { %3350 = shalt.err (!%p3347_p9)
}
  0x2b   : > { %s3351_s14 = scalar_lea.vmem %s3431_s18, 16  ;;  %s3358_s15 = scalar_lea.vmem %s3431_s18, 32 }
  0x2c   : > { %p3352_p10 = scmp.ne.s32.totalorder %s3431_s18, %s3351_s14  ;;  %p3359_p13 = scmp.lt.s32.totalorder %s3431_s18, %s3431_s18 }
  0x2d   : > { %p3360_p0 = scmp.lt.s32.totalorder %s3358_s15, %s3351_s14 }
  0x2e   : > { %p3354_p11 = pnand %p3352_p10, %p3312_p7 }
  0x2f   : > { %p3361_p1 = por %p3360_p0, %p3359_p13 }
  0x30   : > { %p3355_p12 = pneg %p3354_p11 }
  0x32   : > { %p3362_p4 = pnand %p3361_p1, %p3355_p12 }
  0x34   : > { %3365 = shalt.err (!%p3362_p4)
}
  0x35   : > { %3261 = dma.hbm_to_vmem [thread:$0]  (!%p3427_p5), %s5935_s2, 16, %s3431_s18, [#allocation5]  }
  0x36   : > { %p5987_p6 = scmp.ne.s32.totalorder %s5985_s16, 0 }
  0x38   : > { %161 = sbr.rel (%p5987_p6) target bundleno = 664 (0x298), region = 32 }
  0x3f   : > { %p5988_p7 = scmp.eq.s32.totalorder %s3414_s13, 0 }
  0x41   : > { %3371 = dma.done.wait (%p5988_p7), [#allocation3], 1280   ;;  %p5989_p2 = pmov %p5988_p7 }
  0x43   : > { %3373 = vsyncadd (%p5989_p2), [#allocation3], 4294966016  ;;  %p5990_p3 = pmov %p5989_p2 }
  0x44   : > { %p5991_p8 = pmov %p5989_p2 }
  0x45   : > { %3375 = dma.done.wait (%p5990_p3), [#allocation5], 16  }
  0x46   : > { %3377 = vsyncadd (%p5991_p8), [#allocation5], 4294967280  ;;  %p190_p9 = scmp.lt.s32.totalorder %s3414_s13, 1  ;;  %v3386_v0 = vmov 0   ;;  %v3280_v1 = vld [vmem:[#allocation2 + $0x4] ss:$20 sps:$4 sm:$0xff]  }
  0x47   : > { %460 = vmatprep.mubr.bf16.mxu0 %v3386_v0  ;;  %580 = vmatprep.mubr.bf16.mxu1 %v3386_v0  ;;  %v3282_v2 = vld [vmem:[#allocation2] ss:$20 sps:$4 sm:$0xff]   ;;  %v3285_v4 = vld [vmem:[#allocation2 + $0x28] ss:$20 sps:$4 sm:$0xff]   ;;  %vm379_vm0 = vcmask 261120   ;;  %s2660_s23 = sshll.u32 %s3414_s13, 2 }
  0x48   : > { %s191_s16 = scalar_select %p190_p9, %s3414_s13, 1  ;;  %428 = vmatprep.subr.bf16.mxu0 %v3280_v1  ;;  %3242 = vmatprep.subr.bf16.mxu1 %v3280_v1  ;;  %v3283_v3 = vld [vmem:[#allocation2 + $0x2c] ss:$20 sps:$4 sm:$0xff]   ;;  %v3292_v7 = vld [vmem:[#allocation2 + $0x8] ss:$20 sps:$4 sm:$0xff]   ;;  %vm982_vm1 = vcmask 523264  }
  0x49   : > { %429 = vmatpush1.bf16.msra.mxu0 %v3282_v2  ;;  %3244 = vmatpush1.bf16.msra.mxu1 %v3282_v2  ;;  %v3294_v8 = vld [vmem:[#allocation2 + $0xc] ss:$20 sps:$4 sm:$0xff]   ;;  %v3297_v10 = vld [vmem:[#allocation2 + $0x30] ss:$20 sps:$4 sm:$0xff]   ;;  %v3299_v11 = vld [vmem:[#allocation2 + $0x34] ss:$20 sps:$4 sm:$0xff]  }
  0x4a   : > { %s3187_s18 = sshll.u32 %s191_s16, 7  ;;  %430 = vmatprep.subr.bf16.mxu0 %v3283_v3  ;;  %3243 = vmatprep.subr.bf16.mxu1 %v3283_v3  ;;  %p196_p5 = scmp.lt.s32.totalorder %s2660_s23, 7  ;;  %v3606_v23 = vld [vmem:[#allocation4] ss:$0 sm:$0xff]  ;;  %v3309_v27 = vld [vmem:[#allocation2 + $0x38] ss:$20 sps:$4 sm:$0xff]  }
  0x4b   : > { %s3498_s22 = scalar_lea.vmem %s5933_s0, %s3187_s18  ;;  %v3308_v26 = vld [vmem:[#allocation2 + $0x10] ss:$20 sps:$4 sm:$0xff]   ;;  %vm985_vm2 = vcmask 516096   ;;  %s3387_s27 = smov 64  }
  0x4c   : > { %v3501_v5 = vld [vmem:[%s3498_s22] sm:$0xff]   ;;  %v3513_v9 = vld [vmem:[%s3498_s22 + $0x8] sm:$0xff]   ;;  %v3525_v13 = vld [vmem:[%s3498_s22 + $0x10] sm:$0xff]   ;;  %s6132_s23 = smov (!%p196_p5, %s2660_s23), 7 }
  0x4d   : > { %v3504_v6 = vld [vmem:[%s3498_s22 + $0x60] sm:$0xff]   ;;  %431 = vmatpush1.bf16.msra.mxu0 %v3285_v4  ;;  %3245 = vmatpush1.bf16.msra.mxu1 %v3285_v4  ;;  %v3516_v12 = vld [vmem:[%s3498_s22 + $0x68] sm:$0xff]   ;;  %v3528_v14 = vld [vmem:[%s3498_s22 + $0x70] sm:$0xff]   ;;  %s3246_s13 = smul.u32 408, %s6132_s23 }
  0x4e   : > { %621 = vmatprep.subr.bf16.mxu1 %v3294_v8  ;;  %v3537_v15 = vld [vmem:[%s3498_s22 + $0x78] sm:$0xff]   ;;  %v3549_v17 = vld [vmem:[%s3498_s22 + $0x20] sm:$0xff]   ;;  %v3558_v18 = vld [vmem:[%s3498_s22 + $0x28] sm:$0xff]   ;;  %3206 = vmatprep.subr.bf16.mxu0 %v3308_v26 }
  0x4f   : > { %v3540_v16 = vld [vmem:[%s3498_s22 + $0x18] sm:$0xff]   ;;  %v3567_v19 = vld [vmem:[%s3498_s22 + $0x30] sm:$0xff]   ;;  %v3586_v21 = vld [vmem:[%s3498_s22 + $0x40] sm:$0xff]   ;;  %s3600_s26 = scalar_lea.vmem %s5936_s3, %s3246_s13 }
  0x50   : > { %2688 = vmatmul.mubr.msk.bf16.vlgmr.msra.gmra.mrb[0].mxu0 %vm379_vm0, %v3501_v5  ;;  %2700 = vmatmul.mubr.msk.bf16.vlgmr.msra.gmra.mrb[0].mxu1 %vm379_vm0, %v3504_v6  ;;  %v3576_v20 = vld [vmem:[%s3498_s22 + $0x38] sm:$0xff]   ;;  %v3595_v22 = vld [vmem:[%s3498_s22 + $0x48] sm:$0xff]   ;;  %983 = vst.msk [vmem:[%s3600_s26] sm:$0xff] %vm982_vm1, %v3606_v23  ;;  %984 = vst.msk [vmem:[%s3600_s26 + $0x8] sm:$0xff] %vm982_vm1, %v3606_v23 }
  0x51   : > { %470 = vmatprep.mubr.bf16.mxu0 %v3386_v0  ;;  %590 = vmatprep.mubr.bf16.mxu1 %v3386_v0  ;;  %987 = vst.msk [vmem:[%s3600_s26 + $0x18] sm:$0xff] %vm982_vm1, %v3606_v23  ;;  %988 = vst.msk [vmem:[%s3600_s26 + $0x20] sm:$0xff] %vm982_vm1, %v3606_v23  ;;  %v3306_v24 = vld [vmem:[%s3498_s22 + $0x50] sm:$0xff]   ;;  %v3307_v25 = vld [vmem:[%s3498_s22 + $0x58] sm:$0xff]  }
  0x52   : > { %622 = vmatpush1.bf16.msra.mxu1 %v3292_v7  ;;  %990 = vst.msk [vmem:[%s3600_s26 + $0x30] sm:$0xff] %vm982_vm1, %v3606_v23  ;;  %991 = vst.msk [vmem:[%s3600_s26 + $0x38] sm:$0xff] %vm982_vm1, %v3606_v23  ;;  %3207 = vmatpush3.bf16.msra.mxu0 %v3308_v26 }
  0x53   : > { %623 = vmatprep.subr.bf16.mxu1 %v3299_v11  ;;  %993 = vst.msk [vmem:[%s3600_s26 + $0x48] sm:$0xff] %vm982_vm1, %v3606_v23  ;;  %994 = vst.msk [vmem:[%s3600_s26 + $0x50] sm:$0xff] %vm982_vm1, %v3606_v23  ;;  %3208 = vmatprep.subr.bf16.mxu0 %v3309_v27 }
  0x54   : > { %996 = vst.msk [vmem:[%s3600_s26 + $0x60] sm:$0xff] %vm982_vm1, %v3606_v23  ;;  %997 = vst.msk [vmem:[%s3600_s26 + $0x68] sm:$0xff] %vm982_vm1, %v3606_v23 }
  0x55   : > { %999 = vst.msk [vmem:[%s3600_s26 + $0x78] sm:$0xff] %vm982_vm1, %v3606_v23  ;;  %1000 = vst.msk [vmem:[%s3600_s26 + $0x80] sm:$0xff] %vm982_vm1, %v3606_v23 }
  0x56   : > { %624 = vmatpush1.bf16.msra.mxu1 %v3297_v10  ;;  %1002 = vst.msk [vmem:[%s3600_s26 + $0x90] sm:$0xff] %vm982_vm1, %v3606_v23  ;;  %1003 = vst.msk [vmem:[%s3600_s26 + $0x98] sm:$0xff] %vm982_vm1, %v3606_v23  ;;  %3209 = vmatpush3.bf16.msra.mxu0 %v3309_v27 }
  0x57   : > { %1005 = vst.msk [vmem:[%s3600_s26 + $0xa8] sm:$0xff] %vm982_vm1, %v3606_v23  ;;  %1006 = vst.msk [vmem:[%s3600_s26 + $0xb0] sm:$0xff] %vm982_vm1, %v3606_v23  ;;  %v1188_v28 = vld [vmem:[%s3600_s26] sm:$0xff]  ;;  %v1189_v32 = vld [vmem:[%s3600_s26 + $0x8] sm:$0xff] }
  0x58   : > { %2689 = vmatmul.mubr.msk.bf16.gmra.mrb[4].mxu0 %vm379_vm0, %v3513_v9  ;;  %2701 = vmatmul.mubr.msk.bf16.gmra.mrb[4].mxu1 %vm379_vm0, %v3516_v12  ;;  %1008 = vst.msk [vmem:[%s3600_s26 + $0xc0] sm:$0xff] %vm982_vm1, %v3606_v23  ;;  %1009 = vst.msk [vmem:[%s3600_s26 + $0xc8] sm:$0xff] %vm982_vm1, %v3606_v23  ;;  %v1190_v44 = vld [vmem:[%s3600_s26 + $0x18] sm:$0xff]  ;;  %v1191_v47 = vld [vmem:[%s3600_s26 + $0x20] sm:$0xff] }
  0x59   : > { %480 = vmatprep.mubr.bf16.mxu0 %v3386_v0  ;;  %600 = vmatprep.mubr.bf16.mxu1 %v3386_v0  ;;  %1011 = vst.msk [vmem:[%s3600_s26 + $0xd8] sm:$0xff] %vm982_vm1, %v3606_v23  ;;  %1012 = vst.msk [vmem:[%s3600_s26 + $0xe0] sm:$0xff] %vm982_vm1, %v3606_v23  ;;  %v1192_v60 = vld [vmem:[%s3600_s26 + $0x30] sm:$0xff]  ;;  %v1193_v63 = vld [vmem:[%s3600_s26 + $0x38] sm:$0xff] }
  0x5a   : > { %1014 = vst.msk [vmem:[%s3600_s26 + $0xf0] sm:$0xff] %vm982_vm1, %v3606_v23  ;;  %1015 = vst.msk [vmem:[%s3600_s26 + $0xf8] sm:$0xff] %vm982_vm1, %v3606_v23 }
  0x5b   : > { %1017 = vst.msk [vmem:[%s3600_s26 + $0x108] sm:$0xff] %vm982_vm1, %v3606_v23  ;;  %1018 = vst.msk [vmem:[%s3600_s26 + $0x110] sm:$0xff] %vm982_vm1, %v3606_v23 }
  0x5c   : > { %1020 = vst.msk [vmem:[%s3600_s26 + $0x120] sm:$0xff] %vm982_vm1, %v3606_v23  ;;  %1021 = vst.msk [vmem:[%s3600_s26 + $0x128] sm:$0xff] %vm982_vm1, %v3606_v23 }
  0x5d   : > { %1023 = vst.msk [vmem:[%s3600_s26 + $0x138] sm:$0xff] %vm982_vm1, %v3606_v23  ;;  %1024 = vst.msk [vmem:[%s3600_s26 + $0x140] sm:$0xff] %vm982_vm1, %v3606_v23 }
  0x5e   : > { %1026 = vst.msk [vmem:[%s3600_s26 + $0x150] sm:$0xff] %vm982_vm1, %v3606_v23  ;;  %1027 = vst.msk [vmem:[%s3600_s26 + $0x158] sm:$0xff] %vm982_vm1, %v3606_v23 }
  0x5f   : > { %1029 = vst.msk [vmem:[%s3600_s26 + $0x168] sm:$0xff] %vm982_vm1, %v3606_v23  ;;  %1030 = vst.msk [vmem:[%s3600_s26 + $0x170] sm:$0xff] %vm982_vm1, %v3606_v23 }
  0x60   : > { %2690 = vmatmul.mubr.msk.bf16.gmra.mrb[8].mxu0 %vm379_vm0, %v3525_v13  ;;  %2702 = vmatmul.mubr.msk.bf16.gmra.mrb[8].mxu1 %vm379_vm0, %v3528_v14  ;;  %1032 = vst.msk [vmem:[%s3600_s26 + $0x180] sm:$0xff] %vm982_vm1, %v3606_v23  ;;  %1033 = vst.msk [vmem:[%s3600_s26 + $0x188] sm:$0xff] %vm982_vm1, %v3606_v23 }
  0x61   : > { %610 = vmatprep.mubr.bf16.mxu1 %v3386_v0  ;;  %490 = vmatprep.mubr.bf16.mxu0 %v3386_v0  ;;  %1035 = vst.msk [vmem:[%s3600_s26 + $0x198] sm:$0xff] %vm982_vm1, %v3606_v23  ;;  %1071 = vst.msk [vmem:[%s3600_s26 + $0x2b8] sm:$0xff] %vm982_vm1, %v3606_v23 }
  0x62   : > { %1036 = vst.msk [vmem:[%s3600_s26 + $0x1a0] sm:$0xff] %vm982_vm1, %v3606_v23  ;;  %1038 = vst.msk [vmem:[%s3600_s26 + $0x1b0] sm:$0xff] %vm982_vm1, %v3606_v23 }
  0x63   : > { %1039 = vst.msk [vmem:[%s3600_s26 + $0x1b8] sm:$0xff] %vm982_vm1, %v3606_v23  ;;  %1041 = vst.msk [vmem:[%s3600_s26 + $0x1c8] sm:$0xff] %vm982_vm1, %v3606_v23  ;;  %v1212_v29 = vld [vmem:[%s3600_s26 + $0x120] sm:$0xff]  ;;  %v1213_v33 = vld [vmem:[%s3600_s26 + $0x128] sm:$0xff] }
  0x64   : > { %1042 = vst.msk [vmem:[%s3600_s26 + $0x1d0] sm:$0xff] %vm982_vm1, %v3606_v23  ;;  %1044 = vst.msk [vmem:[%s3600_s26 + $0x1e0] sm:$0xff] %vm982_vm1, %v3606_v23  ;;  %v1214_v45 = vld [vmem:[%s3600_s26 + $0x138] sm:$0xff]  ;;  %v1215_v49 = vld [vmem:[%s3600_s26 + $0x140] sm:$0xff] }
  0x65   : > { %1045 = vst.msk [vmem:[%s3600_s26 + $0x1e8] sm:$0xff] %vm982_vm1, %v3606_v23  ;;  %1047 = vst.msk [vmem:[%s3600_s26 + $0x1f8] sm:$0xff] %vm982_vm1, %v3606_v23  ;;  %v1216_v61 = vld [vmem:[%s3600_s26 + $0x150] sm:$0xff]  ;;  %v1217_v1 = vld [vmem:[%s3600_s26 + $0x158] sm:$0xff] }
  0x66   : > { %1048 = vst.msk [vmem:[%s3600_s26 + $0x200] sm:$0xff] %vm982_vm1, %v3606_v23  ;;  %1050 = vst.msk [vmem:[%s3600_s26 + $0x210] sm:$0xff] %vm982_vm1, %v3606_v23 }
  0x67   : > { %1051 = vst.msk [vmem:[%s3600_s26 + $0x218] sm:$0xff] %vm982_vm1, %v3606_v23  ;;  %1053 = vst.msk [vmem:[%s3600_s26 + $0x228] sm:$0xff] %vm982_vm1, %v3606_v23 }
  0x68   : > { %2703 = vmatmul.mubr.msk.bf16.gmra.mrb[12].mxu1 %vm379_vm0, %v3537_v15  ;;  %2691 = vmatmul.mubr.msk.bf16.gmra.mrb[12].mxu0 %vm379_vm0, %v3540_v16  ;;  %1054 = vst.msk [vmem:[%s3600_s26 + $0x230] sm:$0xff] %vm982_vm1, %v3606_v23  ;;  %1056 = vst.msk [vmem:[%s3600_s26 + $0x240] sm:$0xff] %vm982_vm1, %v3606_v23 }
  0x69   : > { %653 = vmatprep.mubr.bf16.mxu1 %v3386_v0  ;;  %500 = vmatprep.mubr.bf16.mxu0 %v3386_v0  ;;  %1057 = vst.msk [vmem:[%s3600_s26 + $0x248] sm:$0xff] %vm982_vm1, %v3606_v23  ;;  %1059 = vst.msk [vmem:[%s3600_s26 + $0x258] sm:$0xff] %vm982_vm1, %v3606_v23 }
  0x6a   : > { %1060 = vst.msk [vmem:[%s3600_s26 + $0x260] sm:$0xff] %vm982_vm1, %v3606_v23  ;;  %1062 = vst.msk [vmem:[%s3600_s26 + $0x270] sm:$0xff] %vm982_vm1, %v3606_v23 }
  0x6b   : > { %1063 = vst.msk [vmem:[%s3600_s26 + $0x278] sm:$0xff] %vm982_vm1, %v3606_v23  ;;  %1065 = vst.msk [vmem:[%s3600_s26 + $0x288] sm:$0xff] %vm982_vm1, %v3606_v23 }
  0x6c   : > { %1066 = vst.msk [vmem:[%s3600_s26 + $0x290] sm:$0xff] %vm982_vm1, %v3606_v23  ;;  %1068 = vst.msk [vmem:[%s3600_s26 + $0x2a0] sm:$0xff] %vm982_vm1, %v3606_v23 }
  0x6d   : > { %1069 = vst.msk [vmem:[%s3600_s26 + $0x2a8] sm:$0xff] %vm982_vm1, %v3606_v23  ;;  %1072 = vst.msk [vmem:[%s3600_s26 + $0x2c0] sm:$0xff] %vm982_vm1, %v3606_v23 }
  0x6e   : > { %1074 = vst.msk [vmem:[%s3600_s26 + $0x2d0] sm:$0xff] %vm982_vm1, %v3606_v23  ;;  %1075 = vst.msk [vmem:[%s3600_s26 + $0x2d8] sm:$0xff] %vm982_vm1, %v3606_v23 }
  0x6f   : > { %1077 = vst.msk [vmem:[%s3600_s26 + $0x2e8] sm:$0xff] %vm982_vm1, %v3606_v23  ;;  %1078 = vst.msk [vmem:[%s3600_s26 + $0x2f0] sm:$0xff] %vm982_vm1, %v3606_v23 }
  0x70   : > { %2704 = vmatmul.mubr.msk.bf16.vlgmr.msra.gmra.mrb[16].mxu1 %vm379_vm0, %v3501_v5  ;;  %2692 = vmatmul.mubr.msk.bf16.gmra.mrb[16].mxu0 %vm379_vm0, %v3549_v17  ;;  %1080 = vst.msk [vmem:[%s3600_s26 + $0x300] sm:$0xff] %vm982_vm1, %v3606_v23  ;;  %1081 = vst.msk [vmem:[%s3600_s26 + $0x308] sm:$0xff] %vm982_vm1, %v3606_v23 }
  0x71   : > { %663 = vmatprep.mubr.bf16.mxu1 %v3386_v0  ;;  %510 = vmatprep.mubr.bf16.mxu0 %v3386_v0  ;;  %1083 = vst.msk [vmem:[%s3600_s26 + $0x318] sm:$0xff] %vm982_vm1, %v3606_v23  ;;  %1084 = vst.msk [vmem:[%s3600_s26 + $0x320] sm:$0xff] %vm982_vm1, %v3606_v23 }
  0x72   : > { %1086 = vst.msk [vmem:[%s3600_s26 + $0x330] sm:$0xff] %vm982_vm1, %v3606_v23  ;;  %1122 = vst.msk [vmem:[%s3600_s26 + $0x450] sm:$0xff] %vm982_vm1, %v3606_v23 }
  0x73   : > { %1087 = vst.msk [vmem:[%s3600_s26 + $0x338] sm:$0xff] %vm982_vm1, %v3606_v23  ;;  %1089 = vst.msk [vmem:[%s3600_s26 + $0x348] sm:$0xff] %vm982_vm1, %v3606_v23 }
  0x74   : > { %1090 = vst.msk [vmem:[%s3600_s26 + $0x350] sm:$0xff] %vm982_vm1, %v3606_v23  ;;  %1092 = vst.msk [vmem:[%s3600_s26 + $0x360] sm:$0xff] %vm982_vm1, %v3606_v23 }
  0x75   : > { %1093 = vst.msk [vmem:[%s3600_s26 + $0x368] sm:$0xff] %vm982_vm1, %v3606_v23  ;;  %1095 = vst.msk [vmem:[%s3600_s26 + $0x378] sm:$0xff] %vm982_vm1, %v3606_v23 }
  0x76   : > { %1096 = vst.msk [vmem:[%s3600_s26 + $0x380] sm:$0xff] %vm982_vm1, %v3606_v23  ;;  %1098 = vst.msk [vmem:[%s3600_s26 + $0x390] sm:$0xff] %vm982_vm1, %v3606_v23 }
  0x77   : > { %1099 = vst.msk [vmem:[%s3600_s26 + $0x398] sm:$0xff] %vm982_vm1, %v3606_v23  ;;  %1101 = vst.msk [vmem:[%s3600_s26 + $0x3a8] sm:$0xff] %vm982_vm1, %v3606_v23 }
  0x78   : > { %2705 = vmatmul.mubr.msk.bf16.gmra.mrb[20].mxu1 %vm379_vm0, %v3513_v9  ;;  %2693 = vmatmul.mubr.msk.bf16.gmra.mrb[20].mxu0 %vm379_vm0, %v3558_v18  ;;  %1102 = vst.msk [vmem:[%s3600_s26 + $0x3b0] sm:$0xff] %vm982_vm1, %v3606_v23  ;;  %1104 = vst.msk [vmem:[%s3600_s26 + $0x3c0] sm:$0xff] %vm982_vm1, %v3606_v23 }
  0x79   : > { %673 = vmatprep.mubr.bf16.mxu1 %v3386_v0  ;;  %520 = vmatprep.mubr.bf16.mxu0 %v3386_v0  ;;  %1105 = vst.msk [vmem:[%s3600_s26 + $0x3c8] sm:$0xff] %vm982_vm1, %v3606_v23  ;;  %1107 = vst.msk [vmem:[%s3600_s26 + $0x3d8] sm:$0xff] %vm982_vm1, %v3606_v23 }
  0x7a   : > { %1108 = vst.msk [vmem:[%s3600_s26 + $0x3e0] sm:$0xff] %vm982_vm1, %v3606_v23  ;;  %1110 = vst.msk [vmem:[%s3600_s26 + $0x3f0] sm:$0xff] %vm982_vm1, %v3606_v23 }
  0x7b   : > { %1111 = vst.msk [vmem:[%s3600_s26 + $0x3f8] sm:$0xff] %vm982_vm1, %v3606_v23  ;;  %1113 = vst.msk [vmem:[%s3600_s26 + $0x408] sm:$0xff] %vm982_vm1, %v3606_v23 }
  0x7c   : > { %1114 = vst.msk [vmem:[%s3600_s26 + $0x410] sm:$0xff] %vm982_vm1, %v3606_v23  ;;  %1116 = vst.msk [vmem:[%s3600_s26 + $0x420] sm:$0xff] %vm982_vm1, %v3606_v23 }
  0x7d   : > { %1117 = vst.msk [vmem:[%s3600_s26 + $0x428] sm:$0xff] %vm982_vm1, %v3606_v23  ;;  %1119 = vst.msk [vmem:[%s3600_s26 + $0x438] sm:$0xff] %vm982_vm1, %v3606_v23 }
  0x7e   : > { %1120 = vst.msk [vmem:[%s3600_s26 + $0x440] sm:$0xff] %vm982_vm1, %v3606_v23  ;;  %1123 = vst.msk [vmem:[%s3600_s26 + $0x458] sm:$0xff] %vm982_vm1, %v3606_v23 }
  0x7f   : > { %1125 = vst.msk [vmem:[%s3600_s26 + $0x468] sm:$0xff] %vm982_vm1, %v3606_v23  ;;  %1126 = vst.msk [vmem:[%s3600_s26 + $0x470] sm:$0xff] %vm982_vm1, %v3606_v23 }
  0x80   : > { %2706 = vmatmul.mubr.msk.bf16.gmra.mrb[24].mxu1 %vm379_vm0, %v3525_v13  ;;  %2694 = vmatmul.mubr.msk.bf16.gmra.mrb[24].mxu0 %vm379_vm0, %v3567_v19  ;;  %1128 = vst.msk [vmem:[%s3600_s26 + $0x480] sm:$0xff] %vm982_vm1, %v3606_v23  ;;  %1129 = vst.msk [vmem:[%s3600_s26 + $0x488] sm:$0xff] %vm982_vm1, %v3606_v23 }
  0x81   : > { %683 = vmatprep.mubr.bf16.mxu1 %v3386_v0  ;;  %530 = vmatprep.mubr.bf16.mxu0 %v3386_v0  ;;  %1131 = vst.msk [vmem:[%s3600_s26 + $0x498] sm:$0xff] %vm982_vm1, %v3606_v23  ;;  %1132 = vst.msk [vmem:[%s3600_s26 + $0x4a0] sm:$0xff] %vm982_vm1, %v3606_v23 }
  0x82   : > { %1134 = vst.msk [vmem:[%s3600_s26 + $0x4b0] sm:$0xff] %vm982_vm1, %v3606_v23  ;;  %1135 = vst.msk [vmem:[%s3600_s26 + $0x4b8] sm:$0xff] %vm982_vm1, %v3606_v23 }
  0x83   : > { %1137 = vst.msk [vmem:[%s3600_s26 + $0x4c8] sm:$0xff] %vm982_vm1, %v3606_v23  ;;  %1173 = vst.msk [vmem:[%s3600_s26 + $0x5e8] sm:$0xff] %vm982_vm1, %v3606_v23 }
  0x84   : > { %1138 = vst.msk [vmem:[%s3600_s26 + $0x4d0] sm:$0xff] %vm982_vm1, %v3606_v23  ;;  %1140 = vst.msk [vmem:[%s3600_s26 + $0x4e0] sm:$0xff] %vm982_vm1, %v3606_v23 }
  0x85   : > { %1141 = vst.msk [vmem:[%s3600_s26 + $0x4e8] sm:$0xff] %vm982_vm1, %v3606_v23  ;;  %1143 = vst.msk [vmem:[%s3600_s26 + $0x4f8] sm:$0xff] %vm982_vm1, %v3606_v23 }
  0x86   : > { %1144 = vst.msk [vmem:[%s3600_s26 + $0x500] sm:$0xff] %vm982_vm1, %v3606_v23  ;;  %1146 = vst.msk [vmem:[%s3600_s26 + $0x510] sm:$0xff] %vm982_vm1, %v3606_v23 }
  0x87   : > { %1147 = vst.msk [vmem:[%s3600_s26 + $0x518] sm:$0xff] %vm982_vm1, %v3606_v23  ;;  %1149 = vst.msk [vmem:[%s3600_s26 + $0x528] sm:$0xff] %vm982_vm1, %v3606_v23 }
  0x88   : > { %2707 = vmatmul.mubr.msk.bf16.gmra.mrb[28].mxu1 %vm379_vm0, %v3540_v16  ;;  %2695 = vmatmul.mubr.msk.bf16.gmra.mrb[28].mxu0 %vm379_vm0, %v3576_v20  ;;  %1150 = vst.msk [vmem:[%s3600_s26 + $0x530] sm:$0xff] %vm982_vm1, %v3606_v23  ;;  %1152 = vst.msk [vmem:[%s3600_s26 + $0x540] sm:$0xff] %vm982_vm1, %v3606_v23 }
  0x89   : > { %693 = vmatprep.mubr.bf16.mxu1 %v3386_v0  ;;  %540 = vmatprep.mubr.bf16.mxu0 %v3386_v0  ;;  %1153 = vst.msk [vmem:[%s3600_s26 + $0x548] sm:$0xff] %vm982_vm1, %v3606_v23  ;;  %1155 = vst.msk [vmem:[%s3600_s26 + $0x558] sm:$0xff] %vm982_vm1, %v3606_v23 }
  0x8a   : > { %1156 = vst.msk [vmem:[%s3600_s26 + $0x560] sm:$0xff] %vm982_vm1, %v3606_v23  ;;  %1158 = vst.msk [vmem:[%s3600_s26 + $0x570] sm:$0xff] %vm982_vm1, %v3606_v23 }
  0x8b   : > { %1159 = vst.msk [vmem:[%s3600_s26 + $0x578] sm:$0xff] %vm982_vm1, %v3606_v23  ;;  %1161 = vst.msk [vmem:[%s3600_s26 + $0x588] sm:$0xff] %vm982_vm1, %v3606_v23 }
  0x8c   : > { %1162 = vst.msk [vmem:[%s3600_s26 + $0x590] sm:$0xff] %vm982_vm1, %v3606_v23  ;;  %1164 = vst.msk [vmem:[%s3600_s26 + $0x5a0] sm:$0xff] %vm982_vm1, %v3606_v23 }
  0x8d   : > { %1165 = vst.msk [vmem:[%s3600_s26 + $0x5a8] sm:$0xff] %vm982_vm1, %v3606_v23  ;;  %1167 = vst.msk [vmem:[%s3600_s26 + $0x5b8] sm:$0xff] %vm982_vm1, %v3606_v23 }
  0x8e   : > { %1168 = vst.msk [vmem:[%s3600_s26 + $0x5c0] sm:$0xff] %vm982_vm1, %v3606_v23  ;;  %1170 = vst.msk [vmem:[%s3600_s26 + $0x5d0] sm:$0xff] %vm982_vm1, %v3606_v23 }
  0x8f   : > { %1171 = vst.msk [vmem:[%s3600_s26 + $0x5d8] sm:$0xff] %vm982_vm1, %v3606_v23  ;;  %1174 = vst.msk [vmem:[%s3600_s26 + $0x5f0] sm:$0xff] %vm982_vm1, %v3606_v23 }
  0x90   : > { %2708 = vmatmul.mubr.msk.bf16.gmra.mrb[32].mxu1 %vm379_vm0, %v3549_v17  ;;  %2696 = vmatmul.mubr.msk.bf16.gmra.mrb[32].mxu0 %vm379_vm0, %v3586_v21  ;;  %1176 = vst.msk [vmem:[%s3600_s26 + $0x600] sm:$0xff] %vm982_vm1, %v3606_v23  ;;  %1177 = vst.msk [vmem:[%s3600_s26 + $0x608] sm:$0xff] %vm982_vm1, %v3606_v23 }
  0x91   : > { %703 = vmatprep.mubr.bf16.mxu1 %v3386_v0  ;;  %550 = vmatprep.mubr.bf16.mxu0 %v3386_v0  ;;  %1179 = vst.msk [vmem:[%s3600_s26 + $0x618] sm:$0xff] %vm982_vm1, %v3606_v23  ;;  %1180 = vst.msk [vmem:[%s3600_s26 + $0x620] sm:$0xff] %vm982_vm1, %v3606_v23 }
  0x92   : > { %1182 = vst.msk [vmem:[%s3600_s26 + $0x630] sm:$0xff] %vm982_vm1, %v3606_v23  ;;  %1183 = vst.msk [vmem:[%s3600_s26 + $0x638] sm:$0xff] %vm982_vm1, %v3606_v23 }
  0x93   : > { %1185 = vst.msk [vmem:[%s3600_s26 + $0x648] sm:$0xff] %vm982_vm1, %v3606_v23  ;;  %1186 = vst.msk [vmem:[%s3600_s26 + $0x650] sm:$0xff] %vm982_vm1, %v3606_v23 }
  0x94   : > { %1022 = vst.msk [vmem:[%s3600_s26 + $0x130] sm:$0x1] %vm985_vm2, %v3606_v23  ;;  %986 = vst.msk [vmem:[%s3600_s26 + $0x10] sm:$0x1] %vm985_vm2, %v3606_v23 }
  0x95   : > { %989 = vst.msk [vmem:[%s3600_s26 + $0x28] sm:$0x1] %vm985_vm2, %v3606_v23  ;;  %992 = vst.msk [vmem:[%s3600_s26 + $0x40] sm:$0x1] %vm985_vm2, %v3606_v23 }
  0x96   : > { %995 = vst.msk [vmem:[%s3600_s26 + $0x58] sm:$0x1] %vm985_vm2, %v3606_v23  ;;  %998 = vst.msk [vmem:[%s3600_s26 + $0x70] sm:$0x1] %vm985_vm2, %v3606_v23 }
  0x97   : > { %1001 = vst.msk [vmem:[%s3600_s26 + $0x88] sm:$0x1] %vm985_vm2, %v3606_v23  ;;  %1004 = vst.msk [vmem:[%s3600_s26 + $0xa0] sm:$0x1] %vm985_vm2, %v3606_v23 }
  0x98   : > { %2709 = vmatmul.mubr.msk.bf16.gmra.mrb[36].mxu1 %vm379_vm0, %v3558_v18  ;;  %2697 = vmatmul.mubr.msk.bf16.gmra.mrb[36].mxu0 %vm379_vm0, %v3595_v22  ;;  %1007 = vst.msk [vmem:[%s3600_s26 + $0xb8] sm:$0x1] %vm985_vm2, %v3606_v23  ;;  %1010 = vst.msk [vmem:[%s3600_s26 + $0xd0] sm:$0x1] %vm985_vm2, %v3606_v23 }
  0x99   : > { %713 = vmatprep.mubr.bf16.mxu1 %v3386_v0  ;;  %560 = vmatprep.mubr.bf16.mxu0 %v3386_v0  ;;  %1013 = vst.msk [vmem:[%s3600_s26 + $0xe8] sm:$0x1] %vm985_vm2, %v3606_v23  ;;  %1016 = vst.msk [vmem:[%s3600_s26 + $0x100] sm:$0x1] %vm985_vm2, %v3606_v23 }
  0x9a   : > { %1019 = vst.msk [vmem:[%s3600_s26 + $0x118] sm:$0x1] %vm985_vm2, %v3606_v23  ;;  %1025 = vst.msk [vmem:[%s3600_s26 + $0x148] sm:$0x1] %vm985_vm2, %v3606_v23 }
  0x9b   : > { %1028 = vst.msk [vmem:[%s3600_s26 + $0x160] sm:$0x1] %vm985_vm2, %v3606_v23  ;;  %1031 = vst.msk [vmem:[%s3600_s26 + $0x178] sm:$0x1] %vm985_vm2, %v3606_v23 }
  0x9c   : > { %1034 = vst.msk [vmem:[%s3600_s26 + $0x190] sm:$0x1] %vm985_vm2, %v3606_v23  ;;  %1073 = vst.msk [vmem:[%s3600_s26 + $0x2c8] sm:$0x1] %vm985_vm2, %v3606_v23 }
  0x9d   : > { %1037 = vst.msk [vmem:[%s3600_s26 + $0x1a8] sm:$0x1] %vm985_vm2, %v3606_v23  ;;  %1040 = vst.msk [vmem:[%s3600_s26 + $0x1c0] sm:$0x1] %vm985_vm2, %v3606_v23 }
  0x9e   : > { %1043 = vst.msk [vmem:[%s3600_s26 + $0x1d8] sm:$0x1] %vm985_vm2, %v3606_v23  ;;  %1046 = vst.msk [vmem:[%s3600_s26 + $0x1f0] sm:$0x1] %vm985_vm2, %v3606_v23 }
  0x9f   : > { %1049 = vst.msk [vmem:[%s3600_s26 + $0x208] sm:$0x1] %vm985_vm2, %v3606_v23  ;;  %1052 = vst.msk [vmem:[%s3600_s26 + $0x220] sm:$0x1] %vm985_vm2, %v3606_v23 }
  0xa0   : > { %2710 = vmatmul.mubr.msk.bf16.gmra.mrb[40].mxu1 %vm379_vm0, %v3567_v19  ;;  %2698 = vmatmul.mubr.msk.bf16.gmra.mrb[40].mxu0 %vm379_vm0, %v3306_v24  ;;  %1055 = vst.msk [vmem:[%s3600_s26 + $0x238] sm:$0x1] %vm985_vm2, %v3606_v23  ;;  %1058 = vst.msk [vmem:[%s3600_s26 + $0x250] sm:$0x1] %vm985_vm2, %v3606_v23 }
  0xa1   : > { %723 = vmatprep.mubr.bf16.mxu1 %v3386_v0  ;;  %570 = vmatprep.mubr.bf16.mxu0 %v3386_v0  ;;  %1061 = vst.msk [vmem:[%s3600_s26 + $0x268] sm:$0x1] %vm985_vm2, %v3606_v23  ;;  %1064 = vst.msk [vmem:[%s3600_s26 + $0x280] sm:$0x1] %vm985_vm2, %v3606_v23 }
  0xa2   : > { %1067 = vst.msk [vmem:[%s3600_s26 + $0x298] sm:$0x1] %vm985_vm2, %v3606_v23  ;;  %1070 = vst.msk [vmem:[%s3600_s26 + $0x2b0] sm:$0x1] %vm985_vm2, %v3606_v23 }
  0xa3   : > { %1076 = vst.msk [vmem:[%s3600_s26 + $0x2e0] sm:$0x1] %vm985_vm2, %v3606_v23  ;;  %1079 = vst.msk [vmem:[%s3600_s26 + $0x2f8] sm:$0x1] %vm985_vm2, %v3606_v23 }
  0xa4   : > { %1082 = vst.msk [vmem:[%s3600_s26 + $0x310] sm:$0x1] %vm985_vm2, %v3606_v23  ;;  %1085 = vst.msk [vmem:[%s3600_s26 + $0x328] sm:$0x1] %vm985_vm2, %v3606_v23 }
  0xa5   : > { %1124 = vst.msk [vmem:[%s3600_s26 + $0x460] sm:$0x1] %vm985_vm2, %v3606_v23  ;;  %1088 = vst.msk [vmem:[%s3600_s26 + $0x340] sm:$0x1] %vm985_vm2, %v3606_v23 }
  0xa6   : > { %1091 = vst.msk [vmem:[%s3600_s26 + $0x358] sm:$0x1] %vm985_vm2, %v3606_v23  ;;  %1094 = vst.msk [vmem:[%s3600_s26 + $0x370] sm:$0x1] %vm985_vm2, %v3606_v23 }
  0xa7   : > { %1097 = vst.msk [vmem:[%s3600_s26 + $0x388] sm:$0x1] %vm985_vm2, %v3606_v23  ;;  %1100 = vst.msk [vmem:[%s3600_s26 + $0x3a0] sm:$0x1] %vm985_vm2, %v3606_v23 }
  0xa8   : > { %2711 = vmatmul.mubr.msk.bf16.gmra.mrb[44].mxu1 %vm379_vm0, %v3576_v20  ;;  %2699 = vmatmul.mubr.msk.bf16.gmra.mrb[44].mxu0 %vm379_vm0, %v3307_v25  ;;  %1103 = vst.msk [vmem:[%s3600_s26 + $0x3b8] sm:$0x1] %vm985_vm2, %v3606_v23  ;;  %1106 = vst.msk [vmem:[%s3600_s26 + $0x3d0] sm:$0x1] %vm985_vm2, %v3606_v23 }
  0xa9   : > { %733 = vmatprep.mubr.bf16.mxu1 %v3386_v0  ;;  %3210 = vmatprep.mubr.msk.bf16.mxu0 %vm379_vm0, %v3501_v5  ;;  %1109 = vst.msk [vmem:[%s3600_s26 + $0x3e8] sm:$0x1] %vm985_vm2, %v3606_v23  ;;  %1112 = vst.msk [vmem:[%s3600_s26 + $0x400] sm:$0x1] %vm985_vm2, %v3606_v23 }
  0xaa   : > { %1115 = vst.msk [vmem:[%s3600_s26 + $0x418] sm:$0x1] %vm985_vm2, %v3606_v23  ;;  %1118 = vst.msk [vmem:[%s3600_s26 + $0x430] sm:$0x1] %vm985_vm2, %v3606_v23 }
  0xab   : > { %1121 = vst.msk [vmem:[%s3600_s26 + $0x448] sm:$0x1] %vm985_vm2, %v3606_v23  ;;  %1127 = vst.msk [vmem:[%s3600_s26 + $0x478] sm:$0x1] %vm985_vm2, %v3606_v23 }
  0xac   : > { %1130 = vst.msk [vmem:[%s3600_s26 + $0x490] sm:$0x1] %vm985_vm2, %v3606_v23  ;;  %1133 = vst.msk [vmem:[%s3600_s26 + $0x4a8] sm:$0x1] %vm985_vm2, %v3606_v23 }
  0xad   : > { %1136 = vst.msk [vmem:[%s3600_s26 + $0x4c0] sm:$0x1] %vm985_vm2, %v3606_v23  ;;  %1175 = vst.msk [vmem:[%s3600_s26 + $0x5f8] sm:$0x1] %vm985_vm2, %v3606_v23 }
  0xae   : > { %1139 = vst.msk [vmem:[%s3600_s26 + $0x4d8] sm:$0x1] %vm985_vm2, %v3606_v23  ;;  %1142 = vst.msk [vmem:[%s3600_s26 + $0x4f0] sm:$0x1] %vm985_vm2, %v3606_v23 }
  0xaf   : > { %1145 = vst.msk [vmem:[%s3600_s26 + $0x508] sm:$0x1] %vm985_vm2, %v3606_v23  ;;  %1148 = vst.msk [vmem:[%s3600_s26 + $0x520] sm:$0x1] %vm985_vm2, %v3606_v23 }
  0xb0   : > { %2712 = vmatmul.mubr.msk.bf16.gmra.mrb[48].mxu1 %vm379_vm0, %v3586_v21  ;;  %3211 = vmatmul.mubr.msk.bf16.vlgmr.msra.gmra.mrb[48].mxu0 %vm379_vm0, %v3513_v9  ;;  %1151 = vst.msk [vmem:[%s3600_s26 + $0x538] sm:$0x1] %vm985_vm2, %v3606_v23  ;;  %1154 = vst.msk [vmem:[%s3600_s26 + $0x550] sm:$0x1] %vm985_vm2, %v3606_v23 }
  0xb1   : > { %743 = vmatprep.mubr.bf16.mxu1 %v3386_v0  ;;  %3214 = vmatprep.mubr.msk.bf16.mxu0 %vm379_vm0, %v3525_v13  ;;  %1157 = vst.msk [vmem:[%s3600_s26 + $0x568] sm:$0x1] %vm985_vm2, %v3606_v23  ;;  %1160 = vst.msk [vmem:[%s3600_s26 + $0x580] sm:$0x1] %vm985_vm2, %v3606_v23  ;;  %v1218_v13 = vld [vmem:[%s3600_s26 + $0x168] sm:$0xff] }
  0xb2   : > { %1163 = vst.msk [vmem:[%s3600_s26 + $0x598] sm:$0x1] %vm985_vm2, %v3606_v23  ;;  %1166 = vst.msk [vmem:[%s3600_s26 + $0x5b0] sm:$0x1] %vm985_vm2, %v3606_v23 }
  0xb3   : > { %1169 = vst.msk [vmem:[%s3600_s26 + $0x5c8] sm:$0x1] %vm985_vm2, %v3606_v23  ;;  %1172 = vst.msk [vmem:[%s3600_s26 + $0x5e0] sm:$0x1] %vm985_vm2, %v3606_v23 }
  0xb4   : > { %1178 = vst.msk [vmem:[%s3600_s26 + $0x610] sm:$0x1] %vm985_vm2, %v3606_v23  ;;  %1181 = vst.msk [vmem:[%s3600_s26 + $0x628] sm:$0x1] %vm985_vm2, %v3606_v23 }
  0xb5   : > { %1184 = vst.msk [vmem:[%s3600_s26 + $0x640] sm:$0x1] %vm985_vm2, %v3606_v23  ;;  %1187 = vst.msk [vmem:[%s3600_s26 + $0x658] sm:$0x1] %vm985_vm2, %v3606_v23 }
  0xb8   : > { %2713 = vmatmul.mubr.msk.bf16.gmra.mrb[52].mxu1 %vm379_vm0, %v3595_v22  ;;  %3215 = vmatmul.mubr.msk.bf16.gmra.mrb[52].mxu0 %vm379_vm0, %v3540_v16 }
  0xb9   : > { %753 = vmatprep.mubr.bf16.mxu1 %v3386_v0  ;;  %3218 = vmatprep.mubr.msk.bf16.mxu0 %vm379_vm0, %v3549_v17  ;;  %v1219_v17 = vld [vmem:[%s3600_s26 + $0x170] sm:$0xff] }
  0xc0   : > { %2714 = vmatmul.mubr.msk.bf16.gmra.mrb[56].mxu1 %vm379_vm0, %v3306_v24  ;;  %3219 = vmatmul.mubr.msk.bf16.gmra.mrb[56].mxu0 %vm379_vm0, %v3558_v18 }
  0xc1   : > { %763 = vmatprep.mubr.bf16.mxu1 %v3386_v0  ;;  %3222 = vmatprep.mubr.msk.bf16.mxu0 %vm379_vm0, %v3567_v19 }
  0xc8   : > { %2715 = vmatmul.mubr.msk.bf16.gmra.mrb[60].mxu1 %vm379_vm0, %v3307_v25  ;;  %3223 = vmatmul.mubr.msk.bf16.gmra.mrb[60].mxu0 %vm379_vm0, %v3576_v20 }
  0xc9   : > { %773 = vmatprep.mubr.bf16.mxu1 %v3386_v0  ;;  %3226 = vmatprep.mubr.msk.bf16.mxu0 %vm379_vm0, %v3586_v21 }
  0xd0   : > { %2716 = vmatmul.mubr.msk.bf16.gmra.mrb[64].mxu1 %vm379_vm0, %v3504_v6  ;;  %3227 = vmatmul.mubr.msk.bf16.gmra.mrb[64].mxu0 %vm379_vm0, %v3595_v22 }
  0xd1   : > { %783 = vmatprep.mubr.bf16.mxu1 %v3386_v0  ;;  %3230 = vmatprep.mubr.msk.bf16.mxu0 %vm379_vm0, %v3306_v24 }
  0xd8   : > { %2717 = vmatmul.mubr.msk.bf16.gmra.mrb[68].mxu1 %vm379_vm0, %v3516_v12  ;;  %3231 = vmatmul.mubr.msk.bf16.gmra.mrb[68].mxu0 %vm379_vm0, %v3307_v25 }
  0xd9   : > { %793 = vmatprep.mubr.bf16.mxu1 %v3386_v0  ;;  %3234 = vmatprep.mubr.msk.bf16.mxu0 %vm379_vm0, %v3504_v6 }
  0xe0   : > { %2718 = vmatmul.mubr.msk.bf16.gmra.mrb[72].mxu1 %vm379_vm0, %v3528_v14  ;;  %3235 = vmatmul.mubr.msk.bf16.gmra.mrb[72].mxu0 %vm379_vm0, %v3516_v12  ;;  %v1194_v12 = vld [vmem:[%s3600_s26 + $0x48] sm:$0xff] }
  0xe1   : > { %803 = vmatprep.mubr.bf16.mxu1 %v3386_v0  ;;  %3238 = vmatprep.mubr.msk.bf16.mxu0 %vm379_vm0, %v3528_v14 }
  0xe8   : > { %2719 = vmatmul.mubr.msk.bf16.gmra.mrb[76].mxu1 %vm379_vm0, %v3537_v15  ;;  %3239 = vmatmul.mubr.msk.bf16.gmra.mrb[76].mxu0 %vm379_vm0, %v3537_v15  ;;  %v1195_v15 = vld [vmem:[%s3600_s26 + $0x50] sm:$0xff] }
 0x123   : > { %v462_v30 = vpop.f32.mrb[0].mxu0  ;;  %v582_v31 = vpop.f32.mrb[0].mxu1 }
 0x124   : > { %v1220_v34 = vadd.f32 %v1188_v28, %v462_v30  ;;  %v1244_v35 = vadd.f32 %v1212_v29, %v582_v31  ;;  %v4288_v36 = vpop.f32.mrb[1].mxu1  ;;  %1349 = vrot.lane.b32.xlu0 %v462_v30, %s3387_s27  ;;  %v4291_v37 = vpop.f32.mrb[1].mxu0  ;;  %v1196_v28 = vld [vmem:[%s3600_s26 + $0x60] sm:$0xff]  ;;  %v1197_v30 = vld [vmem:[%s3600_s26 + $0x68] sm:$0xff] }
 0x125   : > { %v466_v38 = vpop.f32.mrb[2].mxu0  ;;  %v586_v39 = vpop.f32.mrb[2].mxu1 }
 0x126   : > { %1252 = vst.msk [vmem:[%s3600_s26] sm:$0xff] %vm982_vm1, %v1220_v34  ;;  %1276 = vst.msk [vmem:[%s3600_s26 + $0x120] sm:$0xff] %vm982_vm1, %v1244_v35  ;;  %v1221_v40 = vadd.f32 %v1189_v32, %v466_v38  ;;  %v1245_v41 = vadd.f32 %v1213_v33, %v586_v39  ;;  %1399 = vrot.lane.b32.xlu1 %v586_v39, %s3387_s27  ;;  %v4298_v42 = vpop.f32.mrb[3].mxu0  ;;  %v4300_v43 = vpop.f32.mrb[3].mxu1 }
 0x128   : > { %1253 = vst.msk [vmem:[%s3600_s26 + $0x8] sm:$0xff] %vm982_vm1, %v1221_v40  ;;  %1277 = vst.msk [vmem:[%s3600_s26 + $0x128] sm:$0xff] %vm982_vm1, %v1245_v41  ;;  %1397 = vrot.lane.b32.xlu0 %v582_v31, %s3387_s27 }
 0x12a   : > { %1672 = vrot.lane.b32.xlu1 %v4298_v42, %s3387_s27 }
 0x12b   : > { %v472_v46 = vpop.f32.mrb[4].mxu0  ;;  %v592_v48 = vpop.f32.mrb[4].mxu1 }
 0x12c   : > { %1670 = vrot.lane.b32.xlu0 %v4291_v37, %s3387_s27  ;;  %v1222_v50 = vadd.f32 %v1190_v44, %v472_v46  ;;  %v4315_v51 = vpop.f32.mrb[5].mxu0  ;;  %v1246_v52 = vadd.f32 %v1214_v45, %v592_v48  ;;  %v4317_v53 = vpop.f32.mrb[5].mxu1  ;;  %v1198_v44 = vld [vmem:[%s3600_s26 + $0x78] sm:$0xff] }
 0x12d   : > { %v476_v54 = vpop.f32.mrb[6].mxu0  ;;  %v596_v55 = vpop.f32.mrb[6].mxu1 }
 0x12e   : > { %1720 = vrot.lane.b32.xlu1 %v4300_v43, %s3387_s27  ;;  %1254 = vst.msk [vmem:[%s3600_s26 + $0x18] sm:$0xff] %vm982_vm1, %v1222_v50  ;;  %v1223_v56 = vadd.f32 %v1191_v47, %v476_v54  ;;  %v4323_v57 = vpop.f32.mrb[7].mxu0  ;;  %1278 = vst.msk [vmem:[%s3600_s26 + $0x138] sm:$0xff] %vm982_vm1, %v1246_v52  ;;  %v1247_v58 = vadd.f32 %v1215_v49, %v596_v55  ;;  %v4327_v59 = vpop.f32.mrb[7].mxu1 }
 0x130   : > { %1718 = vrot.lane.b32.xlu0 %v4288_v36, %s3387_s27  ;;  %1255 = vst.msk [vmem:[%s3600_s26 + $0x20] sm:$0xff] %vm982_vm1, %v1223_v56  ;;  %1279 = vst.msk [vmem:[%s3600_s26 + $0x140] sm:$0xff] %vm982_vm1, %v1247_v58 }
 0x132   : > { %1353 = vrot.lane.b32.xlu1 %v472_v46, %s3387_s27  ;;  %v1199_v46 = vld [vmem:[%s3600_s26 + $0x80] sm:$0xff] }
 0x133   : > { %v482_v62 = vpop.f32.mrb[8].mxu0  ;;  %v602_v0 = vpop.f32.mrb[8].mxu1 }
 0x134   : > { %1351 = vrot.lane.b32.xlu0 %v466_v38, %s3387_s27  ;;  %v1224_v2 = vadd.f32 %v1192_v60, %v482_v62  ;;  %v4341_v3 = vpop.f32.mrb[9].mxu0  ;;  %v1248_v4 = vadd.f32 %v1216_v61, %v602_v0  ;;  %v4343_v5 = vpop.f32.mrb[9].mxu1  ;;  %v1200_v60 = vld [vmem:[%s3600_s26 + $0x90] sm:$0xff] }
 0x135   : > { %v486_v6 = vpop.f32.mrb[10].mxu0  ;;  %v606_v7 = vpop.f32.mrb[10].mxu1 }
 0x136   : > { %1355 = vrot.lane.b32.xlu1 %v476_v54, %s3387_s27  ;;  %1256 = vst.msk [vmem:[%s3600_s26 + $0x30] sm:$0xff] %vm982_vm1, %v1224_v2  ;;  %v1225_v8 = vadd.f32 %v1193_v63, %v486_v6  ;;  %v4348_v9 = vpop.f32.mrb[11].mxu0  ;;  %1280 = vst.msk [vmem:[%s3600_s26 + $0x150] sm:$0xff] %vm982_vm1, %v1248_v4  ;;  %v1249_v10 = vadd.f32 %v1217_v1, %v606_v7  ;;  %v4352_v11 = vpop.f32.mrb[11].mxu1 }
 0x138   : > { %1401 = vrot.lane.b32.xlu0 %v592_v48, %s3387_s27  ;;  %1257 = vst.msk [vmem:[%s3600_s26 + $0x38] sm:$0xff] %vm982_vm1, %v1225_v8  ;;  %1281 = vst.msk [vmem:[%s3600_s26 + $0x158] sm:$0xff] %vm982_vm1, %v1249_v10 }
 0x13a   : > { %1403 = vrot.lane.b32.xlu1 %v596_v55, %s3387_s27 }
 0x13b   : > { %v492_v14 = vpop.f32.mrb[12].mxu0  ;;  %v4363_v16 = vpop.f32.mrb[12].mxu1 }
 0x13c   : > { %1674 = vrot.lane.b32.xlu0 %v4315_v51, %s3387_s27  ;;  %v1226_v18 = vadd.f32 %v1194_v12, %v492_v14  ;;  %v4368_v19 = vpop.f32.mrb[13].mxu0  ;;  %v1250_v20 = vadd.f32 %v1218_v13, %v4363_v16  ;;  %v4371_v21 = vpop.f32.mrb[13].mxu1  ;;  %v1202_v12 = vld [vmem:[%s3600_s26 + $0xa8] sm:$0xff] }
 0x13d   : > { %5992 = vst [vmem:[#allocation8_spill] sm:$0xff] %v4368_v19  ;;  %5993 = vst [vmem:[#allocation9_spill] sm:$0xff] %v4371_v21  ;;  %v496_v22 = vpop.f32.mrb[14].mxu0  ;;  %v4373_v23 = vpop.f32.mrb[14].mxu1 }
 0x13e   : > { %1676 = vrot.lane.b32.xlu1 %v4323_v57, %s3387_s27  ;;  %1258 = vst.msk [vmem:[%s3600_s26 + $0x48] sm:$0xff] %vm982_vm1, %v1226_v18  ;;  %v1227_v24 = vadd.f32 %v1195_v15, %v496_v22  ;;  %v4379_v25 = vpop.f32.mrb[15].mxu0  ;;  %1282 = vst.msk [vmem:[%s3600_s26 + $0x168] sm:$0xff] %vm982_vm1, %v1250_v20  ;;  %v1251_v26 = vadd.f32 %v1219_v17, %v4373_v23  ;;  %v4384_v27 = vpop.f32.mrb[15].mxu1  ;;  %v1203_v15 = vld [vmem:[%s3600_s26 + $0xb0] sm:$0xff] }
 0x13f   : > { %5994 = vst [vmem:[#allocation10_spill] sm:$0xff] %v4379_v25  ;;  %5995 = vst [vmem:[#allocation11_spill] sm:$0xff] %v4384_v27 }
 0x140   : > { %1722 = vrot.lane.b32.xlu0 %v4317_v53, %s3387_s27  ;;  %1259 = vst.msk [vmem:[%s3600_s26 + $0x50] sm:$0xff] %vm982_vm1, %v1227_v24  ;;  %1283 = vst.msk [vmem:[%s3600_s26 + $0x170] sm:$0xff] %vm982_vm1, %v1251_v26 }
 0x142   : > { %1724 = vrot.lane.b32.xlu1 %v4327_v59, %s3387_s27 }
 0x143   : > { %v4395_v29 = vpop.f32.mrb[16].mxu0  ;;  %v4398_v31 = vpop.f32.mrb[16].mxu1 }
 0x144   : > { %1357 = vrot.lane.b32.xlu0 %v482_v62, %s3387_s27  ;;  %v1228_v32 = vadd.f32 %v1196_v28, %v4395_v29  ;;  %v4402_v33 = vpop.f32.mrb[17].mxu0  ;;  %v4404_v34 = vpop.f32.mrb[17].mxu1  ;;  %v1201_v62 = vld [vmem:[%s3600_s26 + $0x98] sm:$0xff]  ;;  %v1204_v28 = vld [vmem:[%s3600_s26 + $0xc0] sm:$0xff] }
 0x145   : > { %5996 = vst [vmem:[#allocation12_spill] sm:$0xff] %v4402_v33  ;;  %5997 = vst [vmem:[#allocation13_spill] sm:$0xff] %v4404_v34  ;;  %v4406_v35 = vpop.f32.mrb[18].mxu0  ;;  %v4408_v38 = vpop.f32.mrb[18].mxu1 }
 0x146   : > { %1359 = vrot.lane.b32.xlu1 %v486_v6, %s3387_s27  ;;  %1260 = vst.msk [vmem:[%s3600_s26 + $0x60] sm:$0xff] %vm982_vm1, %v1228_v32  ;;  %v1229_v39 = vadd.f32 %v1197_v30, %v4406_v35  ;;  %v4414_v40 = vpop.f32.mrb[19].mxu0  ;;  %v4416_v41 = vpop.f32.mrb[19].mxu1 }
 0x147   : > { %5998 = vst [vmem:[#allocation14_spill] sm:$0xff] %v4414_v40  ;;  %5999 = vst [vmem:[#allocation15_spill] sm:$0xff] %v4416_v41 }
 0x148   : > { %1405 = vrot.lane.b32.xlu0 %v602_v0, %s3387_s27  ;;  %1261 = vst.msk [vmem:[%s3600_s26 + $0x68] sm:$0xff] %vm982_vm1, %v1229_v39  ;;  %v1205_v39 = vld [vmem:[%s3600_s26 + $0xc8] sm:$0xff] }
 0x14a   : > { %1407 = vrot.lane.b32.xlu1 %v606_v7, %s3387_s27 }
 0x14b   : > { %v4423_v45 = vpop.f32.mrb[20].mxu0  ;;  %v4426_v47 = vpop.f32.mrb[20].mxu1 }
 0x14c   : > { %1678 = vrot.lane.b32.xlu0 %v4341_v3, %s3387_s27  ;;  %v1230_v48 = vadd.f32 %v1198_v44, %v4423_v45  ;;  %v4431_v49 = vpop.f32.mrb[21].mxu0  ;;  %v4433_v50 = vpop.f32.mrb[21].mxu1 }
 0x14d   : > { %6000 = vst [vmem:[#allocation16_spill] sm:$0xff] %v4431_v49  ;;  %6001 = vst [vmem:[#allocation17_spill] sm:$0xff] %v4433_v50  ;;  %v4435_v52 = vpop.f32.mrb[22].mxu0  ;;  %v4437_v54 = vpop.f32.mrb[22].mxu1 }
 0x14e   : > { %1680 = vrot.lane.b32.xlu1 %v4348_v9, %s3387_s27  ;;  %1262 = vst.msk [vmem:[%s3600_s26 + $0x78] sm:$0xff] %vm982_vm1, %v1230_v48  ;;  %v1231_v55 = vadd.f32 %v1199_v46, %v4435_v52  ;;  %v4444_v56 = vpop.f32.mrb[23].mxu0  ;;  %v4446_v58 = vpop.f32.mrb[23].mxu1 }
 0x14f   : > { %6002 = vst [vmem:[#allocation18_spill] sm:$0xff] %v4444_v56  ;;  %6003 = vst [vmem:[#allocation19_spill] sm:$0xff] %v4446_v58 }
 0x150   : > { %1726 = vrot.lane.b32.xlu0 %v4343_v5, %s3387_s27  ;;  %1263 = vst.msk [vmem:[%s3600_s26 + $0x80] sm:$0xff] %vm982_vm1, %v1231_v55 }
 0x152   : > { %1728 = vrot.lane.b32.xlu1 %v4352_v11, %s3387_s27 }
 0x153   : > { %v4455_v61 = vpop.f32.mrb[24].mxu0  ;;  %v4458_v63 = vpop.f32.mrb[24].mxu1 }
 0x154   : > { %1361 = vrot.lane.b32.xlu0 %v492_v14, %s3387_s27  ;;  %v1232_v0 = vadd.f32 %v1200_v60, %v4455_v61  ;;  %v4462_v1 = vpop.f32.mrb[25].mxu0  ;;  %v4464_v2 = vpop.f32.mrb[25].mxu1 }
 0x155   : > { %6004 = vst [vmem:[#allocation20_spill] sm:$0xff] %v4462_v1  ;;  %6005 = vst [vmem:[#allocation21_spill] sm:$0xff] %v4464_v2  ;;  %v4466_v4 = vpop.f32.mrb[26].mxu0  ;;  %v4468_v6 = vpop.f32.mrb[26].mxu1 }
 0x156   : > { %1363 = vrot.lane.b32.xlu1 %v496_v22, %s3387_s27  ;;  %1264 = vst.msk [vmem:[%s3600_s26 + $0x90] sm:$0xff] %vm982_vm1, %v1232_v0  ;;  %v1233_v7 = vadd.f32 %v1201_v62, %v4466_v4  ;;  %v4474_v8 = vpop.f32.mrb[27].mxu0  ;;  %v4476_v10 = vpop.f32.mrb[27].mxu1 }
 0x157   : > { %6006 = vst [vmem:[#allocation22_spill] sm:$0xff] %v4474_v8  ;;  %6007 = vst [vmem:[#allocation23_spill] sm:$0xff] %v4476_v10 }
 0x158   : > { %1409 = vrot.lane.b32.xlu0 %v4363_v16, %s3387_s27  ;;  %1265 = vst.msk [vmem:[%s3600_s26 + $0x98] sm:$0xff] %vm982_vm1, %v1233_v7  ;;  %v1206_v7 = vld [vmem:[%s3600_s26 + $0xd8] sm:$0xff] }
 0x15a   : > { %1411 = vrot.lane.b32.xlu1 %v4373_v23, %s3387_s27 }
 0x15b   : > { %v4485_v13 = vpop.f32.mrb[28].mxu0  ;;  %v4487_v14 = vpop.f32.mrb[28].mxu1 }
 0x15c   : > { %1682 = vrot.lane.b32.xlu0 %v4368_v19, %s3387_s27  ;;  %v1234_v17 = vadd.f32 %v1202_v12, %v4485_v13  ;;  %v4493_v16 = vpop.f32.mrb[29].mxu0  ;;  %v4495_v18 = vpop.f32.mrb[29].mxu1 }
 0x15d   : > { %6008 = vst [vmem:[#allocation24_spill] sm:$0xff] %v4493_v16  ;;  %6009 = vst [vmem:[#allocation25_spill] sm:$0xff] %v4495_v18  ;;  %v4497_v20 = vpop.f32.mrb[30].mxu0  ;;  %v4499_v22 = vpop.f32.mrb[30].mxu1 }
 0x15e   : > { %1684 = vrot.lane.b32.xlu1 %v4379_v25, %s3387_s27  ;;  %1266 = vst.msk [vmem:[%s3600_s26 + $0xa8] sm:$0xff] %vm982_vm1, %v1234_v17  ;;  %v1235_v23 = vadd.f32 %v1203_v15, %v4497_v20  ;;  %v4506_v24 = vpop.f32.mrb[31].mxu0  ;;  %v4508_v26 = vpop.f32.mrb[31].mxu1  ;;  %v1207_v15 = vld [vmem:[%s3600_s26 + $0xe0] sm:$0xff] }
 0x15f   : > { %6010 = vst [vmem:[#allocation26_spill] sm:$0xff] %v4506_v24  ;;  %6011 = vst [vmem:[#allocation27_spill] sm:$0xff] %v4508_v26 }
 0x160   : > { %1730 = vrot.lane.b32.xlu0 %v4371_v21, %s3387_s27  ;;  %1267 = vst.msk [vmem:[%s3600_s26 + $0xb0] sm:$0xff] %vm982_vm1, %v1235_v23 }
 0x162   : > { %1732 = vrot.lane.b32.xlu1 %v4384_v27, %s3387_s27 }
 0x163   : > { %v4517_v30 = vpop.f32.mrb[32].mxu1  ;;  %v4519_v32 = vpop.f32.mrb[32].mxu0 }
 0x164   : > { %1365 = vrot.lane.b32.xlu0 %v4395_v29, %s3387_s27  ;;  %v4524_v44 = vpop.f32.mrb[33].mxu1  ;;  %v1236_v46 = vadd.f32 %v1204_v28, %v4519_v32  ;;  %v4527_v48 = vpop.f32.mrb[33].mxu0 }
 0x165   : > { %6012 = vst [vmem:[#allocation28_spill] sm:$0xff] %v4524_v44  ;;  %6013 = vst [vmem:[#allocation29_spill] sm:$0xff] %v4527_v48  ;;  %v4529_v55 = vpop.f32.mrb[34].mxu1  ;;  %v4531_v60 = vpop.f32.mrb[34].mxu0 }
 0x166   : > { %1367 = vrot.lane.b32.xlu1 %v4406_v35, %s3387_s27  ;;  %v4535_v62 = vpop.f32.mrb[35].mxu1  ;;  %1268 = vst.msk [vmem:[%s3600_s26 + $0xc0] sm:$0xff] %vm982_vm1, %v1236_v46  ;;  %v1237_v29 = vadd.f32 %v1205_v39, %v4531_v60  ;;  %v4540_v0 = vpop.f32.mrb[35].mxu0 }
 0x167   : > { %6014 = vst [vmem:[#allocation30_spill] sm:$0xff] %v4535_v62  ;;  %6015 = vst [vmem:[#allocation31_spill] sm:$0xff] %v4540_v0 }
 0x168   : > { %1991 = vrot.lane.b32.xlu0 %v4398_v31, %s3387_s27  ;;  %1269 = vst.msk [vmem:[%s3600_s26 + $0xc8] sm:$0xff] %vm982_vm1, %v1237_v29 }
 0x16a   : > { %1993 = vrot.lane.b32.xlu1 %v4408_v38, %s3387_s27 }
 0x16b   : > { %v4549_v35 = vpop.f32.mrb[36].mxu1  ;;  %v4551_v12 = vpop.f32.mrb[36].mxu0 }
 0x16c   : > { %1686 = vrot.lane.b32.xlu0 %v4402_v33, %s3387_s27  ;;  %v4556_v17 = vpop.f32.mrb[37].mxu1  ;;  %v1238_v23 = vadd.f32 %v1206_v7, %v4551_v12  ;;  %v4559_v28 = vpop.f32.mrb[37].mxu0  ;;  %v1208_v7 = vld [vmem:[%s3600_s26 + $0xf0] sm:$0xff] }
 0x16d   : > { %v4561_v39 = vpop.f32.mrb[38].mxu1  ;;  %v4563_v46 = vpop.f32.mrb[38].mxu0 }
 0x16e   : > { %1688 = vrot.lane.b32.xlu1 %v4414_v40, %s3387_s27  ;;  %v4567_v29 = vpop.f32.mrb[39].mxu1  ;;  %1270 = vst.msk [vmem:[%s3600_s26 + $0xd8] sm:$0xff] %vm982_vm1, %v1238_v23  ;;  %v1239_v33 = vadd.f32 %v1207_v15, %v4563_v46  ;;  %v4572_v27 = vpop.f32.mrb[39].mxu0  ;;  %v1209_v23 = vld [vmem:[%s3600_s26 + $0xf8] sm:$0xff] }
 0x170   : > { %2313 = vrot.lane.b32.xlu0 %v4404_v34, %s3387_s27  ;;  %1271 = vst.msk [vmem:[%s3600_s26 + $0xe0] sm:$0xff] %vm982_vm1, %v1239_v33 }
 0x172   : > { %2315 = vrot.lane.b32.xlu1 %v4416_v41, %s3387_s27 }
 0x173   : > { %v4581_v40 = vpop.f32.mrb[40].mxu1  ;;  %v4583_v21 = vpop.f32.mrb[40].mxu0 }
 0x174   : > { %6016 = vst [vmem:[#allocation32_spill] sm:$0xff] %v4581_v40  ;;  %1369 = vrot.lane.b32.xlu0 %v4423_v45, %s3387_s27  ;;  %v4588_v15 = vpop.f32.mrb[41].mxu1  ;;  %v1240_v34 = vadd.f32 %v1208_v7, %v4583_v21  ;;  %v4591_v33 = vpop.f32.mrb[41].mxu0  ;;  %v1210_v7 = vld [vmem:[%s3600_s26 + $0x108] sm:$0xff] }
 0x175   : > { %6017 = vst [vmem:[#allocation33_spill] sm:$0xff] %v4588_v15  ;;  %6018 = vst [vmem:[#allocation34_spill] sm:$0xff] %v4591_v33  ;;  %v4593_v25 = vpop.f32.mrb[42].mxu1  ;;  %v4595_v41 = vpop.f32.mrb[42].mxu0 }
 0x176   : > { %6019 = vst [vmem:[#allocation35_spill] sm:$0xff] %v4593_v25  ;;  %1371 = vrot.lane.b32.xlu1 %v4435_v52, %s3387_s27  ;;  %v4599_v19 = vpop.f32.mrb[43].mxu1  ;;  %1272 = vst.msk [vmem:[%s3600_s26 + $0xf0] sm:$0xff] %vm982_vm1, %v1240_v34  ;;  %v1241_v45 = vadd.f32 %v1209_v23, %v4595_v41  ;;  %v4604_v40 = vpop.f32.mrb[43].mxu0  ;;  %v1211_v34 = vld [vmem:[%s3600_s26 + $0x110] sm:$0xff] }
 0x177   : > { %6020 = vst [vmem:[#allocation36_spill] sm:$0xff] %v4599_v19  ;;  %6021 = vst [vmem:[#allocation37_spill] sm:$0xff] %v4604_v40 }
 0x178   : > { %1995 = vrot.lane.b32.xlu0 %v4426_v47, %s3387_s27  ;;  %1273 = vst.msk [vmem:[%s3600_s26 + $0xf8] sm:$0xff] %vm982_vm1, %v1241_v45 }
 0x17a   : > { %1997 = vrot.lane.b32.xlu1 %v4437_v54, %s3387_s27 }
 0x17b   : > { %v4613_v52 = vpop.f32.mrb[44].mxu1  ;;  %v4615_v19 = vpop.f32.mrb[44].mxu0 }
 0x17c   : > { %6022 = vst [vmem:[#allocation38_spill] sm:$0xff] %v4613_v52  ;;  %1690 = vrot.lane.b32.xlu0 %v4431_v49, %s3387_s27  ;;  %v4620_v23 = vpop.f32.mrb[45].mxu1  ;;  %v1242_v15 = vadd.f32 %v1210_v7, %v4615_v19  ;;  %v4623_v40 = vpop.f32.mrb[45].mxu0 }
 0x17d   : > { %v4625_v45 = vpop.f32.mrb[46].mxu1  ;;  %v4627_v33 = vpop.f32.mrb[46].mxu0 }
 0x17e   : > { %1692 = vrot.lane.b32.xlu1 %v4444_v56, %s3387_s27  ;;  %v4631_v52 = vpop.f32.mrb[47].mxu1  ;;  %1274 = vst.msk [vmem:[%s3600_s26 + $0x108] sm:$0xff] %vm982_vm1, %v1242_v15  ;;  %v1243_v25 = vadd.f32 %v1211_v34, %v4627_v33  ;;  %v4636_v49 = vpop.f32.mrb[47].mxu0 }
 0x180   : > { %2317 = vrot.lane.b32.xlu0 %v4433_v50, %s3387_s27  ;;  %1275 = vst.msk [vmem:[%s3600_s26 + $0x110] sm:$0xff] %vm982_vm1, %v1243_v25 }
 0x182   : > { %2319 = vrot.lane.b32.xlu1 %v4446_v58, %s3387_s27 }
 0x183   : > { %v4644_v7 = vpop.f32.mrb[48].mxu1  ;;  %v4658_v25 = vpop.f32.mrb[48].mxu0 }
 0x184   : > { %1373 = vrot.lane.b32.xlu0 %v4455_v61, %s3387_s27  ;;  %v4648_v56 = vpop.f32.mrb[49].mxu1  ;;  %6025 = vst [vmem:[#allocation41_spill] sm:$0xff] %v4658_v25  ;;  %v4660_v58 = vpop.f32.mrb[49].mxu0 }
 0x185   : > { %6023 = vst [vmem:[#allocation39_spill] sm:$0xff] %v4648_v56  ;;  %v4650_v15 = vpop.f32.mrb[50].mxu1  ;;  %6026 = vst [vmem:[#allocation42_spill] sm:$0xff] %v4660_v58  ;;  %v4664_v61 = vpop.f32.mrb[50].mxu0 }
 0x186   : > { %1375 = vrot.lane.b32.xlu1 %v4466_v4, %s3387_s27  ;;  %v4654_v34 = vpop.f32.mrb[51].mxu1  ;;  %6027 = vst [vmem:[#allocation43_spill] sm:$0xff] %v4664_v61  ;;  %v4668_v56 = vpop.f32.mrb[51].mxu0 }
 0x187   : > { %6024 = vst [vmem:[#allocation40_spill] sm:$0xff] %v4654_v34  ;;  %6028 = vst [vmem:[#allocation44_spill] sm:$0xff] %v4668_v56 }
 0x188   : > { %1999 = vrot.lane.b32.xlu0 %v4458_v63, %s3387_s27 }
 0x18a   : > { %2001 = vrot.lane.b32.xlu1 %v4468_v6, %s3387_s27 }
 0x18b   : > { %v4666_v50 = vpop.f32.mrb[52].mxu1 }
 0x18c   : > { %1694 = vrot.lane.b32.xlu0 %v4462_v1, %s3387_s27  ;;  %v4672_v4 = vpop.f32.mrb[53].mxu1  ;;  %v2737_v1 = vld [vmem:[%s3600_s26 + $0x198] sm:$0xff] }
 0x18d   : > { %6029 = vst [vmem:[#allocation45_spill] sm:$0xff] %v4672_v4  ;;  %v4674_v34 = vpop.f32.mrb[54].mxu1  ;;  %v2762_v4 = vld [vmem:[%s3600_s26 + $0x2c0] sm:$0xff] }
 0x18e   : > { %1696 = vrot.lane.b32.xlu1 %v4474_v8, %s3387_s27  ;;  %v4678_v25 = vpop.f32.mrb[55].mxu1 }
 0x18f   : > { %6030 = vst [vmem:[#allocation46_spill] sm:$0xff] %v4678_v25 }
 0x190   : > { %2321 = vrot.lane.b32.xlu0 %v4464_v2, %s3387_s27 }
 0x192   : > { %2323 = vrot.lane.b32.xlu1 %v4476_v10, %s3387_s27 }
 0x193   : > { %v4684_v61 = vpop.f32.mrb[56].mxu1 }
 0x194   : > { %6031 = vst [vmem:[#allocation47_spill] sm:$0xff] %v4684_v61  ;;  %1377 = vrot.lane.b32.xlu0 %v4485_v13, %s3387_s27  ;;  %v4688_v56 = vpop.f32.mrb[57].mxu1 }
 0x195   : > { %6032 = vst [vmem:[#allocation48_spill] sm:$0xff] %v4688_v56  ;;  %v4690_v58 = vpop.f32.mrb[58].mxu1  ;;  %v2761_v56 = vld [vmem:[%s3600_s26 + $0x2b8] sm:$0xff] }
 0x196   : > { %6033 = vst [vmem:[#allocation49_spill] sm:$0xff] %v4690_v58  ;;  %v1350_v8 = vpop.permute.xlu0 %1349  ;;  %1379 = vrot.lane.b32.xlu1 %v4497_v20, %s3387_s27  ;;  %v4695_v2 = vpop.f32.mrb[59].mxu1 }
 0x197   : > { %6034 = vst [vmem:[#allocation50_spill] sm:$0xff] %v4695_v2  ;;  %v1445_v25 = vadd.f32 %v2737_v1, %v1350_v8 }
 0x198   : > { %v1400_v10 = vpop.permute.xlu1 %1399  ;;  %2003 = vrot.lane.b32.xlu0 %v4487_v14, %s3387_s27 }
 0x199   : > { %2769 = vst.msk [vmem:[%s3600_s26 + $0x198] sm:$0xff] %vm982_vm1, %v1445_v25  ;;  %v1470_v13 = vadd.f32 %v2762_v4, %v1400_v10  ;;  %v1534_v4 = vld [vmem:[%s3600_s26 + $0x129] sm:$0xff] }
 0x19a   : > { %v1398_v58 = vpop.permute.xlu0 %1397  ;;  %2005 = vrot.lane.b32.xlu1 %v4499_v22, %s3387_s27 }
 0x19b   : > { %2794 = vst.msk [vmem:[%s3600_s26 + $0x2c0] sm:$0xff] %vm982_vm1, %v1470_v13  ;;  %v1469_v20 = vadd.f32 %v2761_v56, %v1398_v58  ;;  %v4707_v2 = vpop.f32.mrb[60].mxu1 }
 0x19c   : > { %6035 = vst [vmem:[#allocation51_spill] sm:$0xff] %v4707_v2  ;;  %v4709_v1 = vpop.permute.xlu1 %1672  ;;  %1698 = vrot.lane.b32.xlu0 %v4493_v16, %s3387_s27  ;;  %v4713_v8 = vpop.f32.mrb[61].mxu1  ;;  %v2738_v2 = vld [vmem:[%s3600_s26 + $0x1a0] sm:$0xff] }
 0x19d   : > { %6036 = vst [vmem:[#allocation52_spill] sm:$0xff] %v4713_v8  ;;  %2793 = vst.msk [vmem:[%s3600_s26 + $0x2b8] sm:$0xff] %vm982_vm1, %v1469_v20  ;;  %v4717_v10 = vpop.f32.mrb[62].mxu1  ;;  %v1566_v20 = vadd.f32 %v1534_v4, %v4300_v43  ;;  %v1533_v8 = vld [vmem:[%s3600_s26 + $0x121] sm:$0xff] }
 0x19e   : > { %6037 = vst [vmem:[#allocation53_spill] sm:$0xff] %v4717_v10  ;;  %v4719_v25 = vpop.permute.xlu0 %1670  ;;  %1700 = vrot.lane.b32.xlu1 %v4506_v24, %s3387_s27  ;;  %v4723_v56 = vpop.f32.mrb[63].mxu1  ;;  %v1565_v10 = vadd.f32 %v1533_v8, %v4288_v36  ;;  %v2740_v8 = vld [vmem:[%s3600_s26 + $0x1b8] sm:$0xff] }
 0x19f   : > { %6038 = vst [vmem:[#allocation54_spill] sm:$0xff] %v4723_v56  ;;  %v2739_v56 = vld [vmem:[%s3600_s26 + $0x1b0] sm:$0xff]  ;;  %1598 = vst.msk [vmem:[%s3600_s26 + $0x129] sm:$0xff] %vm982_vm1, %v1566_v20 }
 0x1a0   : > { %v1721_v58 = vpop.permute.xlu1 %1720  ;;  %2325 = vrot.lane.b32.xlu0 %v4495_v18, %s3387_s27  ;;  %1597 = vst.msk [vmem:[%s3600_s26 + $0x121] sm:$0xff] %vm982_vm1, %v1565_v10  ;;  %v2763_v20 = vld [vmem:[%s3600_s26 + $0x2d0] sm:$0xff] }
 0x1a2   : > { %v1719_v13 = vpop.permute.xlu0 %1718  ;;  %2327 = vrot.lane.b32.xlu1 %v4508_v26, %s3387_s27 }
 0x1a3   : > { %v4731_v16 = vpop.f32.mrb[64].mxu1 }
 0x1a4   : > { %v1354_v24 = vpop.permute.xlu1 %1353  ;;  %1381 = vrot.lane.b32.xlu0 %v4519_v32, %s3387_s27  ;;  %v4737_v18 = vpop.f32.mrb[65].mxu1 }
 0x1a5   : > { %v1447_v26 = vadd.f32 %v2739_v56, %v1354_v24  ;;  %v4742_v43 = vpop.f32.mrb[66].mxu1  ;;  %v4756_v24 = vpop.f32.mrb[52].mxu0 }
 0x1a6   : > { %v1352_v4 = vpop.permute.xlu0 %1351  ;;  %1383 = vrot.lane.b32.xlu1 %v4531_v60, %s3387_s27  ;;  %v4747_v61 = vpop.f32.mrb[67].mxu1  ;;  %6039 = vst [vmem:[#allocation55_spill] sm:$0xff] %v4756_v24 }
 0x1a7   : > { %2771 = vst.msk [vmem:[%s3600_s26 + $0x1b0] sm:$0xff] %vm982_vm1, %v1447_v26  ;;  %v1446_v32 = vadd.f32 %v2738_v2, %v1352_v4  ;;  %v4760_v56 = vpop.f32.mrb[53].mxu0 }
 0x1a8   : > { %v1356_v36 = vpop.permute.xlu1 %1355  ;;  %2007 = vrot.lane.b32.xlu0 %v4517_v30, %s3387_s27  ;;  %6040 = vst [vmem:[#allocation56_spill] sm:$0xff] %v4760_v56  ;;  %v4765_v2 = vpop.f32.mrb[54].mxu0 }
 0x1a9   : > { %2770 = vst.msk [vmem:[%s3600_s26 + $0x1a0] sm:$0xff] %vm982_vm1, %v1446_v32  ;;  %v1448_v60 = vadd.f32 %v2740_v8, %v1356_v36  ;;  %6041 = vst [vmem:[#allocation57_spill] sm:$0xff] %v4765_v2  ;;  %v4771_v24 = vpop.f32.mrb[55].mxu0  ;;  %v2764_v32 = vld [vmem:[%s3600_s26 + $0x2d8] sm:$0xff]  ;;  %v2825_v2 = vld [vmem:[%s3600_s26 + $0x450] sm:$0xff] }
 0x1aa   : > { %v1402_v10 = vpop.permute.xlu0 %1401  ;;  %2009 = vrot.lane.b32.xlu1 %v4529_v55, %s3387_s27  ;;  %6042 = vst [vmem:[#allocation58_spill] sm:$0xff] %v4771_v24 }
 0x1ab   : > { %2772 = vst.msk [vmem:[%s3600_s26 + $0x1b8] sm:$0xff] %vm982_vm1, %v1448_v60  ;;  %v1471_v26 = vadd.f32 %v2763_v20, %v1402_v10  ;;  %v4769_v4 = vpop.f32.mrb[68].mxu1  ;;  %v2826_v10 = vld [vmem:[%s3600_s26 + $0x458] sm:$0xff] }
 0x1ac   : > { %v1404_v36 = vpop.permute.xlu1 %1403  ;;  %1702 = vrot.lane.b32.xlu0 %v4527_v48, %s3387_s27  ;;  %v4776_v8 = vpop.f32.mrb[69].mxu1  ;;  %v1791_v48 = vadd.f32 %v2826_v10, %v1721_v58 }
 0x1ad   : > { %6043 = vst [vmem:[#allocation59_spill] sm:$0xff] %v4776_v8  ;;  %2795 = vst.msk [vmem:[%s3600_s26 + $0x2d0] sm:$0xff] %vm982_vm1, %v1471_v26  ;;  %v1472_v60 = vadd.f32 %v2764_v32, %v1404_v36  ;;  %v4780_v20 = vpop.f32.mrb[70].mxu1  ;;  %v1790_v8 = vadd.f32 %v2825_v2, %v1719_v13  ;;  %v1509_v26 = vld [vmem:[%s3600_s26 + $0x1] sm:$0xff]  ;;  %v1510_v32 = vld [vmem:[%s3600_s26 + $0x9] sm:$0xff] }
 0x1ae   : > { %v4784_v24 = vpop.permute.xlu0 %1674  ;;  %1704 = vrot.lane.b32.xlu1 %v4540_v0, %s3387_s27  ;;  %v4788_v56 = vpop.f32.mrb[71].mxu1  ;;  %2858 = vst.msk [vmem:[%s3600_s26 + $0x458] sm:$0xff] %vm982_vm1, %v1791_v48  ;;  %v1541_v0 = vadd.f32 %v1509_v26, %v4291_v37  ;;  %v1542_v58 = vadd.f32 %v1510_v32, %v4298_v42  ;;  %v1511_v13 = vld [vmem:[%s3600_s26 + $0x19] sm:$0xff]  ;;  %v1512_v2 = vld [vmem:[%s3600_s26 + $0x21] sm:$0xff] }
 0x1af   : > { %2796 = vst.msk [vmem:[%s3600_s26 + $0x2d8] sm:$0xff] %vm982_vm1, %v1472_v60  ;;  %2857 = vst.msk [vmem:[%s3600_s26 + $0x450] sm:$0xff] %vm982_vm1, %v1790_v8  ;;  %v1543_v48 = vadd.f32 %v1511_v13, %v4315_v51  ;;  %v1544_v37 = vadd.f32 %v1512_v2, %v4323_v57  ;;  %v1535_v57 = vld [vmem:[%s3600_s26 + $0x139] sm:$0xff]  ;;  %v2741_v32 = vld [vmem:[%s3600_s26 + $0x1c8] sm:$0xff] }
 0x1b0   : > { %v4794_v36 = vpop.permute.xlu1 %1676  ;;  %2329 = vrot.lane.b32.xlu0 %v4524_v44, %s3387_s27  ;;  %1573 = vst.msk [vmem:[%s3600_s26 + $0x1] sm:$0xff] %vm982_vm1, %v1541_v0  ;;  %1574 = vst.msk [vmem:[%s3600_s26 + $0x9] sm:$0xff] %vm982_vm1, %v1542_v58  ;;  %v1536_v0 = vld [vmem:[%s3600_s26 + $0x141] sm:$0xff]  ;;  %v1567_v58 = vadd.f32 %v1535_v57, %v4317_v53 }
 0x1b1   : > { %1575 = vst.msk [vmem:[%s3600_s26 + $0x19] sm:$0xff] %vm982_vm1, %v1543_v48  ;;  %1576 = vst.msk [vmem:[%s3600_s26 + $0x21] sm:$0xff] %vm982_vm1, %v1544_v37  ;;  %v1568_v13 = vadd.f32 %v1536_v0, %v4327_v59  ;;  %v2889_v48 = vld [vmem:[%s3600_s26 + $0x5e8] sm:$0xff]  ;;  %v2890_v37 = vld [vmem:[%s3600_s26 + $0x5f0] sm:$0xff] }
 0x1b2   : > { %v4806_v60 = vpop.permute.xlu0 %1722  ;;  %2331 = vrot.lane.b32.xlu1 %v4535_v62, %s3387_s27  ;;  %v2742_v44 = vld [vmem:[%s3600_s26 + $0x1d0] sm:$0xff]  ;;  %1599 = vst.msk [vmem:[%s3600_s26 + $0x139] sm:$0xff] %vm982_vm1, %v1567_v58  ;;  %v1887_v53 = vadd.f32 %v2889_v48, %v4731_v16  ;;  %v1888_v59 = vadd.f32 %v2890_v37, %v4742_v43  ;;  %v2765_v57 = vld [vmem:[%s3600_s26 + $0x2e8] sm:$0xff] }
 0x1b3   : > { %v4816_v8 = vpop.f32.mrb[72].mxu1  ;;  %1600 = vst.msk [vmem:[%s3600_s26 + $0x141] sm:$0xff] %vm982_vm1, %v1568_v13  ;;  %v2802_v0 = vld [vmem:[%s3600_s26 + $0x338] sm:$0xff]  ;;  %v3023_v58 = vld [vmem:[%s3600_s26 + $0x180] sm:$0xff]  ;;  %v2803_v37 = vld [vmem:[%s3600_s26 + $0x348] sm:$0xff] }
 0x1b4   : > { %v4818_v42 = vpop.permute.xlu1 %1724  ;;  %1385 = vrot.lane.b32.xlu0 %v4551_v12, %s3387_s27  ;;  %v4822_v10 = vpop.f32.mrb[73].mxu1  ;;  %v1767_v13 = vadd.f32 %v2802_v0, %v4709_v1  ;;  %2921 = vst.msk [vmem:[%s3600_s26 + $0x5e8] sm:$0xff] %vm982_vm1, %v1887_v53  ;;  %2922 = vst.msk [vmem:[%s3600_s26 + $0x5f0] sm:$0xff] %vm982_vm1, %v1888_v59  ;;  %v3024_v53 = vld [vmem:[%s3600_s26 + $0x188] sm:$0xff] }
 0x1b5   : > { %6044 = vst [vmem:[#allocation60_spill] sm:$0xff] %v4822_v10  ;;  %v4828_v51 = vpop.f32.mrb[74].mxu1 }
 0x1b6   : > { %v1358_v26 = vpop.permute.xlu0 %1357  ;;  %1387 = vrot.lane.b32.xlu1 %v4563_v46, %s3387_s27  ;;  %v4835_v12 = vpop.f32.mrb[75].mxu1  ;;  %2834 = vst.msk [vmem:[%s3600_s26 + $0x338] sm:$0xff] %vm982_vm1, %v1767_v13 }
 0x1b7   : > { %6045 = vst [vmem:[#allocation61_spill] sm:$0xff] %v4835_v12  ;;  %v1449_v2 = vadd.f32 %v2741_v32, %v1358_v26  ;;  %v2801_v32 = vld [vmem:[%s3600_s26 + $0x330] sm:$0xff] }
 0x1b8   : > { %v1360_v62 = vpop.permute.xlu1 %1359  ;;  %2011 = vrot.lane.b32.xlu0 %v4549_v35, %s3387_s27  ;;  %v2804_v12 = vld [vmem:[%s3600_s26 + $0x350] sm:$0xff] }
 0x1b9   : > { %2773 = vst.msk [vmem:[%s3600_s26 + $0x1c8] sm:$0xff] %vm982_vm1, %v1449_v2  ;;  %v1450_v46 = vadd.f32 %v2742_v44, %v1360_v62  ;;  %v2766_v62 = vld [vmem:[%s3600_s26 + $0x2f0] sm:$0xff]  ;;  %v1766_v2 = vadd.f32 %v2801_v32, %v4719_v25  ;;  %v1768_v25 = vadd.f32 %v2803_v37, %v4784_v24  ;;  %v1769_v59 = vadd.f32 %v2804_v12, %v4794_v36 }
 0x1ba   : > { %v1406_v26 = vpop.permute.xlu0 %1405  ;;  %2013 = vrot.lane.b32.xlu1 %v4561_v39, %s3387_s27  ;;  %v2828_v12 = vld [vmem:[%s3600_s26 + $0x470] sm:$0xff] }
 0x1bb   : > { %2774 = vst.msk [vmem:[%s3600_s26 + $0x1d0] sm:$0xff] %vm982_vm1, %v1450_v46  ;;  %v1473_v44 = vadd.f32 %v2765_v57, %v1406_v26  ;;  %v4867_v48 = vpop.f32.mrb[76].mxu1  ;;  %2833 = vst.msk [vmem:[%s3600_s26 + $0x330] sm:$0xff] %vm982_vm1, %v1766_v2  ;;  %v1793_v13 = vadd.f32 %v2828_v12, %v4818_v42 }
 0x1bc   : > { %v1408_v10 = vpop.permute.xlu1 %1407  ;;  %1706 = vrot.lane.b32.xlu0 %v4559_v28, %s3387_s27  ;;  %v4873_v1 = vpop.f32.mrb[77].mxu1  ;;  %2835 = vst.msk [vmem:[%s3600_s26 + $0x348] sm:$0xff] %vm982_vm1, %v1768_v25  ;;  %2836 = vst.msk [vmem:[%s3600_s26 + $0x350] sm:$0xff] %vm982_vm1, %v1769_v59  ;;  %v2866_v25 = vld [vmem:[%s3600_s26 + $0x4d0] sm:$0xff] }
 0x1bd   : > { %2797 = vst.msk [vmem:[%s3600_s26 + $0x2e8] sm:$0xff] %vm982_vm1, %v1473_v44  ;;  %v1474_v46 = vadd.f32 %v2766_v62, %v1408_v10  ;;  %v2214_v57 = vadd.f32 %v3023_v58, %v4873_v1  ;;  %v4885_v0 = vpop.f32.mrb[78].mxu1  ;;  %v2827_v10 = vld [vmem:[%s3600_s26 + $0x468] sm:$0xff]  ;;  %v1513_v44 = vld [vmem:[%s3600_s26 + $0x31] sm:$0xff]  ;;  %v1514_v62 = vld [vmem:[%s3600_s26 + $0x39] sm:$0xff] }
 0x1be   : > { %v4887_v26 = vpop.permute.xlu0 %1678  ;;  %1708 = vrot.lane.b32.xlu1 %v4572_v27, %s3387_s27  ;;  %v4891_v24 = vpop.f32.mrb[79].mxu1  ;;  %v1792_v58 = vadd.f32 %v2827_v10, %v4806_v60  ;;  %2860 = vst.msk [vmem:[%s3600_s26 + $0x470] sm:$0xff] %vm982_vm1, %v1793_v13  ;;  %v1545_v60 = vadd.f32 %v1513_v44, %v4341_v3  ;;  %v1546_v42 = vadd.f32 %v1514_v62, %v4348_v9  ;;  %v2743_v59 = vld [vmem:[%s3600_s26 + $0x1e0] sm:$0xff]  ;;  %v2744_v44 = vld [vmem:[%s3600_s26 + $0x1e8] sm:$0xff] }
 0x1bf   : > { %2798 = vst.msk [vmem:[%s3600_s26 + $0x2f0] sm:$0xff] %vm982_vm1, %v1474_v46  ;;  %3055 = vst.msk [vmem:[%s3600_s26 + $0x180] sm:$0xff] %vm982_vm1, %v2214_v57  ;;  %v2215_v36 = vadd.f32 %v3024_v53, %v4891_v24  ;;  %v2865_v53 = vld [vmem:[%s3600_s26 + $0x4c8] sm:$0xff]  ;;  %v1864_v9 = vadd.f32 %v2866_v25, %v4408_v38  ;;  %v2867_v46 = vld [vmem:[%s3600_s26 + $0x4e0] sm:$0xff] }
 0x1c0   : > { %v4904_v32 = vpop.permute.xlu1 %1680  ;;  %2333 = vrot.lane.b32.xlu0 %v4556_v17, %s3387_s27  ;;  %2859 = vst.msk [vmem:[%s3600_s26 + $0x468] sm:$0xff] %vm982_vm1, %v1792_v58  ;;  %1577 = vst.msk [vmem:[%s3600_s26 + $0x31] sm:$0xff] %vm982_vm1, %v1545_v60  ;;  %v1863_v3 = vadd.f32 %v2865_v53, %v4398_v31  ;;  %v1537_v57 = vld [vmem:[%s3600_s26 + $0x151] sm:$0xff]  ;;  %v1865_v10 = vadd.f32 %v2867_v46, %v4426_v47 }
 0x1c1   : > { %3056 = vst.msk [vmem:[%s3600_s26 + $0x188] sm:$0xff] %vm982_vm1, %v2215_v36  ;;  %1578 = vst.msk [vmem:[%s3600_s26 + $0x39] sm:$0xff] %vm982_vm1, %v1546_v42  ;;  %v1538_v36 = vld [vmem:[%s3600_s26 + $0x159] sm:$0xff]  ;;  %v1569_v12 = vadd.f32 %v1537_v57, %v4343_v5  ;;  %v2868_v38 = vld [vmem:[%s3600_s26 + $0x4e8] sm:$0xff]  ;;  %v4954_v5 = vpop.f32.mrb[56].mxu0 }
 0x1c2   : > { %v4914_v2 = vpop.permute.xlu0 %1726  ;;  %2335 = vrot.lane.b32.xlu1 %v4567_v29, %s3387_s27  ;;  %v1570_v58 = vadd.f32 %v1538_v36, %v4352_v11  ;;  %2897 = vst.msk [vmem:[%s3600_s26 + $0x4c8] sm:$0xff] %vm982_vm1, %v1863_v3  ;;  %2898 = vst.msk [vmem:[%s3600_s26 + $0x4d0] sm:$0xff] %vm982_vm1, %v1864_v9  ;;  %v1866_v47 = vadd.f32 %v2868_v38, %v4437_v54  ;;  %v4964_v62 = vpop.f32.mrb[57].mxu0  ;;  %v2891_v60 = vld [vmem:[%s3600_s26 + $0x600] sm:$0xff]  ;;  %v6047_v25 = vld [vmem:[#allocation35_spill] sm:$0xff] }
 0x1c3   : > { %2899 = vst.msk [vmem:[%s3600_s26 + $0x4e0] sm:$0xff] %vm982_vm1, %v1865_v10  ;;  %1601 = vst.msk [vmem:[%s3600_s26 + $0x151] sm:$0xff] %vm982_vm1, %v1569_v12  ;;  %v2892_v42 = vld [vmem:[%s3600_s26 + $0x608] sm:$0xff]  ;;  %v2767_v54 = vld [vmem:[%s3600_s26 + $0x300] sm:$0xff]  ;;  %v1889_v3 = vadd.f32 %v2891_v60, %v4769_v4 }
 0x1c4   : > { %v4924_v37 = vpop.permute.xlu1 %1728  ;;  %1389 = vrot.lane.b32.xlu0 %v4583_v21, %s3387_s27  ;;  %1602 = vst.msk [vmem:[%s3600_s26 + $0x159] sm:$0xff] %vm982_vm1, %v1570_v58  ;;  %2900 = vst.msk [vmem:[%s3600_s26 + $0x4e8] sm:$0xff] %vm982_vm1, %v1866_v47  ;;  %v1890_v9 = vadd.f32 %v2892_v42, %v4780_v20  ;;  %v2805_v36 = vld [vmem:[%s3600_s26 + $0x360] sm:$0xff] }
 0x1c5   : > { %v2768_v10 = vld [vmem:[%s3600_s26 + $0x308] sm:$0xff]  ;;  %2923 = vst.msk [vmem:[%s3600_s26 + $0x600] sm:$0xff] %vm982_vm1, %v1889_v3  ;;  %v6050_v47 = vld [vmem:[#allocation37_spill] sm:$0xff]  ;;  %v1516_v3 = vld [vmem:[%s3600_s26 + $0x51] sm:$0xff] }
 0x1c6   : > { %v1362_v21 = vpop.permute.xlu0 %1361  ;;  %1391 = vrot.lane.b32.xlu1 %v4595_v41, %s3387_s27  ;;  %v6046_v41 = vld [vmem:[#allocation32_spill] sm:$0xff]  ;;  %v6049_v58 = vld [vmem:[#allocation34_spill] sm:$0xff]  ;;  %2924 = vst.msk [vmem:[%s3600_s26 + $0x608] sm:$0xff] %vm982_vm1, %v1890_v9  ;;  %v6051_v60 = vld [vmem:[#allocation33_spill] sm:$0xff] }
 0x1c7   : > { %v1451_v31 = vadd.f32 %v2743_v59, %v1362_v21  ;;  %v4973_v59 = vpop.f32.mrb[58].mxu0  ;;  %v2806_v21 = vld [vmem:[%s3600_s26 + $0x368] sm:$0xff] }
 0x1c8   : > { %v1364_v13 = vpop.permute.xlu1 %1363  ;;  %2015 = vrot.lane.b32.xlu0 %v6046_v41, %s3387_s27  ;;  %6048 = vst [vmem:[#allocation32_spill] sm:$0xff] %v4973_v59  ;;  %v4979_v57 = vpop.f32.mrb[59].mxu0  ;;  %v1771_v38 = vadd.f32 %v2806_v21, %v4904_v32  ;;  %v2830_v32 = vld [vmem:[%s3600_s26 + $0x488] sm:$0xff] }
 0x1c9   : > { %2775 = vst.msk [vmem:[%s3600_s26 + $0x1e0] sm:$0xff] %vm982_vm1, %v1451_v31  ;;  %v1452_v11 = vadd.f32 %v2744_v44, %v1364_v13  ;;  %v1770_v31 = vadd.f32 %v2805_v36, %v4887_v26  ;;  %v2829_v26 = vld [vmem:[%s3600_s26 + $0x480] sm:$0xff]  ;;  %v6053_v36 = vld [vmem:[#allocation8_spill] sm:$0xff] }
 0x1ca   : > { %v1410_v53 = vpop.permute.xlu0 %1409  ;;  %2017 = vrot.lane.b32.xlu1 %v6047_v25, %s3387_s27  ;;  %2838 = vst.msk [vmem:[%s3600_s26 + $0x368] sm:$0xff] %vm982_vm1, %v1771_v38  ;;  %v1794_v42 = vadd.f32 %v2829_v26, %v4914_v2  ;;  %v1539_v38 = vld [vmem:[%s3600_s26 + $0x169] sm:$0xff] }
 0x1cb   : > { %2776 = vst.msk [vmem:[%s3600_s26 + $0x1e8] sm:$0xff] %vm982_vm1, %v1452_v11  ;;  %v1475_v46 = vadd.f32 %v2767_v54, %v1410_v53  ;;  %2837 = vst.msk [vmem:[%s3600_s26 + $0x360] sm:$0xff] %vm982_vm1, %v1770_v31  ;;  %v1795_v54 = vadd.f32 %v2830_v32, %v4924_v37  ;;  %v1515_v53 = vld [vmem:[%s3600_s26 + $0x49] sm:$0xff]  ;;  %v2745_v37 = vld [vmem:[%s3600_s26 + $0x1f8] sm:$0xff] }
 0x1cc   : > { %v1412_v12 = vpop.permute.xlu1 %1411  ;;  %1710 = vrot.lane.b32.xlu0 %v6049_v58, %s3387_s27  ;;  %2861 = vst.msk [vmem:[%s3600_s26 + $0x480] sm:$0xff] %vm982_vm1, %v1794_v42  ;;  %v1547_v21 = vadd.f32 %v1515_v53, %v6053_v36  ;;  %v2869_v31 = vld [vmem:[%s3600_s26 + $0x4f8] sm:$0xff]  ;;  %v2870_v36 = vld [vmem:[%s3600_s26 + $0x500] sm:$0xff] }
 0x1cd   : > { %2799 = vst.msk [vmem:[%s3600_s26 + $0x300] sm:$0xff] %vm982_vm1, %v1475_v46  ;;  %v1476_v13 = vadd.f32 %v2768_v10, %v1412_v12  ;;  %v6052_v46 = vld [vmem:[#allocation36_spill] sm:$0xff]  ;;  %2862 = vst.msk [vmem:[%s3600_s26 + $0x488] sm:$0xff] %vm982_vm1, %v1795_v54  ;;  %v6054_v10 = vld [vmem:[#allocation10_spill] sm:$0xff]  ;;  %v1868_v59 = vadd.f32 %v2870_v36, %v4468_v6 }
 0x1ce   : > { %v1683_v44 = vpop.permute.xlu0 %1682  ;;  %1712 = vrot.lane.b32.xlu1 %v6050_v47, %s3387_s27  ;;  %v1548_v12 = vadd.f32 %v1516_v3, %v6054_v10  ;;  %1579 = vst.msk [vmem:[%s3600_s26 + $0x49] sm:$0xff] %vm982_vm1, %v1547_v21  ;;  %v6055_v32 = vld [vmem:[#allocation9_spill] sm:$0xff]  ;;  %v6056_v54 = vld [vmem:[#allocation11_spill] sm:$0xff] }
 0x1cf   : > { %2800 = vst.msk [vmem:[%s3600_s26 + $0x308] sm:$0xff] %vm982_vm1, %v1476_v13  ;;  %v1540_v13 = vld [vmem:[%s3600_s26 + $0x171] sm:$0xff]  ;;  %v1571_v42 = vadd.f32 %v1539_v38, %v6055_v32  ;;  %v2746_v10 = vld [vmem:[%s3600_s26 + $0x200] sm:$0xff]  ;;  %2902 = vst.msk [vmem:[%s3600_s26 + $0x500] sm:$0xff] %vm982_vm1, %v1868_v59 }
 0x1d0   : > { %v1685_v11 = vpop.permute.xlu1 %1684  ;;  %2337 = vrot.lane.b32.xlu0 %v6051_v60, %s3387_s27  ;;  %1580 = vst.msk [vmem:[%s3600_s26 + $0x51] sm:$0xff] %vm982_vm1, %v1548_v12  ;;  %v1572_v53 = vadd.f32 %v1540_v13, %v6056_v54  ;;  %v6057_v12 = vld [vmem:[#allocation38_spill] sm:$0xff] }
 0x1d1   : > { %1603 = vst.msk [vmem:[%s3600_s26 + $0x169] sm:$0xff] %vm982_vm1, %v1571_v42  ;;  %v2808_v32 = vld [vmem:[%s3600_s26 + $0x380] sm:$0xff] }
 0x1d2   : > { %v1731_v9 = vpop.permute.xlu0 %1730  ;;  %2339 = vrot.lane.b32.xlu1 %v6052_v46, %s3387_s27  ;;  %1604 = vst.msk [vmem:[%s3600_s26 + $0x171] sm:$0xff] %vm982_vm1, %v1572_v53  ;;  %v2930_v42 = vld [vmem:[%s3600_s26 + $0x339] sm:$0xff]  ;;  %v1773_v53 = vadd.f32 %v2808_v32, %v1685_v11  ;;  %v2747_v32 = vld [vmem:[%s3600_s26 + $0x210] sm:$0xff] }
 0x1d3   : > { %v2832_v11 = vld [vmem:[%s3600_s26 + $0x4a0] sm:$0xff] }
 0x1d4   : > { %v1733_v2 = vpop.permute.xlu1 %1732  ;;  %1393 = vrot.lane.b32.xlu0 %v4615_v19, %s3387_s27  ;;  %v1867_v19 = vadd.f32 %v2869_v31, %v4458_v63  ;;  %v2929_v31 = vld [vmem:[%s3600_s26 + $0x331] sm:$0xff]  ;;  %2840 = vst.msk [vmem:[%s3600_s26 + $0x380] sm:$0xff] %vm982_vm1, %v1773_v53 }
 0x1d6   : > { %v1366_v26 = vpop.permute.xlu0 %1365  ;;  %1395 = vrot.lane.b32.xlu1 %v4627_v33, %s3387_s27  ;;  %2901 = vst.msk [vmem:[%s3600_s26 + $0x4f8] sm:$0xff] %vm982_vm1, %v1867_v19  ;;  %v2893_v33 = vld [vmem:[%s3600_s26 + $0x618] sm:$0xff] }
 0x1d7   : > { %v1453_v3 = vadd.f32 %v2745_v37, %v1366_v26  ;;  %v2894_v37 = vld [vmem:[%s3600_s26 + $0x620] sm:$0xff]  ;;  %v1891_v6 = vadd.f32 %v2893_v33, %v4816_v8  ;;  %v2807_v19 = vld [vmem:[%s3600_s26 + $0x378] sm:$0xff] }
 0x1d8   : > { %v1368_v21 = vpop.permute.xlu1 %1367  ;;  %2019 = vrot.lane.b32.xlu0 %v6057_v12, %s3387_s27  ;;  %v1892_v13 = vadd.f32 %v2894_v37, %v4828_v51  ;;  %v1772_v59 = vadd.f32 %v2807_v19, %v1683_v44  ;;  %v2831_v44 = vld [vmem:[%s3600_s26 + $0x498] sm:$0xff]  ;;  %v1517_v33 = vld [vmem:[%s3600_s26 + $0x61] sm:$0xff]  ;;  %v1518_v37 = vld [vmem:[%s3600_s26 + $0x69] sm:$0xff] }
 0x1d9   : > { %2777 = vst.msk [vmem:[%s3600_s26 + $0x1f8] sm:$0xff] %vm982_vm1, %v1453_v3  ;;  %v1454_v63 = vadd.f32 %v2746_v10, %v1368_v21  ;;  %2925 = vst.msk [vmem:[%s3600_s26 + $0x618] sm:$0xff] %vm982_vm1, %v1891_v6  ;;  %v1796_v10 = vadd.f32 %v2831_v44, %v1731_v9  ;;  %v2748_v44 = vld [vmem:[%s3600_s26 + $0x218] sm:$0xff] }
 0x1da   : > { %v1992_v38 = vpop.permute.xlu0 %1991  ;;  %2021 = vrot.lane.b32.xlu1 %v4625_v45, %s3387_s27  ;;  %2926 = vst.msk [vmem:[%s3600_s26 + $0x620] sm:$0xff] %vm982_vm1, %v1892_v13  ;;  %2839 = vst.msk [vmem:[%s3600_s26 + $0x378] sm:$0xff] %vm982_vm1, %v1772_v59  ;;  %v6059_v13 = vld [vmem:[#allocation14_spill] sm:$0xff] }
 0x1db   : > { %2778 = vst.msk [vmem:[%s3600_s26 + $0x200] sm:$0xff] %vm982_vm1, %v1454_v63  ;;  %v2087_v26 = vadd.f32 %v2929_v31, %v1992_v38  ;;  %v1797_v63 = vadd.f32 %v2832_v11, %v1733_v2  ;;  %2863 = vst.msk [vmem:[%s3600_s26 + $0x498] sm:$0xff] %vm982_vm1, %v1796_v10  ;;  %v6058_v38 = vld [vmem:[#allocation12_spill] sm:$0xff]  ;;  %v6060_v11 = vld [vmem:[#allocation39_spill] sm:$0xff]  ;;  %v5110_v10 = vpop.f32.mrb[60].mxu0 }
 0x1dc   : > { %v1994_v54 = vpop.permute.xlu1 %1993  ;;  %1714 = vrot.lane.b32.xlu0 %v4623_v40, %s3387_s27  ;;  %v1549_v6 = vadd.f32 %v1517_v33, %v6058_v38  ;;  %v2871_v2 = vld [vmem:[%s3600_s26 + $0x510] sm:$0xff]  ;;  %6061 = vst [vmem:[#allocation35_spill] sm:$0xff] %v5110_v10  ;;  %v2896_v33 = vld [vmem:[%s3600_s26 + $0x638] sm:$0xff]  ;;  %v2873_v10 = vld [vmem:[%s3600_s26 + $0x528] sm:$0xff] }
 0x1dd   : > { %2961 = vst.msk [vmem:[%s3600_s26 + $0x331] sm:$0xff] %vm982_vm1, %v2087_v26  ;;  %v2088_v3 = vadd.f32 %v2930_v42, %v1994_v54  ;;  %2864 = vst.msk [vmem:[%s3600_s26 + $0x4a0] sm:$0xff] %vm982_vm1, %v1797_v63  ;;  %v1550_v26 = vadd.f32 %v1518_v37, %v6059_v13  ;;  %v2872_v42 = vld [vmem:[%s3600_s26 + $0x518] sm:$0xff]  ;;  %v1869_v54 = vadd.f32 %v2871_v2, %v4487_v14  ;;  %v5118_v14 = vpop.f32.mrb[61].mxu0  ;;  %v2931_v37 = vld [vmem:[%s3600_s26 + $0x349] sm:$0xff] }
 0x1de   : > { %v1687_v36 = vpop.permute.xlu0 %1686  ;;  %1716 = vrot.lane.b32.xlu1 %v4636_v49, %s3387_s27  ;;  %1581 = vst.msk [vmem:[%s3600_s26 + $0x61] sm:$0xff] %vm982_vm1, %v1549_v6  ;;  %v1870_v53 = vadd.f32 %v2872_v42, %v4499_v22  ;;  %6062 = vst [vmem:[#allocation34_spill] sm:$0xff] %v5118_v14  ;;  %v2895_v22 = vld [vmem:[%s3600_s26 + $0x630] sm:$0xff]  ;;  %v5125_v13 = vpop.f32.mrb[62].mxu0  ;;  %v1894_v2 = vadd.f32 %v2896_v33, %v4885_v0  ;;  %v1519_v33 = vld [vmem:[%s3600_s26 + $0x79] sm:$0xff] }
 0x1df   : > { %2962 = vst.msk [vmem:[%s3600_s26 + $0x339] sm:$0xff] %vm982_vm1, %v2088_v3  ;;  %1582 = vst.msk [vmem:[%s3600_s26 + $0x69] sm:$0xff] %vm982_vm1, %v1550_v26  ;;  %v6063_v6 = vld [vmem:[#allocation40_spill] sm:$0xff]  ;;  %v1893_v26 = vadd.f32 %v2895_v22, %v4867_v48 }
 0x1e0   : > { %v1689_v21 = vpop.permute.xlu1 %1688  ;;  %2341 = vrot.lane.b32.xlu0 %v4620_v23, %s3387_s27  ;;  %2903 = vst.msk [vmem:[%s3600_s26 + $0x510] sm:$0xff] %vm982_vm1, %v1869_v54  ;;  %2904 = vst.msk [vmem:[%s3600_s26 + $0x518] sm:$0xff] %vm982_vm1, %v1870_v53  ;;  %v2809_v42 = vld [vmem:[%s3600_s26 + $0x390] sm:$0xff] }
 0x1e1   : > { %6064 = vst [vmem:[#allocation37_spill] sm:$0xff] %v5125_v13  ;;  %v2810_v54 = vld [vmem:[%s3600_s26 + $0x398] sm:$0xff]  ;;  %2927 = vst.msk [vmem:[%s3600_s26 + $0x630] sm:$0xff] %vm982_vm1, %v1893_v26  ;;  %v6067_v26 = vld [vmem:[#allocation46_spill] sm:$0xff] }
 0x1e2   : > { %v5082_v31 = vpop.permute.xlu0 %2313  ;;  %2343 = vrot.lane.b32.xlu1 %v4631_v52, %s3387_s27  ;;  %2928 = vst.msk [vmem:[%s3600_s26 + $0x638] sm:$0xff] %vm982_vm1, %v1894_v2  ;;  %v6068_v2 = vld [vmem:[#allocation16_spill] sm:$0xff]  ;;  %v2749_v13 = vld [vmem:[%s3600_s26 + $0x228] sm:$0xff] }
 0x1e3   : > { %v6074_v14 = vld [vmem:[#allocation48_spill] sm:$0xff] }
 0x1e4   : > { %v5092_v9 = vpop.permute.xlu1 %2315  ;;  %2023 = vrot.lane.b32.xlu0 %v4644_v7, %s3387_s27 }
 0x1e6   : > { %v1370_v19 = vpop.permute.xlu0 %1369  ;;  %2025 = vrot.lane.b32.xlu1 %v4650_v15, %s3387_s27 }
 0x1e7   : > { %v1455_v59 = vadd.f32 %v2747_v32, %v1370_v19  ;;  %v5131_v32 = vpop.f32.mrb[63].mxu0 }
 0x1e8   : > { %v1372_v3 = vpop.permute.xlu1 %1371  ;;  %2345 = vrot.lane.b32.xlu0 %v6060_v11, %s3387_s27  ;;  %6065 = vst [vmem:[#allocation33_spill] sm:$0xff] %v5131_v32  ;;  %v2750_v32 = vld [vmem:[%s3600_s26 + $0x230] sm:$0xff] }
 0x1e9   : > { %2779 = vst.msk [vmem:[%s3600_s26 + $0x210] sm:$0xff] %vm982_vm1, %v1455_v59  ;;  %v1456_v63 = vadd.f32 %v2748_v44, %v1372_v3  ;;  %v2932_v59 = vld [vmem:[%s3600_s26 + $0x351] sm:$0xff]  ;;  %v1774_v3 = vadd.f32 %v2809_v42, %v1687_v36  ;;  %v1775_v44 = vadd.f32 %v2810_v54, %v1689_v21  ;;  %v6066_v21 = vld [vmem:[#allocation45_spill] sm:$0xff]  ;;  %v6069_v42 = vld [vmem:[#allocation18_spill] sm:$0xff] }
 0x1ea   : > { %v1996_v38 = vpop.permute.xlu0 %1995  ;;  %2347 = vrot.lane.b32.xlu1 %v6063_v6, %s3387_s27 }
 0x1eb   : > { %2780 = vst.msk [vmem:[%s3600_s26 + $0x218] sm:$0xff] %vm982_vm1, %v1456_v63  ;;  %v2089_v19 = vadd.f32 %v2931_v37, %v1996_v38  ;;  %2841 = vst.msk [vmem:[%s3600_s26 + $0x390] sm:$0xff] %vm982_vm1, %v1774_v3  ;;  %v1520_v37 = vld [vmem:[%s3600_s26 + $0x81] sm:$0xff]  ;;  %v6070_v3 = vld [vmem:[#allocation47_spill] sm:$0xff] }
 0x1ec   : > { %v1998_v53 = vpop.permute.xlu1 %1997  ;;  %2027 = vrot.lane.b32.xlu0 %v4666_v50, %s3387_s27  ;;  %2842 = vst.msk [vmem:[%s3600_s26 + $0x398] sm:$0xff] %vm982_vm1, %v1775_v44  ;;  %v1552_v54 = vadd.f32 %v1520_v37, %v6069_v42  ;;  %v6071_v44 = vld [vmem:[#allocation13_spill] sm:$0xff]  ;;  %v2874_v42 = vld [vmem:[%s3600_s26 + $0x530] sm:$0xff] }
 0x1ed   : > { %2963 = vst.msk [vmem:[%s3600_s26 + $0x349] sm:$0xff] %vm982_vm1, %v2089_v19  ;;  %v2090_v63 = vadd.f32 %v2932_v59, %v1998_v53  ;;  %v1551_v19 = vadd.f32 %v1519_v33, %v6068_v2  ;;  %v2993_v59 = vld [vmem:[%s3600_s26 + $0x18] sm:$0xff]  ;;  %v2994_v2 = vld [vmem:[%s3600_s26 + $0x20] sm:$0xff] }
 0x1ee   : > { %v1691_v22 = vpop.permute.xlu0 %1690  ;;  %2029 = vrot.lane.b32.xlu1 %v4674_v34, %s3387_s27  ;;  %1584 = vst.msk [vmem:[%s3600_s26 + $0x81] sm:$0xff] %vm982_vm1, %v1552_v54  ;;  %v6072_v37 = vld [vmem:[#allocation49_spill] sm:$0xff] }
 0x1ef   : > { %2964 = vst.msk [vmem:[%s3600_s26 + $0x351] sm:$0xff] %vm982_vm1, %v2090_v63  ;;  %v2184_v63 = vadd.f32 %v2993_v59, %v6071_v44  ;;  %1583 = vst.msk [vmem:[%s3600_s26 + $0x79] sm:$0xff] %vm982_vm1, %v1551_v19  ;;  %v6073_v59 = vld [vmem:[#allocation15_spill] sm:$0xff]  ;;  %v1872_v44 = vadd.f32 %v2874_v42, %v4529_v55  ;;  %v6075_v55 = vld [vmem:[#allocation50_spill] sm:$0xff]  ;;  %v5204_v42 = vpop.f32.mrb[64].mxu0 }
 0x1f0   : > { %v1693_v36 = vpop.permute.xlu1 %1692  ;;  %2349 = vrot.lane.b32.xlu0 %v6066_v21, %s3387_s27  ;;  %v2185_v54 = vadd.f32 %v2994_v2, %v6073_v59  ;;  %v6076_v2 = vld [vmem:[#allocation51_spill] sm:$0xff] }
 0x1f1   : > { %3025 = vst.msk [vmem:[%s3600_s26 + $0x18] sm:$0xff] %vm982_vm1, %v2184_v63  ;;  %2906 = vst.msk [vmem:[%s3600_s26 + $0x530] sm:$0xff] %vm982_vm1, %v1872_v44  ;;  %v5208_v44 = vpop.f32.mrb[65].mxu0 }
 0x1f2   : > { %v5156_v38 = vpop.permute.xlu0 %2317  ;;  %2351 = vrot.lane.b32.xlu1 %v6067_v26, %s3387_s27  ;;  %v1871_v26 = vadd.f32 %v2873_v10, %v4517_v30  ;;  %3026 = vst.msk [vmem:[%s3600_s26 + $0x20] sm:$0xff] %vm982_vm1, %v2185_v54  ;;  %v2933_v10 = vld [vmem:[%s3600_s26 + $0x361] sm:$0xff] }
 0x1f4   : > { %v5163_v53 = vpop.permute.xlu1 %2319  ;;  %2031 = vrot.lane.b32.xlu0 %v6070_v3, %s3387_s27  ;;  %2905 = vst.msk [vmem:[%s3600_s26 + $0x528] sm:$0xff] %vm982_vm1, %v1871_v26  ;;  %v2812_v26 = vld [vmem:[%s3600_s26 + $0x3b0] sm:$0xff] }
 0x1f5   : > { %v1777_v59 = vadd.f32 %v2812_v26, %v1693_v36 }
 0x1f6   : > { %v1374_v33 = vpop.permute.xlu0 %1373  ;;  %2033 = vrot.lane.b32.xlu1 %v6072_v37, %s3387_s27 }
 0x1f7   : > { %v1457_v19 = vadd.f32 %v2749_v13, %v1374_v33  ;;  %v2811_v33 = vld [vmem:[%s3600_s26 + $0x3a8] sm:$0xff]  ;;  %2844 = vst.msk [vmem:[%s3600_s26 + $0x3b0] sm:$0xff] %vm982_vm1, %v1777_v59 }
 0x1f8   : > { %v1376_v21 = vpop.permute.xlu1 %1375  ;;  %2353 = vrot.lane.b32.xlu0 %v6074_v14, %s3387_s27 }
 0x1f9   : > { %2781 = vst.msk [vmem:[%s3600_s26 + $0x228] sm:$0xff] %vm982_vm1, %v1457_v19  ;;  %v1458_v30 = vadd.f32 %v2750_v32, %v1376_v21  ;;  %v2934_v32 = vld [vmem:[%s3600_s26 + $0x369] sm:$0xff]  ;;  %v1776_v19 = vadd.f32 %v2811_v33, %v1691_v22  ;;  %v3058_v33 = vld [vmem:[%s3600_s26 + $0x1b8] sm:$0xff] }
 0x1fa   : > { %v2000_v13 = vpop.permute.xlu0 %1999  ;;  %2355 = vrot.lane.b32.xlu1 %v6075_v55, %s3387_s27  ;;  %v5215_v55 = vpop.f32.mrb[66].mxu0  ;;  %v2410_v26 = vadd.f32 %v3058_v33, %v5092_v9  ;;  %v2995_v9 = vld [vmem:[%s3600_s26 + $0x30] sm:$0xff] }
 0x1fb   : > { %2782 = vst.msk [vmem:[%s3600_s26 + $0x230] sm:$0xff] %vm982_vm1, %v1458_v30  ;;  %v2091_v63 = vadd.f32 %v2933_v10, %v2000_v13  ;;  %v6077_v10 = vld [vmem:[#allocation53_spill] sm:$0xff]  ;;  %v3057_v13 = vld [vmem:[%s3600_s26 + $0x1b0] sm:$0xff]  ;;  %6078 = vst [vmem:[#allocation36_spill] sm:$0xff] %v5215_v55  ;;  %v5224_v36 = vpop.f32.mrb[67].mxu0 }
 0x1fc   : > { %v2002_v21 = vpop.permute.xlu1 %2001  ;;  %2035 = vrot.lane.b32.xlu0 %v6076_v2, %s3387_s27  ;;  %2843 = vst.msk [vmem:[%s3600_s26 + $0x3a8] sm:$0xff] %vm982_vm1, %v1776_v19  ;;  %v2409_v22 = vadd.f32 %v3057_v13, %v5082_v31  ;;  %v6079_v31 = vld [vmem:[#allocation20_spill] sm:$0xff]  ;;  %3090 = vst.msk [vmem:[%s3600_s26 + $0x1b8] sm:$0xff] %vm982_vm1, %v2410_v26  ;;  %v2752_v55 = vld [vmem:[%s3600_s26 + $0x248] sm:$0xff] }
 0x1fd   : > { %2965 = vst.msk [vmem:[%s3600_s26 + $0x361] sm:$0xff] %vm982_vm1, %v2091_v63  ;;  %v2092_v54 = vadd.f32 %v2934_v32, %v2002_v21  ;;  %v1521_v32 = vld [vmem:[%s3600_s26 + $0x91] sm:$0xff]  ;;  %v1522_v21 = vld [vmem:[%s3600_s26 + $0x99] sm:$0xff] }
 0x1fe   : > { %v5210_v30 = vpop.permute.xlu0 %1694  ;;  %2037 = vrot.lane.b32.xlu1 %v6077_v10, %s3387_s27  ;;  %3089 = vst.msk [vmem:[%s3600_s26 + $0x1b0] sm:$0xff] %vm982_vm1, %v2409_v22  ;;  %v1553_v59 = vadd.f32 %v1521_v32, %v6079_v31  ;;  %v6081_v22 = vld [vmem:[#allocation17_spill] sm:$0xff] }
 0x1ff   : > { %2966 = vst.msk [vmem:[%s3600_s26 + $0x369] sm:$0xff] %vm982_vm1, %v2092_v54  ;;  %v2186_v33 = vadd.f32 %v2995_v9, %v6081_v22  ;;  %v2875_v32 = vld [vmem:[%s3600_s26 + $0x540] sm:$0xff]  ;;  %v2996_v26 = vld [vmem:[%s3600_s26 + $0x38] sm:$0xff] }
 0x200   : > { %v1697_v63 = vpop.permute.xlu1 %1696  ;;  %2039 = vrot.lane.b32.xlu0 %v4731_v16, %s3387_s27  ;;  %v6080_v16 = vld [vmem:[#allocation22_spill] sm:$0xff]  ;;  %1585 = vst.msk [vmem:[%s3600_s26 + $0x91] sm:$0xff] %vm982_vm1, %v1553_v59  ;;  %v1873_v31 = vadd.f32 %v2875_v32, %v4549_v35 }
 0x201   : > { %v1554_v54 = vadd.f32 %v1522_v21, %v6080_v16  ;;  %3027 = vst.msk [vmem:[%s3600_s26 + $0x30] sm:$0xff] %vm982_vm1, %v2186_v33  ;;  %v6082_v16 = vld [vmem:[#allocation19_spill] sm:$0xff]  ;;  %v2935_v33 = vld [vmem:[%s3600_s26 + $0x379] sm:$0xff] }
 0x202   : > { %v5234_v19 = vpop.permute.xlu0 %2321  ;;  %2041 = vrot.lane.b32.xlu1 %v4742_v43, %s3387_s27  ;;  %v2751_v43 = vld [vmem:[%s3600_s26 + $0x240] sm:$0xff]  ;;  %2907 = vst.msk [vmem:[%s3600_s26 + $0x540] sm:$0xff] %vm982_vm1, %v1873_v31 }
 0x203   : > { %1586 = vst.msk [vmem:[%s3600_s26 + $0x99] sm:$0xff] %vm982_vm1, %v1554_v54  ;;  %v2187_v54 = vadd.f32 %v2996_v26, %v6082_v16  ;;  %v2813_v16 = vld [vmem:[%s3600_s26 + $0x3c0] sm:$0xff] }
 0x204   : > { %v5243_v13 = vpop.permute.xlu1 %2323  ;;  %2043 = vrot.lane.b32.xlu0 %v4769_v4, %s3387_s27  ;;  %v2876_v4 = vld [vmem:[%s3600_s26 + $0x548] sm:$0xff] }
 0x205   : > { %v1874_v9 = vadd.f32 %v2876_v4, %v4561_v39  ;;  %3028 = vst.msk [vmem:[%s3600_s26 + $0x38] sm:$0xff] %vm982_vm1, %v2187_v54  ;;  %v3121_v39 = vld [vmem:[%s3600_s26 + $0x19] sm:$0xff]  ;;  %v2936_v54 = vld [vmem:[%s3600_s26 + $0x381] sm:$0xff] }
 0x206   : > { %v1378_v21 = vpop.permute.xlu0 %1377  ;;  %2045 = vrot.lane.b32.xlu1 %v4780_v20, %s3387_s27  ;;  %v5274_v20 = vpop.f32.mrb[68].mxu0  ;;  %v6085_v4 = vld [vmem:[#allocation44_spill] sm:$0xff] }
 0x207   : > { %v1459_v59 = vadd.f32 %v2751_v43, %v1378_v21  ;;  %2908 = vst.msk [vmem:[%s3600_s26 + $0x548] sm:$0xff] %vm982_vm1, %v1874_v9  ;;  %6083 = vst [vmem:[#allocation8_spill] sm:$0xff] %v5274_v20  ;;  %v5281_v32 = vpop.f32.mrb[69].mxu0 }
 0x208   : > { %v1380_v22 = vpop.permute.xlu1 %1379  ;;  %2047 = vrot.lane.b32.xlu0 %v4816_v8, %s3387_s27  ;;  %v3122_v8 = vld [vmem:[%s3600_s26 + $0x21] sm:$0xff] }
 0x209   : > { %2783 = vst.msk [vmem:[%s3600_s26 + $0x240] sm:$0xff] %vm982_vm1, %v1459_v59  ;;  %v1460_v35 = vadd.f32 %v2752_v55, %v1380_v22  ;;  %v6084_v55 = vld [vmem:[#allocation42_spill] sm:$0xff]  ;;  %v2506_v31 = vadd.f32 %v3122_v8, %v6085_v4  ;;  %v5287_v59 = vpop.f32.mrb[70].mxu0  ;;  %v1524_v4 = vld [vmem:[%s3600_s26 + $0xb1] sm:$0xff] }
 0x20a   : > { %v2004_v43 = vpop.permute.xlu0 %2003  ;;  %2049 = vrot.lane.b32.xlu1 %v4828_v51, %s3387_s27  ;;  %v2505_v21 = vadd.f32 %v3121_v39, %v6084_v55  ;;  %6086 = vst [vmem:[#allocation10_spill] sm:$0xff] %v5287_v59  ;;  %v2814_v51 = vld [vmem:[%s3600_s26 + $0x3c8] sm:$0xff]  ;;  %v5294_v22 = vpop.f32.mrb[71].mxu0  ;;  %v6087_v55 = vld [vmem:[#allocation52_spill] sm:$0xff] }
 0x20b   : > { %2784 = vst.msk [vmem:[%s3600_s26 + $0x248] sm:$0xff] %vm982_vm1, %v1460_v35  ;;  %v2093_v26 = vadd.f32 %v2935_v33, %v2004_v43  ;;  %v1778_v35 = vadd.f32 %v2813_v16, %v5210_v30  ;;  %v1779_v39 = vadd.f32 %v2814_v51, %v1697_v63  ;;  %3154 = vst.msk [vmem:[%s3600_s26 + $0x21] sm:$0xff] %vm982_vm1, %v2506_v31  ;;  %v3059_v43 = vld [vmem:[%s3600_s26 + $0x1c8] sm:$0xff]  ;;  %v3060_v30 = vld [vmem:[%s3600_s26 + $0x1d0] sm:$0xff] }
 0x20c   : > { %v2006_v9 = vpop.permute.xlu1 %2005  ;;  %2051 = vrot.lane.b32.xlu0 %v4867_v48, %s3387_s27  ;;  %3153 = vst.msk [vmem:[%s3600_s26 + $0x19] sm:$0xff] %vm982_vm1, %v2505_v21  ;;  %v2411_v48 = vadd.f32 %v3059_v43, %v5156_v38  ;;  %v2412_v21 = vadd.f32 %v3060_v30, %v5163_v53  ;;  %v6089_v31 = vld [vmem:[#allocation54_spill] sm:$0xff]  ;;  %v6091_v53 = vld [vmem:[#allocation24_spill] sm:$0xff] }
 0x20d   : > { %2967 = vst.msk [vmem:[%s3600_s26 + $0x379] sm:$0xff] %vm982_vm1, %v2093_v26  ;;  %v2094_v33 = vadd.f32 %v2936_v54, %v2006_v9  ;;  %2845 = vst.msk [vmem:[%s3600_s26 + $0x3c0] sm:$0xff] %vm982_vm1, %v1778_v35  ;;  %v1523_v26 = vld [vmem:[%s3600_s26 + $0xa9] sm:$0xff] }
 0x20e   : > { %v5304_v8 = vpop.permute.xlu0 %1698  ;;  %2053 = vrot.lane.b32.xlu1 %v4885_v0, %s3387_s27  ;;  %2846 = vst.msk [vmem:[%s3600_s26 + $0x3c8] sm:$0xff] %vm982_vm1, %v1779_v39  ;;  %3091 = vst.msk [vmem:[%s3600_s26 + $0x1c8] sm:$0xff] %vm982_vm1, %v2411_v48  ;;  %v5321_v0 = vpop.f32.mrb[72].mxu0  ;;  %v1555_v51 = vadd.f32 %v1523_v26, %v6091_v53  ;;  %v6092_v54 = vld [vmem:[#allocation26_spill] sm:$0xff]  ;;  %v6095_v48 = vld [vmem:[#allocation21_spill] sm:$0xff] }
 0x20f   : > { %2968 = vst.msk [vmem:[%s3600_s26 + $0x381] sm:$0xff] %vm982_vm1, %v2094_v33  ;;  %6088 = vst [vmem:[#allocation9_spill] sm:$0xff] %v5321_v0  ;;  %v5329_v16 = vpop.f32.mrb[73].mxu0  ;;  %v1556_v9 = vadd.f32 %v1524_v4, %v6092_v54  ;;  %v2997_v39 = vld [vmem:[%s3600_s26 + $0x48] sm:$0xff]  ;;  %v2877_v26 = vld [vmem:[%s3600_s26 + $0x558] sm:$0xff] }
 0x210   : > { %v1701_v63 = vpop.permute.xlu1 %1700  ;;  %2357 = vrot.lane.b32.xlu0 %v6087_v55, %s3387_s27  ;;  %6090 = vst [vmem:[#allocation11_spill] sm:$0xff] %v5329_v16  ;;  %3092 = vst.msk [vmem:[%s3600_s26 + $0x1d0] sm:$0xff] %vm982_vm1, %v2412_v21  ;;  %v5335_v35 = vpop.f32.mrb[74].mxu0  ;;  %v2188_v30 = vadd.f32 %v2997_v39, %v6095_v48  ;;  %v2753_v21 = vld [vmem:[%s3600_s26 + $0x258] sm:$0xff]  ;;  %v2998_v53 = vld [vmem:[%s3600_s26 + $0x50] sm:$0xff]  ;;  %v1875_v39 = vadd.f32 %v2877_v26, %v6046_v41 }
 0x211   : > { %6093 = vst [vmem:[#allocation38_spill] sm:$0xff] %v5335_v35  ;;  %v5342_v43 = vpop.f32.mrb[75].mxu0  ;;  %1587 = vst.msk [vmem:[%s3600_s26 + $0xa9] sm:$0xff] %vm982_vm1, %v1555_v51  ;;  %v2878_v54 = vld [vmem:[%s3600_s26 + $0x560] sm:$0xff]  ;;  %v6097_v16 = vld [vmem:[#allocation59_spill] sm:$0xff] }
 0x212   : > { %v5325_v38 = vpop.permute.xlu0 %2325  ;;  %2359 = vrot.lane.b32.xlu1 %v6089_v31, %s3387_s27  ;;  %6094 = vst [vmem:[#allocation12_spill] sm:$0xff] %v5342_v43  ;;  %1588 = vst.msk [vmem:[%s3600_s26 + $0xb1] sm:$0xff] %vm982_vm1, %v1556_v9  ;;  %v6096_v9 = vld [vmem:[#allocation23_spill] sm:$0xff]  ;;  %v1876_v35 = vadd.f32 %v2878_v54, %v6047_v25  ;;  %v2754_v43 = vld [vmem:[%s3600_s26 + $0x260] sm:$0xff] }
 0x213   : > { %3029 = vst.msk [vmem:[%s3600_s26 + $0x48] sm:$0xff] %vm982_vm1, %v2188_v30  ;;  %v2189_v48 = vadd.f32 %v2998_v53, %v6096_v9  ;;  %2909 = vst.msk [vmem:[%s3600_s26 + $0x558] sm:$0xff] %vm982_vm1, %v1875_v39  ;;  %v5371_v30 = vpop.f32.mrb[76].mxu0  ;;  %v3123_v25 = vld [vmem:[%s3600_s26 + $0x31] sm:$0xff] }
 0x214   : > { %v5338_v33 = vpop.permute.xlu1 %2327  ;;  %2361 = vrot.lane.b32.xlu0 %v4737_v18, %s3387_s27  ;;  %2910 = vst.msk [vmem:[%s3600_s26 + $0x560] sm:$0xff] %vm982_vm1, %v1876_v35  ;;  %6098 = vst [vmem:[#allocation14_spill] sm:$0xff] %v5371_v30  ;;  %v2937_v26 = vld [vmem:[%s3600_s26 + $0x391] sm:$0xff]  ;;  %v5378_v53 = vpop.f32.mrb[77].mxu0  ;;  %v2938_v30 = vld [vmem:[%s3600_s26 + $0x399] sm:$0xff] }
 0x215   : > { %3030 = vst.msk [vmem:[%s3600_s26 + $0x50] sm:$0xff] %vm982_vm1, %v2189_v48  ;;  %6099 = vst [vmem:[#allocation39_spill] sm:$0xff] %v5378_v53  ;;  %v6101_v54 = vld [vmem:[#allocation43_spill] sm:$0xff]  ;;  %v2815_v9 = vld [vmem:[%s3600_s26 + $0x3d8] sm:$0xff] }
 0x216   : > { %v1382_v4 = vpop.permute.xlu0 %1381  ;;  %2363 = vrot.lane.b32.xlu1 %v4747_v61, %s3387_s27  ;;  %v2816_v48 = vld [vmem:[%s3600_s26 + $0x3e0] sm:$0xff]  ;;  %v6102_v53 = vld [vmem:[#allocation60_spill] sm:$0xff] }
 0x217   : > { %v1461_v51 = vadd.f32 %v2753_v21, %v1382_v4  ;;  %v3124_v21 = vld [vmem:[%s3600_s26 + $0x39] sm:$0xff] }
 0x218   : > { %v1384_v0 = vpop.permute.xlu1 %1383  ;;  %2365 = vrot.lane.b32.xlu0 %v6097_v16, %s3387_s27  ;;  %v2508_v39 = vadd.f32 %v6101_v54, %v3124_v21  ;;  %v1526_v54 = vld [vmem:[%s3600_s26 + $0xc9] sm:$0xff] }
 0x219   : > { %2785 = vst.msk [vmem:[%s3600_s26 + $0x258] sm:$0xff] %vm982_vm1, %v1461_v51  ;;  %v1462_v41 = vadd.f32 %v2754_v43, %v1384_v0  ;;  %v6100_v0 = vld [vmem:[#allocation41_spill] sm:$0xff]  ;;  %v5384_v51 = vpop.f32.mrb[78].mxu0 }
 0x21a   : > { %v2008_v4 = vpop.permute.xlu0 %2007  ;;  %2367 = vrot.lane.b32.xlu1 %v4788_v56, %s3387_s27  ;;  %v2507_v43 = vadd.f32 %v6100_v0, %v3123_v25  ;;  %v5391_v20 = vpop.f32.mrb[79].mxu0  ;;  %3156 = vst.msk [vmem:[%s3600_s26 + $0x39] sm:$0xff] %vm982_vm1, %v2508_v39  ;;  %v1781_v25 = vadd.f32 %v2816_v48, %v1701_v63  ;;  %v3061_v0 = vld [vmem:[%s3600_s26 + $0x1e0] sm:$0xff] }
 0x21b   : > { %2786 = vst.msk [vmem:[%s3600_s26 + $0x260] sm:$0xff] %vm982_vm1, %v1462_v41  ;;  %v2095_v35 = vadd.f32 %v2937_v26, %v2008_v4  ;;  %v1780_v41 = vadd.f32 %v2815_v9, %v5304_v8  ;;  %v6103_v4 = vld [vmem:[#allocation61_spill] sm:$0xff]  ;;  %v2413_v8 = vadd.f32 %v3061_v0, %v5234_v19 }
 0x21c   : > { %v2010_v59 = vpop.permute.xlu1 %2009  ;;  %2369 = vrot.lane.b32.xlu0 %v6102_v53, %s3387_s27  ;;  %3155 = vst.msk [vmem:[%s3600_s26 + $0x31] sm:$0xff] %vm982_vm1, %v2507_v43  ;;  %2848 = vst.msk [vmem:[%s3600_s26 + $0x3e0] sm:$0xff] %vm982_vm1, %v1781_v25  ;;  %v1525_v43 = vld [vmem:[%s3600_s26 + $0xc1] sm:$0xff] }
 0x21d   : > { %2969 = vst.msk [vmem:[%s3600_s26 + $0x391] sm:$0xff] %vm982_vm1, %v2095_v35  ;;  %v2096_v21 = vadd.f32 %v2938_v30, %v2010_v59  ;;  %2847 = vst.msk [vmem:[%s3600_s26 + $0x3d8] sm:$0xff] %vm982_vm1, %v1780_v41  ;;  %v3062_v59 = vld [vmem:[%s3600_s26 + $0x1e8] sm:$0xff]  ;;  %v6104_v19 = vld [vmem:[#allocation29_spill] sm:$0xff] }
 0x21e   : > { %v1703_v26 = vpop.permute.xlu0 %1702  ;;  %2371 = vrot.lane.b32.xlu1 %v6103_v4, %s3387_s27  ;;  %v2414_v30 = vadd.f32 %v3062_v59, %v5243_v13  ;;  %3093 = vst.msk [vmem:[%s3600_s26 + $0x1e0] sm:$0xff] %vm982_vm1, %v2413_v8  ;;  %v1557_v35 = vadd.f32 %v1525_v43, %v6104_v19  ;;  %v2999_v48 = vld [vmem:[%s3600_s26 + $0x60] sm:$0xff]  ;;  %v3000_v8 = vld [vmem:[%s3600_s26 + $0x68] sm:$0xff] }
 0x21f   : > { %2970 = vst.msk [vmem:[%s3600_s26 + $0x399] sm:$0xff] %vm982_vm1, %v2096_v21  ;;  %v6106_v41 = vld [vmem:[#allocation25_spill] sm:$0xff]  ;;  %v2879_v21 = vld [vmem:[%s3600_s26 + $0x570] sm:$0xff] }
 0x220   : > { %v1705_v63 = vpop.permute.xlu1 %1704  ;;  %2373 = vrot.lane.b32.xlu0 %v4873_v1, %s3387_s27  ;;  %v6105_v1 = vld [vmem:[#allocation31_spill] sm:$0xff]  ;;  %3094 = vst.msk [vmem:[%s3600_s26 + $0x1e8] sm:$0xff] %vm982_vm1, %v2414_v30  ;;  %v2190_v25 = vadd.f32 %v2999_v48, %v6106_v41  ;;  %1589 = vst.msk [vmem:[%s3600_s26 + $0xc1] sm:$0xff] %vm982_vm1, %v1557_v35  ;;  %v2880_v59 = vld [vmem:[%s3600_s26 + $0x578] sm:$0xff]  ;;  %v1877_v30 = vadd.f32 %v2879_v21, %v6057_v12 }
 0x221   : > { %v1558_v9 = vadd.f32 %v1526_v54, %v6105_v1  ;;  %v6107_v54 = vld [vmem:[#allocation27_spill] sm:$0xff]  ;;  %v1878_v35 = vadd.f32 %v2880_v59, %v4625_v45 }
 0x222   : > { %v5418_v39 = vpop.permute.xlu0 %2329  ;;  %2375 = vrot.lane.b32.xlu1 %v4891_v24, %s3387_s27  ;;  %v2755_v24 = vld [vmem:[%s3600_s26 + $0x270] sm:$0xff]  ;;  %3031 = vst.msk [vmem:[%s3600_s26 + $0x60] sm:$0xff] %vm982_vm1, %v2190_v25  ;;  %v2191_v19 = vadd.f32 %v3000_v8, %v6107_v54  ;;  %2911 = vst.msk [vmem:[%s3600_s26 + $0x570] sm:$0xff] %vm982_vm1, %v1877_v30  ;;  %v6109_v8 = vld [vmem:[#allocation58_spill] sm:$0xff] }
 0x223   : > { %1590 = vst.msk [vmem:[%s3600_s26 + $0xc9] sm:$0xff] %vm982_vm1, %v1558_v9  ;;  %v2756_v9 = vld [vmem:[%s3600_s26 + $0x278] sm:$0xff]  ;;  %2912 = vst.msk [vmem:[%s3600_s26 + $0x578] sm:$0xff] %vm982_vm1, %v1878_v35  ;;  %v3125_v48 = vld [vmem:[%s3600_s26 + $0x49] sm:$0xff] }
 0x224   : > { %v5427_v13 = vpop.permute.xlu1 %2331  ;;  %3032 = vst.msk [vmem:[%s3600_s26 + $0x68] sm:$0xff] %vm982_vm1, %v2191_v19  ;;  %v2939_v41 = vld [vmem:[%s3600_s26 + $0x3a9] sm:$0xff]  ;;  %v3126_v25 = vld [vmem:[%s3600_s26 + $0x51] sm:$0xff] }
 0x225   : > { %v2510_v59 = vadd.f32 %v3126_v25, %v6109_v8  ;;  %v2817_v30 = vld [vmem:[%s3600_s26 + $0x3f0] sm:$0xff]  ;;  %v1527_v25 = vld [vmem:[%s3600_s26 + $0xd9] sm:$0xff] }
 0x226   : > { %v1386_v0 = vpop.permute.xlu0 %1385  ;;  %v2940_v54 = vld [vmem:[%s3600_s26 + $0x3b1] sm:$0xff]  ;;  %v1782_v35 = vadd.f32 %v2817_v30, %v1703_v26 }
 0x227   : > { %v1463_v43 = vadd.f32 %v2755_v24, %v1386_v0  ;;  %v6108_v24 = vld [vmem:[#allocation56_spill] sm:$0xff]  ;;  %3158 = vst.msk [vmem:[%s3600_s26 + $0x51] sm:$0xff] %vm982_vm1, %v2510_v59 }
 0x228   : > { %v1388_v1 = vpop.permute.xlu1 %1387  ;;  %v2509_v21 = vadd.f32 %v3125_v48, %v6108_v24  ;;  %2849 = vst.msk [vmem:[%s3600_s26 + $0x3f0] sm:$0xff] %vm982_vm1, %v1782_v35  ;;  %v1528_v24 = vld [vmem:[%s3600_s26 + $0xe1] sm:$0xff]  ;;  %v3001_v8 = vld [vmem:[%s3600_s26 + $0x78] sm:$0xff] }
 0x229   : > { %2787 = vst.msk [vmem:[%s3600_s26 + $0x270] sm:$0xff] %vm982_vm1, %v1463_v43  ;;  %v1464_v12 = vadd.f32 %v2756_v9, %v1388_v1  ;;  %v2818_v43 = vld [vmem:[%s3600_s26 + $0x3f8] sm:$0xff] }
 0x22a   : > { %v2012_v45 = vpop.permute.xlu0 %2011  ;;  %v1783_v1 = vadd.f32 %v2818_v43, %v1705_v63  ;;  %3157 = vst.msk [vmem:[%s3600_s26 + $0x49] sm:$0xff] %vm982_vm1, %v2509_v21  ;;  %v3064_v63 = vld [vmem:[%s3600_s26 + $0x200] sm:$0xff]  ;;  %v2757_v43 = vld [vmem:[%s3600_s26 + $0x288] sm:$0xff] }
 0x22b   : > { %2788 = vst.msk [vmem:[%s3600_s26 + $0x278] sm:$0xff] %vm982_vm1, %v1464_v12  ;;  %v2097_v0 = vadd.f32 %v2939_v41, %v2012_v45  ;;  %v3063_v12 = vld [vmem:[%s3600_s26 + $0x1f8] sm:$0xff]  ;;  %v2416_v45 = vadd.f32 %v3064_v63, %v5338_v33 }
 0x22c   : > { %v2014_v19 = vpop.permute.xlu1 %2013  ;;  %2850 = vst.msk [vmem:[%s3600_s26 + $0x3f8] sm:$0xff] %vm982_vm1, %v1783_v1  ;;  %v2415_v26 = vadd.f32 %v3063_v12, %v5325_v38  ;;  %v1559_v38 = vadd.f32 %v1527_v25, %v4559_v28  ;;  %v6110_v33 = vld [vmem:[#allocation28_spill] sm:$0xff] }
 0x22d   : > { %2971 = vst.msk [vmem:[%s3600_s26 + $0x3a9] sm:$0xff] %vm982_vm1, %v2097_v0  ;;  %v2098_v9 = vadd.f32 %v2940_v54, %v2014_v19  ;;  %3096 = vst.msk [vmem:[%s3600_s26 + $0x200] sm:$0xff] %vm982_vm1, %v2416_v45  ;;  %v1560_v0 = vadd.f32 %v1528_v24, %v4572_v27  ;;  %v2192_v30 = vadd.f32 %v3001_v8, %v6110_v33  ;;  %v2881_v54 = vld [vmem:[%s3600_s26 + $0x588] sm:$0xff]  ;;  %v3002_v27 = vld [vmem:[%s3600_s26 + $0x80] sm:$0xff] }
 0x22e   : > { %v1707_v48 = vpop.permute.xlu0 %1706  ;;  %3095 = vst.msk [vmem:[%s3600_s26 + $0x1f8] sm:$0xff] %vm982_vm1, %v2415_v26  ;;  %1591 = vst.msk [vmem:[%s3600_s26 + $0xd9] sm:$0xff] %vm982_vm1, %v1559_v38  ;;  %v2882_v19 = vld [vmem:[%s3600_s26 + $0x590] sm:$0xff]  ;;  %v1879_v35 = vadd.f32 %v2881_v54, %v4644_v7  ;;  %v3127_v7 = vld [vmem:[%s3600_s26 + $0x61] sm:$0xff] }
 0x22f   : > { %2972 = vst.msk [vmem:[%s3600_s26 + $0x3b1] sm:$0xff] %vm982_vm1, %v2098_v9  ;;  %1592 = vst.msk [vmem:[%s3600_s26 + $0xe1] sm:$0xff] %vm982_vm1, %v1560_v0  ;;  %v6111_v9 = vld [vmem:[#allocation30_spill] sm:$0xff]  ;;  %v1880_v26 = vadd.f32 %v2882_v19, %v4650_v15  ;;  %v2758_v45 = vld [vmem:[%s3600_s26 + $0x290] sm:$0xff] }
 0x230   : > { %v1709_v41 = vpop.permute.xlu1 %1708  ;;  %3033 = vst.msk [vmem:[%s3600_s26 + $0x78] sm:$0xff] %vm982_vm1, %v2192_v30  ;;  %v2193_v12 = vadd.f32 %v3002_v27, %v6111_v9  ;;  %2913 = vst.msk [vmem:[%s3600_s26 + $0x588] sm:$0xff] %vm982_vm1, %v1879_v35  ;;  %v3128_v24 = vld [vmem:[%s3600_s26 + $0x69] sm:$0xff]  ;;  %v2941_v15 = vld [vmem:[%s3600_s26 + $0x3c1] sm:$0xff] }
 0x231   : > { %2914 = vst.msk [vmem:[%s3600_s26 + $0x590] sm:$0xff] %vm982_vm1, %v1880_v26  ;;  %v6112_v0 = vld [vmem:[#allocation55_spill] sm:$0xff]  ;;  %v6113_v33 = vld [vmem:[#allocation57_spill] sm:$0xff] }
 0x232   : > { %v5482_v21 = vpop.permute.xlu0 %2333  ;;  %3034 = vst.msk [vmem:[%s3600_s26 + $0x80] sm:$0xff] %vm982_vm1, %v2193_v12  ;;  %v2511_v8 = vadd.f32 %v6112_v0, %v3127_v7  ;;  %v2512_v30 = vadd.f32 %v6113_v33, %v3128_v24  ;;  %v2819_v54 = vld [vmem:[%s3600_s26 + $0x408] sm:$0xff]  ;;  %v3065_v26 = vld [vmem:[%s3600_s26 + $0x210] sm:$0xff]  ;;  %v1530_v7 = vld [vmem:[%s3600_s26 + $0xf9] sm:$0xff] }
 0x233   : > { %v2942_v27 = vld [vmem:[%s3600_s26 + $0x3c9] sm:$0xff]  ;;  %v1784_v35 = vadd.f32 %v2819_v54, %v1707_v48  ;;  %v3004_v33 = vld [vmem:[%s3600_s26 + $0x98] sm:$0xff] }
 0x234   : > { %v5489_v59 = vpop.permute.xlu1 %2335  ;;  %3159 = vst.msk [vmem:[%s3600_s26 + $0x61] sm:$0xff] %vm982_vm1, %v2511_v8  ;;  %3160 = vst.msk [vmem:[%s3600_s26 + $0x69] sm:$0xff] %vm982_vm1, %v2512_v30  ;;  %v2759_v8 = vld [vmem:[%s3600_s26 + $0x2a0] sm:$0xff]  ;;  %v2884_v30 = vld [vmem:[%s3600_s26 + $0x5a8] sm:$0xff]  ;;  %v2195_v54 = vadd.f32 %v3004_v33, %v4567_v29 }
 0x235   : > { %2851 = vst.msk [vmem:[%s3600_s26 + $0x408] sm:$0xff] %vm982_vm1, %v1784_v35  ;;  %v2943_v29 = vld [vmem:[%s3600_s26 + $0x3d9] sm:$0xff] }
 0x236   : > { %v1390_v28 = vpop.permute.xlu0 %1389  ;;  %3036 = vst.msk [vmem:[%s3600_s26 + $0x98] sm:$0xff] %vm982_vm1, %v2195_v54  ;;  %v2945_v54 = vld [vmem:[%s3600_s26 + $0x3f1] sm:$0xff] }
 0x237   : > { %v1465_v1 = vadd.f32 %v2757_v43, %v1390_v28  ;;  %v2820_v28 = vld [vmem:[%s3600_s26 + $0x410] sm:$0xff] }
 0x238   : > { %v1392_v63 = vpop.permute.xlu1 %1391 }
 0x239   : > { %2789 = vst.msk [vmem:[%s3600_s26 + $0x288] sm:$0xff] %vm982_vm1, %v1465_v1  ;;  %v1466_v25 = vadd.f32 %v2758_v45, %v1392_v63  ;;  %v1785_v1 = vadd.f32 %v2820_v28, %v1709_v41  ;;  %v2417_v63 = vadd.f32 %v3065_v26, %v5418_v39  ;;  %v3066_v41 = vld [vmem:[%s3600_s26 + $0x218] sm:$0xff]  ;;  %v3003_v39 = vld [vmem:[%s3600_s26 + $0x90] sm:$0xff]  ;;  %v1882_v28 = vadd.f32 %v2884_v30, %v4674_v34 }
 0x23a   : > { %v2016_v38 = vpop.permute.xlu0 %2015  ;;  %v2418_v45 = vadd.f32 %v3066_v41, %v5427_v13  ;;  %v2194_v13 = vadd.f32 %v3003_v39, %v4556_v17  ;;  %v3129_v35 = vld [vmem:[%s3600_s26 + $0x79] sm:$0xff] }
 0x23b   : > { %2790 = vst.msk [vmem:[%s3600_s26 + $0x290] sm:$0xff] %vm982_vm1, %v1466_v25  ;;  %v2099_v43 = vadd.f32 %v2941_v15, %v2016_v38  ;;  %2852 = vst.msk [vmem:[%s3600_s26 + $0x410] sm:$0xff] %vm982_vm1, %v1785_v1  ;;  %v1529_v25 = vld [vmem:[%s3600_s26 + $0xf1] sm:$0xff]  ;;  %v1562_v38 = vadd.f32 %v1530_v7, %v6050_v47  ;;  %v3130_v1 = vld [vmem:[%s3600_s26 + $0x81] sm:$0xff] }
 0x23c   : > { %v2018_v19 = vpop.permute.xlu1 %2017  ;;  %3097 = vst.msk [vmem:[%s3600_s26 + $0x210] sm:$0xff] %vm982_vm1, %v2417_v63  ;;  %v1561_v15 = vadd.f32 %v1529_v25, %v6049_v58  ;;  %3098 = vst.msk [vmem:[%s3600_s26 + $0x218] sm:$0xff] %vm982_vm1, %v2418_v45  ;;  %v2883_v58 = vld [vmem:[%s3600_s26 + $0x5a0] sm:$0xff]  ;;  %v2514_v63 = vadd.f32 %v3130_v1, %v4979_v57  ;;  %v2822_v45 = vld [vmem:[%s3600_s26 + $0x428] sm:$0xff] }
 0x23d   : > { %2973 = vst.msk [vmem:[%s3600_s26 + $0x3c1] sm:$0xff] %vm982_vm1, %v2099_v43  ;;  %v2100_v9 = vadd.f32 %v2942_v27, %v2018_v19  ;;  %1594 = vst.msk [vmem:[%s3600_s26 + $0xf9] sm:$0xff] %vm982_vm1, %v1562_v38  ;;  %v1881_v43 = vadd.f32 %v2883_v58, %v4666_v50  ;;  %v2760_v19 = vld [vmem:[%s3600_s26 + $0x2a8] sm:$0xff]  ;;  %v2821_v41 = vld [vmem:[%s3600_s26 + $0x420] sm:$0xff] }
 0x23e   : > { %v1711_v12 = vpop.permute.xlu0 %1710  ;;  %1593 = vst.msk [vmem:[%s3600_s26 + $0xf1] sm:$0xff] %vm982_vm1, %v1561_v15  ;;  %3035 = vst.msk [vmem:[%s3600_s26 + $0x90] sm:$0xff] %vm982_vm1, %v2194_v13  ;;  %v2944_v25 = vld [vmem:[%s3600_s26 + $0x3e1] sm:$0xff]  ;;  %v1531_v58 = vld [vmem:[%s3600_s26 + $0x109] sm:$0xff] }
 0x23f   : > { %2974 = vst.msk [vmem:[%s3600_s26 + $0x3c9] sm:$0xff] %vm982_vm1, %v2100_v9  ;;  %2915 = vst.msk [vmem:[%s3600_s26 + $0x5a0] sm:$0xff] %vm982_vm1, %v1881_v43  ;;  %v2513_v9 = vadd.f32 %v3129_v35, %v4964_v62  ;;  %v1786_v15 = vadd.f32 %v2821_v41, %v1711_v12  ;;  %v3067_v57 = vld [vmem:[%s3600_s26 + $0x228] sm:$0xff]  ;;  %v2823_v41 = vld [vmem:[%s3600_s26 + $0x438] sm:$0xff] }
 0x240   : > { %v1713_v48 = vpop.permute.xlu1 %1712  ;;  %2916 = vst.msk [vmem:[%s3600_s26 + $0x5a8] sm:$0xff] %vm982_vm1, %v1882_v28  ;;  %3162 = vst.msk [vmem:[%s3600_s26 + $0x81] sm:$0xff] %vm982_vm1, %v2514_v63  ;;  %v2419_v12 = vadd.f32 %v3067_v57, %v5482_v21  ;;  %v1563_v21 = vadd.f32 %v1531_v58, %v4623_v40  ;;  %v3005_v43 = vld [vmem:[%s3600_s26 + $0xa8] sm:$0xff]  ;;  %v2885_v28 = vld [vmem:[%s3600_s26 + $0x5b8] sm:$0xff] }
 0x241   : > { %v1787_v38 = vadd.f32 %v2822_v45, %v1713_v48  ;;  %3161 = vst.msk [vmem:[%s3600_s26 + $0x79] sm:$0xff] %vm982_vm1, %v2513_v9  ;;  %2853 = vst.msk [vmem:[%s3600_s26 + $0x420] sm:$0xff] %vm982_vm1, %v1786_v15  ;;  %v3068_v48 = vld [vmem:[%s3600_s26 + $0x230] sm:$0xff]  ;;  %v2824_v45 = vld [vmem:[%s3600_s26 + $0x440] sm:$0xff] }
 0x242   : > { %v5544_v24 = vpop.permute.xlu0 %2337  ;;  %3099 = vst.msk [vmem:[%s3600_s26 + $0x228] sm:$0xff] %vm982_vm1, %v2419_v12  ;;  %1595 = vst.msk [vmem:[%s3600_s26 + $0x109] sm:$0xff] %vm982_vm1, %v1563_v21 }
 0x243   : > { %2854 = vst.msk [vmem:[%s3600_s26 + $0x428] sm:$0xff] %vm982_vm1, %v1787_v38 }
 0x244   : > { %v5551_v0 = vpop.permute.xlu1 %2339 }
 0x246   : > { %v1394_v47 = vpop.permute.xlu0 %1393 }
 0x247   : > { %v1467_v17 = vadd.f32 %v2759_v8, %v1394_v47  ;;  %v2420_v8 = vadd.f32 %v3068_v48, %v5489_v59  ;;  %v1532_v47 = vld [vmem:[%s3600_s26 + $0x111] sm:$0xff]  ;;  %v2196_v59 = vadd.f32 %v3005_v43, %v6051_v60  ;;  %v3007_v48 = vld [vmem:[%s3600_s26 + $0xc0] sm:$0xff] }
 0x248   : > { %v1396_v27 = vpop.permute.xlu1 %1395  ;;  %v1564_v30 = vadd.f32 %v1532_v47, %v4636_v49  ;;  %v2886_v49 = vld [vmem:[%s3600_s26 + $0x5c0] sm:$0xff]  ;;  %v3070_v47 = vld [vmem:[%s3600_s26 + $0x248] sm:$0xff] }
 0x249   : > { %2791 = vst.msk [vmem:[%s3600_s26 + $0x2a0] sm:$0xff] %vm982_vm1, %v1467_v17  ;;  %v1468_v50 = vadd.f32 %v2760_v19, %v1396_v27  ;;  %3100 = vst.msk [vmem:[%s3600_s26 + $0x230] sm:$0xff] %vm982_vm1, %v2420_v8  ;;  %v3006_v27 = vld [vmem:[%s3600_s26 + $0xb0] sm:$0xff]  ;;  %v1883_v19 = vadd.f32 %v2885_v28, %v6070_v3  ;;  %v2888_v28 = vld [vmem:[%s3600_s26 + $0x5d8] sm:$0xff] }
 0x24a   : > { %v2020_v34 = vpop.permute.xlu0 %2019  ;;  %1596 = vst.msk [vmem:[%s3600_s26 + $0x111] sm:$0xff] %vm982_vm1, %v1564_v30  ;;  %3037 = vst.msk [vmem:[%s3600_s26 + $0xa8] sm:$0xff] %vm982_vm1, %v2196_v59  ;;  %v2197_v35 = vadd.f32 %v3006_v27, %v6052_v46  ;;  %v3131_v3 = vld [vmem:[%s3600_s26 + $0x91] sm:$0xff]  ;;  %v2422_v30 = vadd.f32 %v3070_v47, %v5551_v0  ;;  %v6118_v47 = vld [vmem:[#allocation46_spill] sm:$0xff] }
 0x24b   : > { %2792 = vst.msk [vmem:[%s3600_s26 + $0x2a8] sm:$0xff] %vm982_vm1, %v1468_v50  ;;  %v2101_v26 = vadd.f32 %v2943_v29, %v2020_v34  ;;  %v1884_v50 = vadd.f32 %v2886_v49, %v6072_v37  ;;  %v2946_v29 = vld [vmem:[%s3600_s26 + $0x3f9] sm:$0xff]  ;;  %2917 = vst.msk [vmem:[%s3600_s26 + $0x5b8] sm:$0xff] %vm982_vm1, %v1883_v19  ;;  %v2515_v9 = vadd.f32 %v4954_v5, %v3131_v3  ;;  %v2947_v5 = vld [vmem:[%s3600_s26 + $0x409] sm:$0xff] }
 0x24c   : > { %v2022_v7 = vpop.permute.xlu1 %2021  ;;  %3038 = vst.msk [vmem:[%s3600_s26 + $0xb0] sm:$0xff] %vm982_vm1, %v2197_v35  ;;  %v3132_v37 = vld [vmem:[%s3600_s26 + $0x99] sm:$0xff]  ;;  %v2948_v8 = vld [vmem:[%s3600_s26 + $0x411] sm:$0xff]  ;;  %3102 = vst.msk [vmem:[%s3600_s26 + $0x248] sm:$0xff] %vm982_vm1, %v2422_v30 }
 0x24d   : > { %2975 = vst.msk [vmem:[%s3600_s26 + $0x3d9] sm:$0xff] %vm982_vm1, %v2101_v26  ;;  %v2102_v62 = vadd.f32 %v2944_v25, %v2022_v7  ;;  %2918 = vst.msk [vmem:[%s3600_s26 + $0x5c0] sm:$0xff] %vm982_vm1, %v1884_v50  ;;  %v6114_v26 = vld [vmem:[#allocation32_spill] sm:$0xff]  ;;  %v2950_v19 = vld [vmem:[%s3600_s26 + $0x429] sm:$0xff] }
 0x24e   : > { %v1715_v39 = vpop.permute.xlu0 %1714  ;;  %v2516_v63 = vadd.f32 %v6114_v26, %v3132_v37  ;;  %3163 = vst.msk [vmem:[%s3600_s26 + $0x91] sm:$0xff] %vm982_vm1, %v2515_v9  ;;  %v2887_v59 = vld [vmem:[%s3600_s26 + $0x5d0] sm:$0xff]  ;;  %v3009_v27 = vld [vmem:[%s3600_s26 + $0xd8] sm:$0xff]  ;;  %v3072_v37 = vld [vmem:[%s3600_s26 + $0x260] sm:$0xff] }
 0x24f   : > { %2976 = vst.msk [vmem:[%s3600_s26 + $0x3e1] sm:$0xff] %vm982_vm1, %v2102_v62  ;;  %v1788_v7 = vadd.f32 %v2823_v41, %v1715_v39  ;;  %v3069_v62 = vld [vmem:[%s3600_s26 + $0x240] sm:$0xff]  ;;  %v2200_v50 = vadd.f32 %v3009_v27, %v6060_v11  ;;  %v6119_v27 = vld [vmem:[#allocation35_spill] sm:$0xff] }
 0x250   : > { %v1717_v13 = vpop.permute.xlu1 %1716  ;;  %3164 = vst.msk [vmem:[%s3600_s26 + $0x99] sm:$0xff] %vm982_vm1, %v2516_v63  ;;  %v2421_v12 = vadd.f32 %v3069_v62, %v5544_v24  ;;  %v3008_v24 = vld [vmem:[%s3600_s26 + $0xc8] sm:$0xff]  ;;  %v6116_v63 = vld [vmem:[#allocation33_spill] sm:$0xff] }
 0x251   : > { %v1789_v15 = vadd.f32 %v2824_v45, %v1717_v13  ;;  %2855 = vst.msk [vmem:[%s3600_s26 + $0x438] sm:$0xff] %vm982_vm1, %v1788_v7  ;;  %v2198_v13 = vadd.f32 %v3007_v48, %v4620_v23  ;;  %v2199_v23 = vadd.f32 %v3008_v24, %v4631_v52  ;;  %v1886_v52 = vadd.f32 %v2888_v28, %v6077_v10  ;;  %v3010_v10 = vld [vmem:[%s3600_s26 + $0xe0] sm:$0xff]  ;;  %v2953_v48 = vld [vmem:[%s3600_s26 + $0x451] sm:$0xff] }
 0x252   : > { %v5606_v33 = vpop.permute.xlu0 %2341  ;;  %3101 = vst.msk [vmem:[%s3600_s26 + $0x240] sm:$0xff] %vm982_vm1, %v2421_v12  ;;  %3041 = vst.msk [vmem:[%s3600_s26 + $0xd8] sm:$0xff] %vm982_vm1, %v2200_v50  ;;  %v2201_v3 = vadd.f32 %v3010_v10, %v6063_v6  ;;  %v6115_v9 = vld [vmem:[#allocation34_spill] sm:$0xff] }
 0x253   : > { %2856 = vst.msk [vmem:[%s3600_s26 + $0x440] sm:$0xff] %vm982_vm1, %v1789_v15  ;;  %3039 = vst.msk [vmem:[%s3600_s26 + $0xc0] sm:$0xff] %vm982_vm1, %v2198_v13  ;;  %v3133_v11 = vld [vmem:[%s3600_s26 + $0xa9] sm:$0xff] }
 0x254   : > { %v5613_v17 = vpop.permute.xlu1 %2343  ;;  %3040 = vst.msk [vmem:[%s3600_s26 + $0xc8] sm:$0xff] %vm982_vm1, %v2199_v23  ;;  %2920 = vst.msk [vmem:[%s3600_s26 + $0x5d8] sm:$0xff] %vm982_vm1, %v1886_v52  ;;  %v2517_v26 = vadd.f32 %v3133_v11, %v6115_v9  ;;  %v3073_v13 = vld [vmem:[%s3600_s26 + $0x270] sm:$0xff]  ;;  %v2954_v23 = vld [vmem:[%s3600_s26 + $0x459] sm:$0xff] }
 0x255   : > { %v2424_v7 = vadd.f32 %v3072_v37, %v5613_v17  ;;  %3042 = vst.msk [vmem:[%s3600_s26 + $0xe0] sm:$0xff] %vm982_vm1, %v2201_v3  ;;  %v3013_v11 = vld [vmem:[%s3600_s26 + $0x108] sm:$0xff]  ;;  %v3014_v37 = vld [vmem:[%s3600_s26 + $0x110] sm:$0xff] }
 0x256   : > { %v2024_v40 = vpop.permute.xlu0 %2023  ;;  %3165 = vst.msk [vmem:[%s3600_s26 + $0xa9] sm:$0xff] %vm982_vm1, %v2517_v26  ;;  %v3075_v3 = vld [vmem:[%s3600_s26 + $0x288] sm:$0xff]  ;;  %v2204_v9 = vadd.f32 %v3013_v11, %v6074_v14 }
 0x257   : > { %v2103_v60 = vadd.f32 %v2945_v54, %v2024_v40  ;;  %v2949_v54 = vld [vmem:[%s3600_s26 + $0x421] sm:$0xff]  ;;  %v1885_v40 = vadd.f32 %v2887_v59, %v6076_v2  ;;  %v3071_v2 = vld [vmem:[%s3600_s26 + $0x258] sm:$0xff]  ;;  %3104 = vst.msk [vmem:[%s3600_s26 + $0x260] sm:$0xff] %vm982_vm1, %v2424_v7 }
 0x258   : > { %v2026_v34 = vpop.permute.xlu1 %2025  ;;  %3045 = vst.msk [vmem:[%s3600_s26 + $0x108] sm:$0xff] %vm982_vm1, %v2204_v9 }
 0x259   : > { %2977 = vst.msk [vmem:[%s3600_s26 + $0x3f1] sm:$0xff] %vm982_vm1, %v2103_v60  ;;  %v2104_v1 = vadd.f32 %v2946_v29, %v2026_v34  ;;  %2919 = vst.msk [vmem:[%s3600_s26 + $0x5d0] sm:$0xff] %vm982_vm1, %v1885_v40  ;;  %v2423_v34 = vadd.f32 %v3071_v2, %v5606_v33  ;;  %v3011_v33 = vld [vmem:[%s3600_s26 + $0xf0] sm:$0xff] }
 0x25a   : > { %v5640_v46 = vpop.permute.xlu0 %2345  ;;  %v2951_v15 = vld [vmem:[%s3600_s26 + $0x439] sm:$0xff] }
 0x25b   : > { %2978 = vst.msk [vmem:[%s3600_s26 + $0x3f9] sm:$0xff] %vm982_vm1, %v2104_v1  ;;  %v3134_v1 = vld [vmem:[%s3600_s26 + $0xb1] sm:$0xff]  ;;  %3103 = vst.msk [vmem:[%s3600_s26 + $0x258] sm:$0xff] %vm982_vm1, %v2423_v34  ;;  %v2425_v30 = vadd.f32 %v3073_v13, %v5640_v46  ;;  %v3135_v40 = vld [vmem:[%s3600_s26 + $0xc1] sm:$0xff] }
 0x25c   : > { %v5648_v25 = vpop.permute.xlu1 %2347  ;;  %v2518_v41 = vadd.f32 %v3134_v1, %v6116_v63  ;;  %v3136_v46 = vld [vmem:[%s3600_s26 + $0xc9] sm:$0xff]  ;;  %v2957_v34 = vld [vmem:[%s3600_s26 + $0x481] sm:$0xff]  ;;  %v3017_v13 = vld [vmem:[%s3600_s26 + $0x138] sm:$0xff] }
 0x25d   : > { %3105 = vst.msk [vmem:[%s3600_s26 + $0x270] sm:$0xff] %vm982_vm1, %v2425_v30  ;;  %v3019_v30 = vld [vmem:[%s3600_s26 + $0x150] sm:$0xff] }
 0x25e   : > { %v2028_v38 = vpop.permute.xlu0 %2027  ;;  %3166 = vst.msk [vmem:[%s3600_s26 + $0xb1] sm:$0xff] %vm982_vm1, %v2518_v41  ;;  %v6121_v41 = vld [vmem:[#allocation50_spill] sm:$0xff] }
 0x25f   : > { %v2105_v57 = vadd.f32 %v2947_v5, %v2028_v38  ;;  %v2952_v5 = vld [vmem:[%s3600_s26 + $0x441] sm:$0xff]  ;;  %v2205_v7 = vadd.f32 %v3014_v37, %v6121_v41 }
 0x260   : > { %v2030_v39 = vpop.permute.xlu1 %2029  ;;  %v6117_v38 = vld [vmem:[#allocation45_spill] sm:$0xff] }
 0x261   : > { %2979 = vst.msk [vmem:[%s3600_s26 + $0x409] sm:$0xff] %vm982_vm1, %v2105_v57  ;;  %v2106_v58 = vadd.f32 %v2948_v8, %v2030_v39  ;;  %v2202_v62 = vadd.f32 %v3011_v33, %v6117_v38  ;;  %v3012_v39 = vld [vmem:[%s3600_s26 + $0xf8] sm:$0xff]  ;;  %v3076_v33 = vld [vmem:[%s3600_s26 + $0x290] sm:$0xff]  ;;  %3046 = vst.msk [vmem:[%s3600_s26 + $0x110] sm:$0xff] %vm982_vm1, %v2205_v7 }
 0x262   : > { %v5669_v21 = vpop.permute.xlu0 %2349  ;;  %v2203_v24 = vadd.f32 %v3012_v39, %v6118_v47  ;;  %v2959_v38 = vld [vmem:[%s3600_s26 + $0x499] sm:$0xff] }
 0x263   : > { %2980 = vst.msk [vmem:[%s3600_s26 + $0x411] sm:$0xff] %vm982_vm1, %v2106_v58  ;;  %3043 = vst.msk [vmem:[%s3600_s26 + $0xf0] sm:$0xff] %vm982_vm1, %v2202_v62  ;;  %v2427_v63 = vadd.f32 %v3075_v3, %v5669_v21  ;;  %v3137_v62 = vld [vmem:[%s3600_s26 + $0xd9] sm:$0xff] }
 0x264   : > { %v5678_v43 = vpop.permute.xlu1 %2351  ;;  %3044 = vst.msk [vmem:[%s3600_s26 + $0xf8] sm:$0xff] %vm982_vm1, %v2203_v24  ;;  %v2208_v24 = vadd.f32 %v3017_v13, %v4737_v18 }
 0x265   : > { %3107 = vst.msk [vmem:[%s3600_s26 + $0x288] sm:$0xff] %vm982_vm1, %v2427_v63 }
 0x266   : > { %v2032_v0 = vpop.permute.xlu0 %2031  ;;  %3049 = vst.msk [vmem:[%s3600_s26 + $0x138] sm:$0xff] %vm982_vm1, %v2208_v24 }
 0x267   : > { %v2107_v49 = vadd.f32 %v2949_v54, %v2032_v0  ;;  %v3074_v54 = vld [vmem:[%s3600_s26 + $0x278] sm:$0xff] }
 0x268   : > { %v2034_v60 = vpop.permute.xlu1 %2033  ;;  %v2426_v28 = vadd.f32 %v3074_v54, %v5648_v25  ;;  %v2956_v25 = vld [vmem:[%s3600_s26 + $0x471] sm:$0xff]  ;;  %v3078_v54 = vld [vmem:[%s3600_s26 + $0x2a8] sm:$0xff] }
 0x269   : > { %2981 = vst.msk [vmem:[%s3600_s26 + $0x421] sm:$0xff] %vm982_vm1, %v2107_v49  ;;  %v2108_v35 = vadd.f32 %v2950_v19, %v2034_v60  ;;  %v2955_v49 = vld [vmem:[%s3600_s26 + $0x469] sm:$0xff]  ;;  %v2519_v19 = vadd.f32 %v6119_v27, %v3135_v40  ;;  %v6120_v60 = vld [vmem:[#allocation37_spill] sm:$0xff]  ;;  %v3142_v63 = vld [vmem:[%s3600_s26 + $0x111] sm:$0xff] }
 0x26a   : > { %v5699_v29 = vpop.permute.xlu0 %2353  ;;  %v2520_v50 = vadd.f32 %v6120_v60, %v3136_v46  ;;  %3106 = vst.msk [vmem:[%s3600_s26 + $0x278] sm:$0xff] %vm982_vm1, %v2426_v28  ;;  %v3141_v9 = vld [vmem:[%s3600_s26 + $0x109] sm:$0xff] }
 0x26b   : > { %2982 = vst.msk [vmem:[%s3600_s26 + $0x429] sm:$0xff] %vm982_vm1, %v2108_v35  ;;  %3167 = vst.msk [vmem:[%s3600_s26 + $0xc1] sm:$0xff] %vm982_vm1, %v2519_v19  ;;  %v3139_v46 = vld [vmem:[%s3600_s26 + $0xf1] sm:$0xff] }
 0x26c   : > { %v5713_v45 = vpop.permute.xlu1 %2355  ;;  %3168 = vst.msk [vmem:[%s3600_s26 + $0xc9] sm:$0xff] %vm982_vm1, %v2520_v50  ;;  %v2523_v27 = vadd.f32 %v5204_v42, %v3139_v46  ;;  %v3080_v50 = vld [vmem:[%s3600_s26 + $0x2c0] sm:$0xff] }
 0x26d   : > { %v2430_v40 = vadd.f32 %v3078_v54, %v5713_v45  ;;  %v3021_v45 = vld [vmem:[%s3600_s26 + $0x168] sm:$0xff] }
 0x26e   : > { %v2036_v6 = vpop.permute.xlu0 %2035  ;;  %3171 = vst.msk [vmem:[%s3600_s26 + $0xf1] sm:$0xff] %vm982_vm1, %v2523_v27  ;;  %v2212_v42 = vadd.f32 %v3021_v45, %v6102_v53  ;;  %v6130_v27 = vld [vmem:[#allocation39_spill] sm:$0xff] }
 0x26f   : > { %v2109_v57 = vadd.f32 %v2951_v15, %v2036_v6  ;;  %v3015_v6 = vld [vmem:[%s3600_s26 + $0x120] sm:$0xff]  ;;  %v2958_v15 = vld [vmem:[%s3600_s26 + $0x489] sm:$0xff]  ;;  %3110 = vst.msk [vmem:[%s3600_s26 + $0x2a8] sm:$0xff] %vm982_vm1, %v2430_v40 }
 0x270   : > { %v2038_v17 = vpop.permute.xlu1 %2037  ;;  %v2206_v14 = vadd.f32 %v3015_v6, %v6087_v55  ;;  %v2521_v55 = vadd.f32 %v3137_v62, %v5208_v44  ;;  %3053 = vst.msk [vmem:[%s3600_s26 + $0x168] sm:$0xff] %vm982_vm1, %v2212_v42  ;;  %v2526_v6 = vadd.f32 %v3142_v63, %v5294_v22  ;;  %v3085_v22 = vld [vmem:[%s3600_s26 + $0x300] sm:$0xff] }
 0x271   : > { %v2110_v12 = vadd.f32 %v2952_v5, %v2038_v17  ;;  %2983 = vst.msk [vmem:[%s3600_s26 + $0x439] sm:$0xff] %vm982_vm1, %v2109_v57  ;;  %v2428_v5 = vadd.f32 %v3076_v33, %v5678_v43  ;;  %v3151_v40 = vld [vmem:[%s3600_s26 + $0x181] sm:$0xff] }
 0x272   : > { %v2040_v8 = vpop.permute.xlu0 %2039  ;;  %3047 = vst.msk [vmem:[%s3600_s26 + $0x120] sm:$0xff] %vm982_vm1, %v2206_v14  ;;  %3169 = vst.msk [vmem:[%s3600_s26 + $0xd9] sm:$0xff] %vm982_vm1, %v2521_v55 }
 0x273   : > { %2984 = vst.msk [vmem:[%s3600_s26 + $0x441] sm:$0xff] %vm982_vm1, %v2110_v12  ;;  %v2111_v58 = vadd.f32 %v2953_v48, %v2040_v8  ;;  %v3138_v12 = vld [vmem:[%s3600_s26 + $0xe1] sm:$0xff]  ;;  %3108 = vst.msk [vmem:[%s3600_s26 + $0x290] sm:$0xff] %vm982_vm1, %v2428_v5 }
 0x274   : > { %v2042_v59 = vpop.permute.xlu1 %2041  ;;  %v3016_v48 = vld [vmem:[%s3600_s26 + $0x128] sm:$0xff]  ;;  %v2522_v8 = vadd.f32 %v3138_v12, %v5224_v36  ;;  %3174 = vst.msk [vmem:[%s3600_s26 + $0x111] sm:$0xff] %vm982_vm1, %v2526_v6 }
 0x275   : > { %2985 = vst.msk [vmem:[%s3600_s26 + $0x451] sm:$0xff] %vm982_vm1, %v2111_v58  ;;  %v2112_v0 = vadd.f32 %v2954_v23, %v2042_v59  ;;  %v2207_v39 = vadd.f32 %v3016_v48, %v6089_v31  ;;  %v2960_v58 = vld [vmem:[%s3600_s26 + $0x4a1] sm:$0xff] }
 0x276   : > { %v2044_v52 = vpop.permute.xlu0 %2043  ;;  %3170 = vst.msk [vmem:[%s3600_s26 + $0xe1] sm:$0xff] %vm982_vm1, %v2522_v8  ;;  %v3018_v31 = vld [vmem:[%s3600_s26 + $0x140] sm:$0xff] }
 0x277   : > { %2986 = vst.msk [vmem:[%s3600_s26 + $0x459] sm:$0xff] %vm982_vm1, %v2112_v0  ;;  %v2113_v35 = vadd.f32 %v2955_v49, %v2044_v52  ;;  %3048 = vst.msk [vmem:[%s3600_s26 + $0x128] sm:$0xff] %vm982_vm1, %v2207_v39  ;;  %v2209_v18 = vadd.f32 %v3018_v31, %v4747_v61  ;;  %v3077_v59 = vld [vmem:[%s3600_s26 + $0x2a0] sm:$0xff]  ;;  %v2210_v0 = vadd.f32 %v3019_v30, %v6097_v16  ;;  %v3079_v49 = vld [vmem:[%s3600_s26 + $0x2b8] sm:$0xff] }
 0x278   : > { %v2046_v2 = vpop.permute.xlu1 %2045  ;;  %v2429_v28 = vadd.f32 %v3077_v59, %v5699_v29  ;;  %v3140_v61 = vld [vmem:[%s3600_s26 + $0xf9] sm:$0xff] }
 0x279   : > { %2987 = vst.msk [vmem:[%s3600_s26 + $0x469] sm:$0xff] %vm982_vm1, %v2113_v35  ;;  %v2114_v10 = vadd.f32 %v2956_v25, %v2046_v2  ;;  %3050 = vst.msk [vmem:[%s3600_s26 + $0x140] sm:$0xff] %vm982_vm1, %v2209_v18  ;;  %v6122_v16 = vld [vmem:[#allocation36_spill] sm:$0xff]  ;;  %v3088_v8 = vld [vmem:[%s3600_s26 + $0x320] sm:$0xff] }
 0x27a   : > { %v2048_v1 = vpop.permute.xlu0 %2047  ;;  %3051 = vst.msk [vmem:[%s3600_s26 + $0x150] sm:$0xff] %vm982_vm1, %v2210_v0  ;;  %v2524_v19 = vadd.f32 %v6122_v16, %v3140_v61  ;;  %3109 = vst.msk [vmem:[%s3600_s26 + $0x2a0] sm:$0xff] %vm982_vm1, %v2429_v28  ;;  %v3020_v29 = vld [vmem:[%s3600_s26 + $0x158] sm:$0xff]  ;;  %v6128_v0 = vld [vmem:[#allocation38_spill] sm:$0xff] }
 0x27b   : > { %2988 = vst.msk [vmem:[%s3600_s26 + $0x471] sm:$0xff] %vm982_vm1, %v2114_v10  ;;  %v2115_v26 = vadd.f32 %v2957_v34, %v2048_v1  ;;  %v2211_v25 = vadd.f32 %v3020_v29, %v4788_v56  ;;  %v3081_v10 = vld [vmem:[%s3600_s26 + $0x2d0] sm:$0xff]  ;;  %v3082_v1 = vld [vmem:[%s3600_s26 + $0x2d8] sm:$0xff] }
 0x27c   : > { %v2050_v17 = vpop.permute.xlu1 %2049  ;;  %3172 = vst.msk [vmem:[%s3600_s26 + $0xf9] sm:$0xff] %vm982_vm1, %v2524_v19  ;;  %v3022_v56 = vld [vmem:[%s3600_s26 + $0x170] sm:$0xff]  ;;  %v6127_v59 = vld [vmem:[#allocation9_spill] sm:$0xff] }
 0x27d   : > { %2989 = vst.msk [vmem:[%s3600_s26 + $0x481] sm:$0xff] %vm982_vm1, %v2115_v26  ;;  %v2116_v21 = vadd.f32 %v2958_v15, %v2050_v17  ;;  %3052 = vst.msk [vmem:[%s3600_s26 + $0x158] sm:$0xff] %vm982_vm1, %v2211_v25  ;;  %v2213_v53 = vadd.f32 %v3022_v56, %v6103_v4  ;;  %v3083_v26 = vld [vmem:[%s3600_s26 + $0x2e8] sm:$0xff]  ;;  %v2525_v4 = vadd.f32 %v3141_v9, %v5281_v32  ;;  %v3084_v15 = vld [vmem:[%s3600_s26 + $0x2f0] sm:$0xff] }
 0x27e   : > { %v2052_v57 = vpop.permute.xlu0 %2051  ;;  %v3087_v17 = vld [vmem:[%s3600_s26 + $0x318] sm:$0xff]  ;;  %v3143_v14 = vld [vmem:[%s3600_s26 + $0x121] sm:$0xff]  ;;  %v3144_v32 = vld [vmem:[%s3600_s26 + $0x129] sm:$0xff] }
 0x27f   : > { %2990 = vst.msk [vmem:[%s3600_s26 + $0x489] sm:$0xff] %vm982_vm1, %v2116_v21  ;;  %v2117_v43 = vadd.f32 %v2959_v38, %v2052_v57  ;;  %3054 = vst.msk [vmem:[%s3600_s26 + $0x170] sm:$0xff] %vm982_vm1, %v2213_v53  ;;  %v6123_v38 = vld [vmem:[#allocation8_spill] sm:$0xff]  ;;  %v6124_v57 = vld [vmem:[#allocation10_spill] sm:$0xff] }
 0x280   : > { %v2054_v47 = vpop.permute.xlu1 %2053  ;;  %3173 = vst.msk [vmem:[%s3600_s26 + $0x109] sm:$0xff] %vm982_vm1, %v2525_v4  ;;  %v2527_v62 = vadd.f32 %v6123_v38, %v3143_v14  ;;  %v2528_v12 = vadd.f32 %v6124_v57, %v3144_v32  ;;  %v3146_v24 = vld [vmem:[%s3600_s26 + $0x141] sm:$0xff]  ;;  %v6126_v31 = vld [vmem:[#allocation12_spill] sm:$0xff]  ;;  %v3152_v61 = vld [vmem:[%s3600_s26 + $0x189] sm:$0xff] }
 0x281   : > { %2991 = vst.msk [vmem:[%s3600_s26 + $0x499] sm:$0xff] %vm982_vm1, %v2117_v43  ;;  %v2118_v44 = vadd.f32 %v2960_v58, %v2054_v47  ;;  %v3086_v43 = vld [vmem:[%s3600_s26 + $0x308] sm:$0xff]  ;;  %v3145_v47 = vld [vmem:[%s3600_s26 + $0x139] sm:$0xff]  ;;  %v2530_v18 = vadd.f32 %v3146_v24, %v6126_v31  ;;  %v2536_v19 = vadd.f32 %v5384_v51, %v3152_v61 }
 0x282   : > { %v2358_v36 = vpop.permute.xlu0 %2357  ;;  %3175 = vst.msk [vmem:[%s3600_s26 + $0x121] sm:$0xff] %vm982_vm1, %v2527_v62  ;;  %3176 = vst.msk [vmem:[%s3600_s26 + $0x129] sm:$0xff] %vm982_vm1, %v2528_v12 }
 0x283   : > { %2992 = vst.msk [vmem:[%s3600_s26 + $0x4a1] sm:$0xff] %vm982_vm1, %v2118_v44  ;;  %v2431_v60 = vadd.f32 %v3079_v49, %v2358_v36  ;;  %v6125_v44 = vld [vmem:[#allocation11_spill] sm:$0xff]  ;;  %3178 = vst.msk [vmem:[%s3600_s26 + $0x141] sm:$0xff] %vm982_vm1, %v2530_v18  ;;  %v6129_v49 = vld [vmem:[#allocation14_spill] sm:$0xff] }
 0x284   : > { %v2360_v23 = vpop.permute.xlu1 %2359  ;;  %v2529_v36 = vadd.f32 %v3145_v47, %v6125_v44  ;;  %v3147_v30 = vld [vmem:[%s3600_s26 + $0x151] sm:$0xff]  ;;  %3184 = vst.msk [vmem:[%s3600_s26 + $0x189] sm:$0xff] %vm982_vm1, %v2536_v19 }
 0x285   : > { %3111 = vst.msk [vmem:[%s3600_s26 + $0x2b8] sm:$0xff] %vm982_vm1, %v2431_v60  ;;  %v2432_v2 = vadd.f32 %v3080_v50, %v2360_v23  ;;  %v3148_v23 = vld [vmem:[%s3600_s26 + $0x159] sm:$0xff]  ;;  %v2531_v54 = vadd.f32 %v6127_v59, %v3147_v30 }
 0x286   : > { %v2362_v52 = vpop.permute.xlu0 %2361  ;;  %3177 = vst.msk [vmem:[%s3600_s26 + $0x139] sm:$0xff] %vm982_vm1, %v2529_v36  ;;  %v2532_v28 = vadd.f32 %v6128_v0, %v3148_v23  ;;  %v3149_v46 = vld [vmem:[%s3600_s26 + $0x169] sm:$0xff]  ;;  %v3150_v60 = vld [vmem:[%s3600_s26 + $0x171] sm:$0xff] }
 0x287   : > { %3112 = vst.msk [vmem:[%s3600_s26 + $0x2c0] sm:$0xff] %vm982_vm1, %v2432_v2  ;;  %v2433_v11 = vadd.f32 %v3081_v10, %v2362_v52  ;;  %3179 = vst.msk [vmem:[%s3600_s26 + $0x151] sm:$0xff] %vm982_vm1, %v2531_v54  ;;  %v2535_v52 = vadd.f32 %v6129_v49, %v3151_v40  ;;  %v2533_v16 = vadd.f32 %v3149_v46, %v6130_v27 }
 0x288   : > { %v2364_v35 = vpop.permute.xlu1 %2363  ;;  %3180 = vst.msk [vmem:[%s3600_s26 + $0x159] sm:$0xff] %vm982_vm1, %v2532_v28  ;;  %v2534_v29 = vadd.f32 %v3150_v60, %v5391_v20 }
 0x289   : > { %3113 = vst.msk [vmem:[%s3600_s26 + $0x2d0] sm:$0xff] %vm982_vm1, %v2433_v11  ;;  %v2434_v37 = vadd.f32 %v3082_v1, %v2364_v35  ;;  %3183 = vst.msk [vmem:[%s3600_s26 + $0x181] sm:$0xff] %vm982_vm1, %v2535_v52 }
 0x28a   : > { %v2366_v34 = vpop.permute.xlu0 %2365  ;;  %3181 = vst.msk [vmem:[%s3600_s26 + $0x169] sm:$0xff] %vm982_vm1, %v2533_v16  ;;  %3182 = vst.msk [vmem:[%s3600_s26 + $0x171] sm:$0xff] %vm982_vm1, %v2534_v29 }
 0x28b   : > { %3114 = vst.msk [vmem:[%s3600_s26 + $0x2d8] sm:$0xff] %vm982_vm1, %v2434_v37  ;;  %v2435_v7 = vadd.f32 %v3083_v26, %v2366_v34 }
 0x28c   : > { %v2368_v3 = vpop.permute.xlu1 %2367 }
 0x28d   : > { %3115 = vst.msk [vmem:[%s3600_s26 + $0x2e8] sm:$0xff] %vm982_vm1, %v2435_v7  ;;  %v2436_v5 = vadd.f32 %v3084_v15, %v2368_v3 }
 0x28e   : > { %v2370_v41 = vpop.permute.xlu0 %2369 }
 0x28f   : > { %v2437_v48 = vadd.f32 %v3085_v22, %v2370_v41  ;;  %3116 = vst.msk [vmem:[%s3600_s26 + $0x2f0] sm:$0xff] %vm982_vm1, %v2436_v5 }
 0x290   : > { %v2372_v33 = vpop.permute.xlu1 %2371 }
 0x291   : > { %3117 = vst.msk [vmem:[%s3600_s26 + $0x300] sm:$0xff] %vm982_vm1, %v2437_v48  ;;  %v2438_v13 = vadd.f32 %v3086_v43, %v2372_v33 }
 0x292   : > { %v2374_v21 = vpop.permute.xlu0 %2373 }
 0x293   : > { %v2439_v55 = vadd.f32 %v3087_v17, %v2374_v21  ;;  %3118 = vst.msk [vmem:[%s3600_s26 + $0x308] sm:$0xff] %vm982_vm1, %v2438_v13 }
 0x294   : > { %v2376_v39 = vpop.permute.xlu1 %2375 }
 0x295   : > { %3119 = vst.msk [vmem:[%s3600_s26 + $0x318] sm:$0xff] %vm982_vm1, %v2439_v55  ;;  %v2440_v58 = vadd.f32 %v3088_v8, %v2376_v39 }
 0x297   : > { %3120 = vst.msk [vmem:[%s3600_s26 + $0x320] sm:$0xff] %vm982_vm1, %v2440_v58 }
 0x298 PF: > { %s15_s12 = sadd.s32 1, %s3380_s12  }
 0x299   : > { %p12_p10 = scmp.ge.s32.totalorder %s15_s12, 4  }
 0x29b   :  { %14 = sbr.rel (!%p12_p10) target bundleno = 2 (0x2), region = 76 }
 0x2a2   :  { %2593 = vsyncpa [#allocation3], 1 }
 0x2a3   :  { %2595 = vsyncpa [#allocation3 + $0x1], 1 }
 0x2a4   :  { %2596 = vsyncpa [#allocation5], 1 }

</bundles_post_ra>
